<compile_context>
chip_gen: v7x
topology: tpu7x:2x2x1
jax: 0.10.0
libtpu: 0.0.40
codegen_flags: <defaults>
</compile_context>

<pallas_src>
import functools

import jax
import jax.numpy as jnp
from jax.experimental import pallas as pl
from jax.experimental.pallas import tpu as pltpu


# ---------------------------------------------------------------------------
# BlockSpec helpers
# ---------------------------------------------------------------------------
def _rep_spec(shape):
    """Full-array block, replicated across the batch grid (parameters)."""
    n = len(shape)
    return pl.BlockSpec(tuple(shape), lambda b, _n=n: (0,) * _n)


def _batch_spec(shape):
    """Per-batch block: (1, *rest) indexed by the grid's batch coordinate."""
    n = len(shape)
    return pl.BlockSpec((1,) + tuple(shape[1:]),
                        lambda b, _n=n: (b,) + (0,) * (_n - 1))


# ---------------------------------------------------------------------------
# fully fused forward kernel (one grid step == one batch element)
# ---------------------------------------------------------------------------
def _posterior_kernel(
    # per-batch inputs
    x_ref, y_ref, xm_ref, ymc_ref, ymr_ref, eps_ref,
    # stacked encoder-layer parameters  [num_layers, ...]
    wq_ref, bq_ref, wk_ref, bk_ref, wv_ref, bv_ref,
    wo_ref, bo_ref, w1_ref, b1_ref, w2_ref, b2_ref,
    ln1g_ref, ln1b_ref, ln2g_ref, ln2b_ref,
    # GaussianVariable parameters
    wm_ref, bm_ref, wl_ref, bl_ref, wout_ref, bout_ref,
    # outputs
    mean_ref, logv_ref, z_ref, rec_ref,
    *, num_heads):
    f32 = jnp.float32

    x = x_ref[0]            # [T, C]  source embeddings
    y = y_ref[0]            # [T, C]  target embeddings
    xm = xm_ref[0]          # [T, 1]  source mask (1.0 = token)
    ym_col = ymc_ref[0]     # [T, 1]  target mask (column orientation)
    ym_row = ymr_ref[0]     # [1, T]  target mask (row orientation, for keys)

    T, C = y.shape
    num_layers = wq_ref.shape[0]
    Dh = C // num_heads
    scale = Dh ** -0.5

    def masked_mean(v, m_col):
        den = jnp.maximum(jnp.sum(m_col, axis=0, keepdims=True), 1.0)   # [1, 1]
        return jnp.sum(v * m_col, axis=0, keepdims=True) / den          # [1, C]

    def layer_norm(v, g, b):
        mu = jnp.mean(v, axis=-1, keepdims=True)
        var = jnp.mean((v - mu) ** 2, axis=-1, keepdims=True)
        return (v - mu) * jax.lax.rsqrt(var + 1e-5) * g + b

    # ---- h_f: masked mean over source embeddings -------------------------
    h_f = masked_mean(x, xm)                                             # [1, C]

    # ---- hoisted constants (reused by every layer) ------------------------
    # per-head lane-selection masks: head h owns lanes [h*Dh, (h+1)*Dh)
    lane = jax.lax.broadcasted_iota(jnp.int32, (T, C), 1)
    head_sel = [(lane >= h * Dh) & (lane < (h + 1) * Dh)
                for h in range(num_heads)]
    # additive key-padding bias (padded keys get -1e9 before softmax)
    key_bias = jnp.where(ym_row > 0.5, 0.0, -1e9)                        # [1, T]

    # ---- y_encoder: post-norm transformer layers --------------------------
    # TODO(synk): TransformerEncoderNet's positional-embedding / embed-scale
    # details are not in the provided source; a layers-only encoder is used.
    h = y
    for l in range(num_layers):
        q = jnp.dot(h, wq_ref[l], preferred_element_type=f32) + bq_ref[l]
        k = jnp.dot(h, wk_ref[l], preferred_element_type=f32) + bk_ref[l]
        v = jnp.dot(h, wv_ref[l], preferred_element_type=f32) + bv_ref[l]

        # multi-head attention; heads handled via lane masks so the merged
        # [T, C] output is produced directly (lane-dense, no concat/reshape).
        attn = jnp.zeros((T, C), f32)
        for hh in range(num_heads):
            qh = jnp.where(head_sel[hh], q, 0.0)
            kh = jnp.where(head_sel[hh], k, 0.0)
            vh = jnp.where(head_sel[hh], v, 0.0)
            s = jax.lax.dot_general(qh, kh, (((1,), (1,)), ((), ())),
                                    preferred_element_type=f32) * scale
            s = s + key_bias
            s = s - jnp.max(s, axis=-1, keepdims=True)
            p = jnp.exp(s)
            p = p * pl.reciprocal(jnp.sum(p, axis=-1, keepdims=True),
                                  approx=True)
            attn = attn + jnp.dot(p, vh, preferred_element_type=f32)

        a = jnp.dot(attn, wo_ref[l], preferred_element_type=f32) + bo_ref[l]
        h = layer_norm(h + a, ln1g_ref[l], ln1b_ref[l])

        f = jnp.dot(h, w1_ref[l], preferred_element_type=f32) + b1_ref[l]
        f = jnp.maximum(f, 0.0)                                          # ReLU
        f = jnp.dot(f, w2_ref[l], preferred_element_type=f32) + b2_ref[l]
        h = layer_norm(h + f, ln2g_ref[l], ln2b_ref[l])

    # ---- h_e: masked mean over encoded target -----------------------------
    h_e = masked_mean(h, ym_col)                                         # [1, C]

    # ---- GaussianVariable head: concat-dot done as split dots -------------
    wm = wm_ref[...]   # [2C, L]
    wl = wl_ref[...]   # [2C, L]
    mean = (jnp.dot(h_f, wm[:C], preferred_element_type=f32)
            + jnp.dot(h_e, wm[C:], preferred_element_type=f32) + bm_ref[...])
    logv = (jnp.dot(h_f, wl[:C], preferred_element_type=f32)
            + jnp.dot(h_e, wl[C:], preferred_element_type=f32) + bl_ref[...])
    z = mean + eps_ref[0] * jnp.exp(0.5 * logv)          # reparameterisation
    rec = jnp.dot(z, wout_ref[...], preferred_element_type=f32) + bout_ref[...]

    mean_ref[0] = mean
    logv_ref[0] = logv
    z_ref[0] = z
    rec_ref[0] = rec


# ---------------------------------------------------------------------------
# wrapper
# ---------------------------------------------------------------------------
def posterior_forward(params, x_embed, y_embed, x_mask, y_mask, eps):
    """x_embed, y_embed: [T, B, C] (fairseq layout); masks: [B, T] bool, True=token."""
    T, B, C = x_embed.shape
    L = params["b_mean"].shape[-1]

    # [T,B,C] -> [B,T,C]  (mirrors .transpose(0,1) in the original forward()).
    x_btc = jnp.transpose(x_embed, (1, 0, 2)).astype(jnp.float32)
    y_btc = jnp.transpose(y_embed, (1, 0, 2)).astype(jnp.float32)
    xm_col = x_mask.astype(jnp.float32)[:, :, None]     # [B, T, 1]
    ym_col = y_mask.astype(jnp.float32)[:, :, None]     # [B, T, 1]
    ym_row = y_mask.astype(jnp.float32)[:, None, :]     # [B, 1, T]
    eps3 = eps.astype(jnp.float32).reshape(B, 1, L)     # [B, 1, L]

    args = (x_btc, y_btc, xm_col, ym_col, ym_row, eps3,
            params["wq"], params["bq"], params["wk"], params["bk"],
            params["wv"], params["bv"], params["wo"], params["bo"],
            params["w1"], params["b1"], params["w2"], params["b2"],
            params["ln1_g"], params["ln1_b"], params["ln2_g"], params["ln2_b"],
            params["w_mean"], params["b_mean"],
            params["w_logv"], params["b_logv"],
            params["w_out"], params["b_out"])
    n_batched = 6   # first 6 args are per-batch; the rest are parameters

    in_specs = [(_batch_spec(a.shape) if i < n_batched else _rep_spec(a.shape))
                for i, a in enumerate(args)]
    out_shapes = (
        jax.ShapeDtypeStruct((B, 1, L), jnp.float32),   # mean
        jax.ShapeDtypeStruct((B, 1, L), jnp.float32),   # logv
        jax.ShapeDtypeStruct((B, 1, L), jnp.float32),   # z
        jax.ShapeDtypeStruct((B, 1, C), jnp.float32),   # rec
    )
    out_specs = tuple(_batch_spec(o.shape) for o in out_shapes)

    kern = functools.partial(_posterior_kernel, num_heads=params["num_heads"])
    mean3, logv3, z3, rec3 = pl.pallas_call(
        kern,
        grid=(B,),
        in_specs=in_specs,
        out_specs=out_specs,
        out_shape=out_shapes,
        compiler_params=pltpu.CompilerParams(
            dimension_semantics=("parallel",)),
    )(*args)

    return {"mean": mean3[:, 0, :], "logv": logv3[:, 0, :],
            "z": z3[:, 0, :], "rec": rec3[:, 0, :]}


# ---------------------------------------------------------------------------
# deterministic parameter init (per-layer params stacked along a leading axis)
# ---------------------------------------------------------------------------
def init_params(key, C, num_heads, ffn_dim, latent_dim, num_layers):
    keys = jax.random.split(key, num_layers * 6 + 3)

    def w(k, shape, scale=0.02):
        return (scale * jax.random.normal(k, shape)).astype(jnp.float32)

    def zeros(*shape):
        return jnp.zeros(shape, jnp.float32)

    def ones(*shape):
        return jnp.ones(shape, jnp.float32)

    NL = num_layers
    params = {
        "num_heads": num_heads,
        "wq": jnp.stack([w(keys[l * 6 + 0], (C, C)) for l in range(NL)]),
        "wk": jnp.stack([w(keys[l * 6 + 1], (C, C)) for l in range(NL)]),
        "wv": jnp.stack([w(keys[l * 6 + 2], (C, C)) for l in range(NL)]),
        "wo": jnp.stack([w(keys[l * 6 + 3], (C, C)) for l in range(NL)]),
        "w1": jnp.stack([w(keys[l * 6 + 4], (C, ffn_dim)) for l in range(NL)]),
        "w2": jnp.stack([w(keys[l * 6 + 5], (ffn_dim, C)) for l in range(NL)]),
        "bq": zeros(NL, 1, C), "bk": zeros(NL, 1, C), "bv": zeros(NL, 1, C),
        "bo": zeros(NL, 1, C),
        "b1": zeros(NL, 1, ffn_dim), "b2": zeros(NL, 1, C),
        "ln1_g": ones(NL, 1, C), "ln1_b": zeros(NL, 1, C),
        "ln2_g": ones(NL, 1, C), "ln2_b": zeros(NL, 1, C),
        "w_mean": w(keys[NL * 6 + 0], (2 * C, latent_dim)),
        "b_mean": zeros(1, latent_dim),
        "w_logv": w(keys[NL * 6 + 1], (2 * C, latent_dim)),
        "b_logv": zeros(1, latent_dim),
        "w_out": w(keys[NL * 6 + 2], (latent_dim, C)),
        "b_out": zeros(1, C),
    }
    return params


if __name__ == "__main__":
    B, T, C = 2, 8, 32                       # batch, seq, encoder_embed_dim
    num_heads, ffn_dim, latent_dim, num_layers = 4, 64, 16, 2

    root = jax.random.PRNGKey(0)
    k_params, k_x, k_y, k_eps = jax.random.split(root, 4)
    params = init_params(k_params, C, num_heads, ffn_dim, latent_dim, num_layers)

    x_embed = jax.random.normal(k_x, (T, B, C), jnp.float32)   # [T, B, C]
    y_embed = jax.random.normal(k_y, (T, B, C), jnp.float32)   # [T, B, C]
    x_len = jnp.array([8, 6])
    y_len = jnp.array([8, 5])
    x_mask = jnp.arange(T)[None, :] < x_len[:, None]           # [B, T] True = token
    y_mask = jnp.arange(T)[None, :] < y_len[:, None]
    # reparameterisation noise (torch.randn_like equivalent), fixed for determinism
    eps = jax.random.normal(k_eps, (B, latent_dim), jnp.float32)

    out = posterior_forward(params, x_embed, y_embed, x_mask, y_mask, eps)
    jax.tree_util.tree_map(jax.block_until_ready, out)

    assert out["mean"].shape == (B, latent_dim)
    assert out["logv"].shape == (B, latent_dim)
    assert out["z"].shape == (B, latent_dim)
    assert out["rec"].shape == (B, C)
    assert all(bool(jnp.all(jnp.isfinite(v))) for v in out.values())
    print("KERNEL_OK")
</pallas_src>

<mosaic_0001>
module attributes {stable_mosaic.version = 11 : i64} {
  func.func @_posterior_kernel(%arg0: i32, %arg1: memref<1x8x32xf32, #tpu.memory_space<vmem>>, %arg2: memref<1x8x32xf32, #tpu.memory_space<vmem>>, %arg3: memref<1x8x1xf32, #tpu.memory_space<vmem>>, %arg4: memref<1x8x1xf32, #tpu.memory_space<vmem>>, %arg5: memref<1x1x8xf32, #tpu.memory_space<vmem>>, %arg6: memref<1x1x16xf32, #tpu.memory_space<vmem>>, %arg7: memref<2x32x32xf32, #tpu.memory_space<vmem>>, %arg8: memref<2x1x32xf32, #tpu.memory_space<vmem>>, %arg9: memref<2x32x32xf32, #tpu.memory_space<vmem>>, %arg10: memref<2x1x32xf32, #tpu.memory_space<vmem>>, %arg11: memref<2x32x32xf32, #tpu.memory_space<vmem>>, %arg12: memref<2x1x32xf32, #tpu.memory_space<vmem>>, %arg13: memref<2x32x32xf32, #tpu.memory_space<vmem>>, %arg14: memref<2x1x32xf32, #tpu.memory_space<vmem>>, %arg15: memref<2x32x64xf32, #tpu.memory_space<vmem>>, %arg16: memref<2x1x64xf32, #tpu.memory_space<vmem>>, %arg17: memref<2x64x32xf32, #tpu.memory_space<vmem>>, %arg18: memref<2x1x32xf32, #tpu.memory_space<vmem>>, %arg19: memref<2x1x32xf32, #tpu.memory_space<vmem>>, %arg20: memref<2x1x32xf32, #tpu.memory_space<vmem>>, %arg21: memref<2x1x32xf32, #tpu.memory_space<vmem>>, %arg22: memref<2x1x32xf32, #tpu.memory_space<vmem>>, %arg23: memref<64x16xf32, #tpu.memory_space<vmem>>, %arg24: memref<1x16xf32, #tpu.memory_space<vmem>>, %arg25: memref<64x16xf32, #tpu.memory_space<vmem>>, %arg26: memref<1x16xf32, #tpu.memory_space<vmem>>, %arg27: memref<16x32xf32, #tpu.memory_space<vmem>>, %arg28: memref<1x32xf32, #tpu.memory_space<vmem>>, %arg29: memref<1x1x16xf32, #tpu.memory_space<vmem>>, %arg30: memref<1x1x16xf32, #tpu.memory_space<vmem>>, %arg31: memref<1x1x16xf32, #tpu.memory_space<vmem>>, %arg32: memref<1x1x32xf32, #tpu.memory_space<vmem>>) attributes {dimension_semantics = [#tpu.dimension_semantics<parallel>], iteration_bounds = array<i64: 2>, scalar_prefetch = 0 : i64, scratch_operands = 0 : i64, tpu.core_type = #tpu.core_type<tc>, window_params = [{transform_indices = @transform_0, window_bounds = array<i64: 1, 8, 32>}, {transform_indices = @transform_1, window_bounds = array<i64: 1, 8, 32>}, {transform_indices = @transform_2, window_bounds = array<i64: 1, 8, 1>}, {transform_indices = @transform_3, window_bounds = array<i64: 1, 8, 1>}, {transform_indices = @transform_4, window_bounds = array<i64: 1, 1, 8>}, {transform_indices = @transform_5, window_bounds = array<i64: 1, 1, 16>}, {pipeline_mode = #tpu.pipeline_mode<synchronous>, transform_indices = @transform_6, window_bounds = array<i64: 2, 32, 32>}, {pipeline_mode = #tpu.pipeline_mode<synchronous>, transform_indices = @transform_7, window_bounds = array<i64: 2, 1, 32>}, {pipeline_mode = #tpu.pipeline_mode<synchronous>, transform_indices = @transform_8, window_bounds = array<i64: 2, 32, 32>}, {pipeline_mode = #tpu.pipeline_mode<synchronous>, transform_indices = @transform_9, window_bounds = array<i64: 2, 1, 32>}, {pipeline_mode = #tpu.pipeline_mode<synchronous>, transform_indices = @transform_10, window_bounds = array<i64: 2, 32, 32>}, {pipeline_mode = #tpu.pipeline_mode<synchronous>, transform_indices = @transform_11, window_bounds = array<i64: 2, 1, 32>}, {pipeline_mode = #tpu.pipeline_mode<synchronous>, transform_indices = @transform_12, window_bounds = array<i64: 2, 32, 32>}, {pipeline_mode = #tpu.pipeline_mode<synchronous>, transform_indices = @transform_13, window_bounds = array<i64: 2, 1, 32>}, {pipeline_mode = #tpu.pipeline_mode<synchronous>, transform_indices = @transform_14, window_bounds = array<i64: 2, 32, 64>}, {pipeline_mode = #tpu.pipeline_mode<synchronous>, transform_indices = @transform_15, window_bounds = array<i64: 2, 1, 64>}, {pipeline_mode = #tpu.pipeline_mode<synchronous>, transform_indices = @transform_16, window_bounds = array<i64: 2, 64, 32>}, {pipeline_mode = #tpu.pipeline_mode<synchronous>, transform_indices = @transform_17, window_bounds = array<i64: 2, 1, 32>}, {pipeline_mode = #tpu.pipeline_mode<synchronous>, transform_indices = @transform_18, window_bounds = array<i64: 2, 1, 32>}, {pipeline_mode = #tpu.pipeline_mode<synchronous>, transform_indices = @transform_19, window_bounds = array<i64: 2, 1, 32>}, {pipeline_mode = #tpu.pipeline_mode<synchronous>, transform_indices = @transform_20, window_bounds = array<i64: 2, 1, 32>}, {pipeline_mode = #tpu.pipeline_mode<synchronous>, transform_indices = @transform_21, window_bounds = array<i64: 2, 1, 32>}, {pipeline_mode = #tpu.pipeline_mode<synchronous>, transform_indices = @transform_22, window_bounds = array<i64: 64, 16>}, {pipeline_mode = #tpu.pipeline_mode<synchronous>, transform_indices = @transform_23, window_bounds = array<i64: 1, 16>}, {pipeline_mode = #tpu.pipeline_mode<synchronous>, transform_indices = @transform_24, window_bounds = array<i64: 64, 16>}, {pipeline_mode = #tpu.pipeline_mode<synchronous>, transform_indices = @transform_25, window_bounds = array<i64: 1, 16>}, {pipeline_mode = #tpu.pipeline_mode<synchronous>, transform_indices = @transform_26, window_bounds = array<i64: 16, 32>}, {pipeline_mode = #tpu.pipeline_mode<synchronous>, transform_indices = @transform_27, window_bounds = array<i64: 1, 32>}, {transform_indices = @transform_28, window_bounds = array<i64: 1, 1, 16>}, {transform_indices = @transform_29, window_bounds = array<i64: 1, 1, 16>}, {transform_indices = @transform_30, window_bounds = array<i64: 1, 1, 16>}, {transform_indices = @transform_31, window_bounds = array<i64: 1, 1, 32>}]} {
    %c0 = arith.constant 0 : index
    %c0_0 = arith.constant 0 : index
    %c0_1 = arith.constant 0 : index
    %0 = vector.load %arg1[%c0, %c0_0, %c0_1] : memref<1x8x32xf32, #tpu.memory_space<vmem>>, vector<1x8x32xf32>
    %1 = vector.shape_cast %0 : vector<1x8x32xf32> to vector<8x32xf32>
    %c0_2 = arith.constant 0 : index
    %c0_3 = arith.constant 0 : index
    %c0_4 = arith.constant 0 : index
    %2 = vector.load %arg2[%c0_2, %c0_3, %c0_4] : memref<1x8x32xf32, #tpu.memory_space<vmem>>, vector<1x8x32xf32>
    %3 = vector.shape_cast %2 : vector<1x8x32xf32> to vector<8x32xf32>
    %c0_5 = arith.constant 0 : index
    %c0_6 = arith.constant 0 : index
    %c0_7 = arith.constant 0 : index
    %4 = vector.load %arg3[%c0_5, %c0_6, %c0_7] : memref<1x8x1xf32, #tpu.memory_space<vmem>>, vector<1x8x1xf32>
    %5 = vector.shape_cast %4 : vector<1x8x1xf32> to vector<8x1xf32>
    %c0_8 = arith.constant 0 : index
    %c0_9 = arith.constant 0 : index
    %c0_10 = arith.constant 0 : index
    %6 = vector.load %arg4[%c0_8, %c0_9, %c0_10] : memref<1x8x1xf32, #tpu.memory_space<vmem>>, vector<1x8x1xf32>
    %7 = vector.shape_cast %6 : vector<1x8x1xf32> to vector<8x1xf32>
    %c0_11 = arith.constant 0 : index
    %c0_12 = arith.constant 0 : index
    %c0_13 = arith.constant 0 : index
    %8 = vector.load %arg5[%c0_11, %c0_12, %c0_13] : memref<1x1x8xf32, #tpu.memory_space<vmem>>, vector<1x1x8xf32>
    %9 = vector.shape_cast %8 : vector<1x1x8xf32> to vector<1x8xf32>
    %cst = arith.constant dense<0.000000e+00> : vector<1xf32>
    %10 = vector.multi_reduction <add>, %5, %cst [0] : vector<8x1xf32> to vector<1xf32>
    %11 = vector.shape_cast %10 : vector<1xf32> to vector<1x1xf32>
    %cst_14 = arith.constant 1.000000e+00 : f32
    %12 = vector.broadcast %cst_14 : f32 to vector<1x1xf32>
    %13 = arith.maximumf %11, %12 : vector<1x1xf32>
    %14 = vector.broadcast %5 : vector<8x1xf32> to vector<8x32xf32>
    %15 = arith.mulf %1, %14 : vector<8x32xf32>
    %cst_15 = arith.constant dense<0.000000e+00> : vector<32xf32>
    %16 = vector.multi_reduction <add>, %15, %cst_15 [0] : vector<8x32xf32> to vector<32xf32>
    %17 = vector.shape_cast %16 : vector<32xf32> to vector<1x32xf32>
    %18 = vector.broadcast %13 : vector<1x1xf32> to vector<1x32xf32>
    %19 = arith.divf %17, %18 : vector<1x32xf32>
    %20 = tpu.iota {dimensions = array<i32: 1>} : vector<8x32xi32>
    %c0_i32 = arith.constant 0 : i32
    %21 = vector.broadcast %c0_i32 : i32 to vector<8x32xi32>
    %22 = arith.cmpi sge, %20, %21 : vector<8x32xi32>
    %c8_i32 = arith.constant 8 : i32
    %23 = vector.broadcast %c8_i32 : i32 to vector<8x32xi32>
    %24 = arith.cmpi slt, %20, %23 : vector<8x32xi32>
    %25 = arith.andi %22, %24 : vector<8x32xi1>
    %c8_i32_16 = arith.constant 8 : i32
    %26 = vector.broadcast %c8_i32_16 : i32 to vector<8x32xi32>
    %27 = arith.cmpi sge, %20, %26 : vector<8x32xi32>
    %c16_i32 = arith.constant 16 : i32
    %28 = vector.broadcast %c16_i32 : i32 to vector<8x32xi32>
    %29 = arith.cmpi slt, %20, %28 : vector<8x32xi32>
    %30 = arith.andi %27, %29 : vector<8x32xi1>
    %c16_i32_17 = arith.constant 16 : i32
    %31 = vector.broadcast %c16_i32_17 : i32 to vector<8x32xi32>
    %32 = arith.cmpi sge, %20, %31 : vector<8x32xi32>
    %c24_i32 = arith.constant 24 : i32
    %33 = vector.broadcast %c24_i32 : i32 to vector<8x32xi32>
    %34 = arith.cmpi slt, %20, %33 : vector<8x32xi32>
    %35 = arith.andi %32, %34 : vector<8x32xi1>
    %c24_i32_18 = arith.constant 24 : i32
    %36 = vector.broadcast %c24_i32_18 : i32 to vector<8x32xi32>
    %37 = arith.cmpi sge, %20, %36 : vector<8x32xi32>
    %c32_i32 = arith.constant 32 : i32
    %38 = vector.broadcast %c32_i32 : i32 to vector<8x32xi32>
    %39 = arith.cmpi slt, %20, %38 : vector<8x32xi32>
    %40 = arith.andi %37, %39 : vector<8x32xi1>
    %cst_19 = arith.constant 5.000000e-01 : f32
    %41 = vector.broadcast %cst_19 : f32 to vector<1x8xf32>
    %42 = arith.cmpf ogt, %9, %41 : vector<1x8xf32>
    %cst_20 = arith.constant 0.000000e+00 : f32
    %cst_21 = arith.constant -1.000000e+09 : f32
    %43 = vector.broadcast %cst_20 : f32 to vector<1x8xf32>
    %44 = vector.broadcast %cst_21 : f32 to vector<1x8xf32>
    %45 = arith.select %42, %43, %44 : vector<1x8xi1>, vector<1x8xf32>
    %c0_22 = arith.constant 0 : index
    %c0_23 = arith.constant 0 : index
    %c0_24 = arith.constant 0 : index
    %46 = vector.load %arg7[%c0_22, %c0_23, %c0_24] : memref<2x32x32xf32, #tpu.memory_space<vmem>>, vector<1x32x32xf32>
    %47 = vector.shape_cast %46 : vector<1x32x32xf32> to vector<32x32xf32>
    %cst_25 = arith.constant dense<0.000000e+00> : vector<8x32xf32>
    %48 = tpu.matmul %3, %47, %cst_25 {dimension_numbers = #tpu.dot_dimension_numbers<[1], [0], [0], [1], [0, 0, 1, 1], [], []>} : vector<8x32xf32>, vector<32x32xf32>, vector<8x32xf32> -> vector<8x32xf32>
    %c0_26 = arith.constant 0 : index
    %c0_27 = arith.constant 0 : index
    %c0_28 = arith.constant 0 : index
    %49 = vector.load %arg8[%c0_26, %c0_27, %c0_28] : memref<2x1x32xf32, #tpu.memory_space<vmem>>, vector<1x1x32xf32>
    %50 = vector.shape_cast %49 : vector<1x1x32xf32> to vector<1x32xf32>
    %51 = vector.broadcast %50 : vector<1x32xf32> to vector<8x32xf32>
    %52 = arith.addf %48, %51 : vector<8x32xf32>
    %c0_29 = arith.constant 0 : index
    %c0_30 = arith.constant 0 : index
    %c0_31 = arith.constant 0 : index
    %53 = vector.load %arg9[%c0_29, %c0_30, %c0_31] : memref<2x32x32xf32, #tpu.memory_space<vmem>>, vector<1x32x32xf32>
    %54 = vector.shape_cast %53 : vector<1x32x32xf32> to vector<32x32xf32>
    %cst_32 = arith.constant dense<0.000000e+00> : vector<8x32xf32>
    %55 = tpu.matmul %3, %54, %cst_32 {dimension_numbers = #tpu.dot_dimension_numbers<[1], [0], [0], [1], [0, 0, 1, 1], [], []>} : vector<8x32xf32>, vector<32x32xf32>, vector<8x32xf32> -> vector<8x32xf32>
    %c0_33 = arith.constant 0 : index
    %c0_34 = arith.constant 0 : index
    %c0_35 = arith.constant 0 : index
    %56 = vector.load %arg10[%c0_33, %c0_34, %c0_35] : memref<2x1x32xf32, #tpu.memory_space<vmem>>, vector<1x1x32xf32>
    %57 = vector.shape_cast %56 : vector<1x1x32xf32> to vector<1x32xf32>
    %58 = vector.broadcast %57 : vector<1x32xf32> to vector<8x32xf32>
    %59 = arith.addf %55, %58 : vector<8x32xf32>
    %c0_36 = arith.constant 0 : index
    %c0_37 = arith.constant 0 : index
    %c0_38 = arith.constant 0 : index
    %60 = vector.load %arg11[%c0_36, %c0_37, %c0_38] : memref<2x32x32xf32, #tpu.memory_space<vmem>>, vector<1x32x32xf32>
    %61 = vector.shape_cast %60 : vector<1x32x32xf32> to vector<32x32xf32>
    %cst_39 = arith.constant dense<0.000000e+00> : vector<8x32xf32>
    %62 = tpu.matmul %3, %61, %cst_39 {dimension_numbers = #tpu.dot_dimension_numbers<[1], [0], [0], [1], [0, 0, 1, 1], [], []>} : vector<8x32xf32>, vector<32x32xf32>, vector<8x32xf32> -> vector<8x32xf32>
    %c0_40 = arith.constant 0 : index
    %c0_41 = arith.constant 0 : index
    %c0_42 = arith.constant 0 : index
    %63 = vector.load %arg12[%c0_40, %c0_41, %c0_42] : memref<2x1x32xf32, #tpu.memory_space<vmem>>, vector<1x1x32xf32>
    %64 = vector.shape_cast %63 : vector<1x1x32xf32> to vector<1x32xf32>
    %65 = vector.broadcast %64 : vector<1x32xf32> to vector<8x32xf32>
    %66 = arith.addf %62, %65 : vector<8x32xf32>
    %cst_43 = arith.constant 0.000000e+00 : f32
    %67 = vector.broadcast %cst_43 : f32 to vector<8x32xf32>
    %cst_44 = arith.constant 0.000000e+00 : f32
    %68 = vector.broadcast %cst_44 : f32 to vector<8x32xf32>
    %69 = arith.select %25, %52, %68 : vector<8x32xi1>, vector<8x32xf32>
    %cst_45 = arith.constant 0.000000e+00 : f32
    %70 = vector.broadcast %cst_45 : f32 to vector<8x32xf32>
    %71 = arith.select %25, %59, %70 : vector<8x32xi1>, vector<8x32xf32>
    %cst_46 = arith.constant 0.000000e+00 : f32
    %72 = vector.broadcast %cst_46 : f32 to vector<8x32xf32>
    %73 = arith.select %25, %66, %72 : vector<8x32xi1>, vector<8x32xf32>
    %cst_47 = arith.constant dense<0.000000e+00> : vector<8x8xf32>
    %74 = tpu.matmul %69, %71, %cst_47 {dimension_numbers = #tpu.dot_dimension_numbers<[1], [1], [0], [0], [0, 0, 1, 0], [], []>} : vector<8x32xf32>, vector<8x32xf32>, vector<8x8xf32> -> vector<8x8xf32>
    %cst_48 = arith.constant 0.353553385 : f32
    %75 = vector.broadcast %cst_48 : f32 to vector<8x8xf32>
    %76 = arith.mulf %74, %75 : vector<8x8xf32>
    %77 = vector.broadcast %45 : vector<1x8xf32> to vector<8x8xf32>
    %78 = arith.addf %76, %77 : vector<8x8xf32>
    %cst_49 = arith.constant dense<0xFF800000> : vector<8xf32>
    %79 = vector.multi_reduction <maximumf>, %78, %cst_49 [1] : vector<8x8xf32> to vector<8xf32>
    %80 = vector.shape_cast %79 : vector<8xf32> to vector<8x1xf32>
    %81 = vector.broadcast %80 : vector<8x1xf32> to vector<8x8xf32>
    %82 = arith.subf %78, %81 : vector<8x8xf32>
    %83 = math.exp %82 : vector<8x8xf32>
    %cst_50 = arith.constant dense<0.000000e+00> : vector<8xf32>
    %84 = vector.multi_reduction <add>, %83, %cst_50 [1] : vector<8x8xf32> to vector<8xf32>
    %85 = vector.shape_cast %84 : vector<8xf32> to vector<8x1xf32>
    %86 = tpu.reciprocal %85 {approx = true} : vector<8x1xf32> -> vector<8x1xf32>
    %87 = vector.broadcast %86 : vector<8x1xf32> to vector<8x8xf32>
    %88 = arith.mulf %83, %87 : vector<8x8xf32>
    %cst_51 = arith.constant dense<0.000000e+00> : vector<8x32xf32>
    %89 = tpu.matmul %88, %73, %cst_51 {dimension_numbers = #tpu.dot_dimension_numbers<[1], [0], [0], [1], [0, 0, 1, 1], [], []>} : vector<8x8xf32>, vector<8x32xf32>, vector<8x32xf32> -> vector<8x32xf32>
    %90 = arith.addf %67, %89 : vector<8x32xf32>
    %cst_52 = arith.constant 0.000000e+00 : f32
    %91 = vector.broadcast %cst_52 : f32 to vector<8x32xf32>
    %92 = arith.select %30, %52, %91 : vector<8x32xi1>, vector<8x32xf32>
    %cst_53 = arith.constant 0.000000e+00 : f32
    %93 = vector.broadcast %cst_53 : f32 to vector<8x32xf32>
    %94 = arith.select %30, %59, %93 : vector<8x32xi1>, vector<8x32xf32>
    %cst_54 = arith.constant 0.000000e+00 : f32
    %95 = vector.broadcast %cst_54 : f32 to vector<8x32xf32>
    %96 = arith.select %30, %66, %95 : vector<8x32xi1>, vector<8x32xf32>
    %cst_55 = arith.constant dense<0.000000e+00> : vector<8x8xf32>
    %97 = tpu.matmul %92, %94, %cst_55 {dimension_numbers = #tpu.dot_dimension_numbers<[1], [1], [0], [0], [0, 0, 1, 0], [], []>} : vector<8x32xf32>, vector<8x32xf32>, vector<8x8xf32> -> vector<8x8xf32>
    %cst_56 = arith.constant 0.353553385 : f32
    %98 = vector.broadcast %cst_56 : f32 to vector<8x8xf32>
    %99 = arith.mulf %97, %98 : vector<8x8xf32>
    %100 = vector.broadcast %45 : vector<1x8xf32> to vector<8x8xf32>
    %101 = arith.addf %99, %100 : vector<8x8xf32>
    %cst_57 = arith.constant dense<0xFF800000> : vector<8xf32>
    %102 = vector.multi_reduction <maximumf>, %101, %cst_57 [1] : vector<8x8xf32> to vector<8xf32>
    %103 = vector.shape_cast %102 : vector<8xf32> to vector<8x1xf32>
    %104 = vector.broadcast %103 : vector<8x1xf32> to vector<8x8xf32>
    %105 = arith.subf %101, %104 : vector<8x8xf32>
    %106 = math.exp %105 : vector<8x8xf32>
    %cst_58 = arith.constant dense<0.000000e+00> : vector<8xf32>
    %107 = vector.multi_reduction <add>, %106, %cst_58 [1] : vector<8x8xf32> to vector<8xf32>
    %108 = vector.shape_cast %107 : vector<8xf32> to vector<8x1xf32>
    %109 = tpu.reciprocal %108 {approx = true} : vector<8x1xf32> -> vector<8x1xf32>
    %110 = vector.broadcast %109 : vector<8x1xf32> to vector<8x8xf32>
    %111 = arith.mulf %106, %110 : vector<8x8xf32>
    %cst_59 = arith.constant dense<0.000000e+00> : vector<8x32xf32>
    %112 = tpu.matmul %111, %96, %cst_59 {dimension_numbers = #tpu.dot_dimension_numbers<[1], [0], [0], [1], [0, 0, 1, 1], [], []>} : vector<8x8xf32>, vector<8x32xf32>, vector<8x32xf32> -> vector<8x32xf32>
    %113 = arith.addf %90, %112 : vector<8x32xf32>
    %cst_60 = arith.constant 0.000000e+00 : f32
    %114 = vector.broadcast %cst_60 : f32 to vector<8x32xf32>
    %115 = arith.select %35, %52, %114 : vector<8x32xi1>, vector<8x32xf32>
    %cst_61 = arith.constant 0.000000e+00 : f32
    %116 = vector.broadcast %cst_61 : f32 to vector<8x32xf32>
    %117 = arith.select %35, %59, %116 : vector<8x32xi1>, vector<8x32xf32>
    %cst_62 = arith.constant 0.000000e+00 : f32
    %118 = vector.broadcast %cst_62 : f32 to vector<8x32xf32>
    %119 = arith.select %35, %66, %118 : vector<8x32xi1>, vector<8x32xf32>
    %cst_63 = arith.constant dense<0.000000e+00> : vector<8x8xf32>
    %120 = tpu.matmul %115, %117, %cst_63 {dimension_numbers = #tpu.dot_dimension_numbers<[1], [1], [0], [0], [0, 0, 1, 0], [], []>} : vector<8x32xf32>, vector<8x32xf32>, vector<8x8xf32> -> vector<8x8xf32>
    %cst_64 = arith.constant 0.353553385 : f32
    %121 = vector.broadcast %cst_64 : f32 to vector<8x8xf32>
    %122 = arith.mulf %120, %121 : vector<8x8xf32>
    %123 = vector.broadcast %45 : vector<1x8xf32> to vector<8x8xf32>
    %124 = arith.addf %122, %123 : vector<8x8xf32>
    %cst_65 = arith.constant dense<0xFF800000> : vector<8xf32>
    %125 = vector.multi_reduction <maximumf>, %124, %cst_65 [1] : vector<8x8xf32> to vector<8xf32>
    %126 = vector.shape_cast %125 : vector<8xf32> to vector<8x1xf32>
    %127 = vector.broadcast %126 : vector<8x1xf32> to vector<8x8xf32>
    %128 = arith.subf %124, %127 : vector<8x8xf32>
    %129 = math.exp %128 : vector<8x8xf32>
    %cst_66 = arith.constant dense<0.000000e+00> : vector<8xf32>
    %130 = vector.multi_reduction <add>, %129, %cst_66 [1] : vector<8x8xf32> to vector<8xf32>
    %131 = vector.shape_cast %130 : vector<8xf32> to vector<8x1xf32>
    %132 = tpu.reciprocal %131 {approx = true} : vector<8x1xf32> -> vector<8x1xf32>
    %133 = vector.broadcast %132 : vector<8x1xf32> to vector<8x8xf32>
    %134 = arith.mulf %129, %133 : vector<8x8xf32>
    %cst_67 = arith.constant dense<0.000000e+00> : vector<8x32xf32>
    %135 = tpu.matmul %134, %119, %cst_67 {dimension_numbers = #tpu.dot_dimension_numbers<[1], [0], [0], [1], [0, 0, 1, 1], [], []>} : vector<8x8xf32>, vector<8x32xf32>, vector<8x32xf32> -> vector<8x32xf32>
    %136 = arith.addf %113, %135 : vector<8x32xf32>
    %cst_68 = arith.constant 0.000000e+00 : f32
    %137 = vector.broadcast %cst_68 : f32 to vector<8x32xf32>
    %138 = arith.select %40, %52, %137 : vector<8x32xi1>, vector<8x32xf32>
    %cst_69 = arith.constant 0.000000e+00 : f32
    %139 = vector.broadcast %cst_69 : f32 to vector<8x32xf32>
    %140 = arith.select %40, %59, %139 : vector<8x32xi1>, vector<8x32xf32>
    %cst_70 = arith.constant 0.000000e+00 : f32
    %141 = vector.broadcast %cst_70 : f32 to vector<8x32xf32>
    %142 = arith.select %40, %66, %141 : vector<8x32xi1>, vector<8x32xf32>
    %cst_71 = arith.constant dense<0.000000e+00> : vector<8x8xf32>
    %143 = tpu.matmul %138, %140, %cst_71 {dimension_numbers = #tpu.dot_dimension_numbers<[1], [1], [0], [0], [0, 0, 1, 0], [], []>} : vector<8x32xf32>, vector<8x32xf32>, vector<8x8xf32> -> vector<8x8xf32>
    %cst_72 = arith.constant 0.353553385 : f32
    %144 = vector.broadcast %cst_72 : f32 to vector<8x8xf32>
    %145 = arith.mulf %143, %144 : vector<8x8xf32>
    %146 = vector.broadcast %45 : vector<1x8xf32> to vector<8x8xf32>
    %147 = arith.addf %145, %146 : vector<8x8xf32>
    %cst_73 = arith.constant dense<0xFF800000> : vector<8xf32>
    %148 = vector.multi_reduction <maximumf>, %147, %cst_73 [1] : vector<8x8xf32> to vector<8xf32>
    %149 = vector.shape_cast %148 : vector<8xf32> to vector<8x1xf32>
    %150 = vector.broadcast %149 : vector<8x1xf32> to vector<8x8xf32>
    %151 = arith.subf %147, %150 : vector<8x8xf32>
    %152 = math.exp %151 : vector<8x8xf32>
    %cst_74 = arith.constant dense<0.000000e+00> : vector<8xf32>
    %153 = vector.multi_reduction <add>, %152, %cst_74 [1] : vector<8x8xf32> to vector<8xf32>
    %154 = vector.shape_cast %153 : vector<8xf32> to vector<8x1xf32>
    %155 = tpu.reciprocal %154 {approx = true} : vector<8x1xf32> -> vector<8x1xf32>
    %156 = vector.broadcast %155 : vector<8x1xf32> to vector<8x8xf32>
    %157 = arith.mulf %152, %156 : vector<8x8xf32>
    %cst_75 = arith.constant dense<0.000000e+00> : vector<8x32xf32>
    %158 = tpu.matmul %157, %142, %cst_75 {dimension_numbers = #tpu.dot_dimension_numbers<[1], [0], [0], [1], [0, 0, 1, 1], [], []>} : vector<8x8xf32>, vector<8x32xf32>, vector<8x32xf32> -> vector<8x32xf32>
    %159 = arith.addf %136, %158 : vector<8x32xf32>
    %c0_76 = arith.constant 0 : index
    %c0_77 = arith.constant 0 : index
    %c0_78 = arith.constant 0 : index
    %160 = vector.load %arg13[%c0_76, %c0_77, %c0_78] : memref<2x32x32xf32, #tpu.memory_space<vmem>>, vector<1x32x32xf32>
    %161 = vector.shape_cast %160 : vector<1x32x32xf32> to vector<32x32xf32>
    %cst_79 = arith.constant dense<0.000000e+00> : vector<8x32xf32>
    %162 = tpu.matmul %159, %161, %cst_79 {dimension_numbers = #tpu.dot_dimension_numbers<[1], [0], [0], [1], [0, 0, 1, 1], [], []>} : vector<8x32xf32>, vector<32x32xf32>, vector<8x32xf32> -> vector<8x32xf32>
    %c0_80 = arith.constant 0 : index
    %c0_81 = arith.constant 0 : index
    %c0_82 = arith.constant 0 : index
    %163 = vector.load %arg14[%c0_80, %c0_81, %c0_82] : memref<2x1x32xf32, #tpu.memory_space<vmem>>, vector<1x1x32xf32>
    %164 = vector.shape_cast %163 : vector<1x1x32xf32> to vector<1x32xf32>
    %165 = vector.broadcast %164 : vector<1x32xf32> to vector<8x32xf32>
    %166 = arith.addf %162, %165 : vector<8x32xf32>
    %167 = arith.addf %3, %166 : vector<8x32xf32>
    %c0_83 = arith.constant 0 : index
    %c0_84 = arith.constant 0 : index
    %c0_85 = arith.constant 0 : index
    %168 = vector.load %arg19[%c0_83, %c0_84, %c0_85] : memref<2x1x32xf32, #tpu.memory_space<vmem>>, vector<1x1x32xf32>
    %169 = vector.shape_cast %168 : vector<1x1x32xf32> to vector<1x32xf32>
    %c0_86 = arith.constant 0 : index
    %c0_87 = arith.constant 0 : index
    %c0_88 = arith.constant 0 : index
    %170 = vector.load %arg20[%c0_86, %c0_87, %c0_88] : memref<2x1x32xf32, #tpu.memory_space<vmem>>, vector<1x1x32xf32>
    %171 = vector.shape_cast %170 : vector<1x1x32xf32> to vector<1x32xf32>
    %cst_89 = arith.constant dense<0.000000e+00> : vector<8xf32>
    %172 = vector.multi_reduction <add>, %167, %cst_89 [1] : vector<8x32xf32> to vector<8xf32>
    %173 = vector.shape_cast %172 : vector<8xf32> to vector<8x1xf32>
    %cst_90 = arith.constant 3.200000e+01 : f32
    %174 = vector.broadcast %cst_90 : f32 to vector<8x1xf32>
    %175 = arith.divf %173, %174 : vector<8x1xf32>
    %176 = vector.broadcast %175 : vector<8x1xf32> to vector<8x32xf32>
    %177 = arith.subf %167, %176 : vector<8x32xf32>
    %178 = arith.mulf %177, %177 : vector<8x32xf32>
    %cst_91 = arith.constant dense<0.000000e+00> : vector<8xf32>
    %179 = vector.multi_reduction <add>, %178, %cst_91 [1] : vector<8x32xf32> to vector<8xf32>
    %180 = vector.shape_cast %179 : vector<8xf32> to vector<8x1xf32>
    %cst_92 = arith.constant 3.200000e+01 : f32
    %181 = vector.broadcast %cst_92 : f32 to vector<8x1xf32>
    %182 = arith.divf %180, %181 : vector<8x1xf32>
    %183 = vector.broadcast %175 : vector<8x1xf32> to vector<8x32xf32>
    %184 = arith.subf %167, %183 : vector<8x32xf32>
    %cst_93 = arith.constant 9.99999974E-6 : f32
    %185 = vector.broadcast %cst_93 : f32 to vector<8x1xf32>
    %186 = arith.addf %182, %185 : vector<8x1xf32>
    %187 = math.rsqrt %186 : vector<8x1xf32>
    %188 = vector.broadcast %187 : vector<8x1xf32> to vector<8x32xf32>
    %189 = arith.mulf %184, %188 : vector<8x32xf32>
    %190 = vector.broadcast %169 : vector<1x32xf32> to vector<8x32xf32>
    %191 = arith.mulf %189, %190 : vector<8x32xf32>
    %192 = vector.broadcast %171 : vector<1x32xf32> to vector<8x32xf32>
    %193 = arith.addf %191, %192 : vector<8x32xf32>
    %c0_94 = arith.constant 0 : index
    %c0_95 = arith.constant 0 : index
    %c0_96 = arith.constant 0 : index
    %194 = vector.load %arg15[%c0_94, %c0_95, %c0_96] : memref<2x32x64xf32, #tpu.memory_space<vmem>>, vector<1x32x64xf32>
    %195 = vector.shape_cast %194 : vector<1x32x64xf32> to vector<32x64xf32>
    %cst_97 = arith.constant dense<0.000000e+00> : vector<8x64xf32>
    %196 = tpu.matmul %193, %195, %cst_97 {dimension_numbers = #tpu.dot_dimension_numbers<[1], [0], [0], [1], [0, 0, 1, 1], [], []>} : vector<8x32xf32>, vector<32x64xf32>, vector<8x64xf32> -> vector<8x64xf32>
    %c0_98 = arith.constant 0 : index
    %c0_99 = arith.constant 0 : index
    %c0_100 = arith.constant 0 : index
    %197 = vector.load %arg16[%c0_98, %c0_99, %c0_100] : memref<2x1x64xf32, #tpu.memory_space<vmem>>, vector<1x1x64xf32>
    %198 = vector.shape_cast %197 : vector<1x1x64xf32> to vector<1x64xf32>
    %199 = vector.broadcast %198 : vector<1x64xf32> to vector<8x64xf32>
    %200 = arith.addf %196, %199 : vector<8x64xf32>
    %cst_101 = arith.constant 0.000000e+00 : f32
    %201 = vector.broadcast %cst_101 : f32 to vector<8x64xf32>
    %202 = arith.maximumf %200, %201 : vector<8x64xf32>
    %c0_102 = arith.constant 0 : index
    %c0_103 = arith.constant 0 : index
    %c0_104 = arith.constant 0 : index
    %203 = vector.load %arg17[%c0_102, %c0_103, %c0_104] : memref<2x64x32xf32, #tpu.memory_space<vmem>>, vector<1x64x32xf32>
    %204 = vector.shape_cast %203 : vector<1x64x32xf32> to vector<64x32xf32>
    %cst_105 = arith.constant dense<0.000000e+00> : vector<8x32xf32>
    %205 = tpu.matmul %202, %204, %cst_105 {dimension_numbers = #tpu.dot_dimension_numbers<[1], [0], [0], [1], [0, 0, 1, 1], [], []>} : vector<8x64xf32>, vector<64x32xf32>, vector<8x32xf32> -> vector<8x32xf32>
    %c0_106 = arith.constant 0 : index
    %c0_107 = arith.constant 0 : index
    %c0_108 = arith.constant 0 : index
    %206 = vector.load %arg18[%c0_106, %c0_107, %c0_108] : memref<2x1x32xf32, #tpu.memory_space<vmem>>, vector<1x1x32xf32>
    %207 = vector.shape_cast %206 : vector<1x1x32xf32> to vector<1x32xf32>
    %208 = vector.broadcast %207 : vector<1x32xf32> to vector<8x32xf32>
    %209 = arith.addf %205, %208 : vector<8x32xf32>
    %210 = arith.addf %193, %209 : vector<8x32xf32>
    %c0_109 = arith.constant 0 : index
    %c0_110 = arith.constant 0 : index
    %c0_111 = arith.constant 0 : index
    %211 = vector.load %arg21[%c0_109, %c0_110, %c0_111] : memref<2x1x32xf32, #tpu.memory_space<vmem>>, vector<1x1x32xf32>
    %212 = vector.shape_cast %211 : vector<1x1x32xf32> to vector<1x32xf32>
    %c0_112 = arith.constant 0 : index
    %c0_113 = arith.constant 0 : index
    %c0_114 = arith.constant 0 : index
    %213 = vector.load %arg22[%c0_112, %c0_113, %c0_114] : memref<2x1x32xf32, #tpu.memory_space<vmem>>, vector<1x1x32xf32>
    %214 = vector.shape_cast %213 : vector<1x1x32xf32> to vector<1x32xf32>
    %cst_115 = arith.constant dense<0.000000e+00> : vector<8xf32>
    %215 = vector.multi_reduction <add>, %210, %cst_115 [1] : vector<8x32xf32> to vector<8xf32>
    %216 = vector.shape_cast %215 : vector<8xf32> to vector<8x1xf32>
    %cst_116 = arith.constant 3.200000e+01 : f32
    %217 = vector.broadcast %cst_116 : f32 to vector<8x1xf32>
    %218 = arith.divf %216, %217 : vector<8x1xf32>
    %219 = vector.broadcast %218 : vector<8x1xf32> to vector<8x32xf32>
    %220 = arith.subf %210, %219 : vector<8x32xf32>
    %221 = arith.mulf %220, %220 : vector<8x32xf32>
    %cst_117 = arith.constant dense<0.000000e+00> : vector<8xf32>
    %222 = vector.multi_reduction <add>, %221, %cst_117 [1] : vector<8x32xf32> to vector<8xf32>
    %223 = vector.shape_cast %222 : vector<8xf32> to vector<8x1xf32>
    %cst_118 = arith.constant 3.200000e+01 : f32
    %224 = vector.broadcast %cst_118 : f32 to vector<8x1xf32>
    %225 = arith.divf %223, %224 : vector<8x1xf32>
    %226 = vector.broadcast %218 : vector<8x1xf32> to vector<8x32xf32>
    %227 = arith.subf %210, %226 : vector<8x32xf32>
    %cst_119 = arith.constant 9.99999974E-6 : f32
    %228 = vector.broadcast %cst_119 : f32 to vector<8x1xf32>
    %229 = arith.addf %225, %228 : vector<8x1xf32>
    %230 = math.rsqrt %229 : vector<8x1xf32>
    %231 = vector.broadcast %230 : vector<8x1xf32> to vector<8x32xf32>
    %232 = arith.mulf %227, %231 : vector<8x32xf32>
    %233 = vector.broadcast %212 : vector<1x32xf32> to vector<8x32xf32>
    %234 = arith.mulf %232, %233 : vector<8x32xf32>
    %235 = vector.broadcast %214 : vector<1x32xf32> to vector<8x32xf32>
    %236 = arith.addf %234, %235 : vector<8x32xf32>
    %c1 = arith.constant 1 : index
    %c0_120 = arith.constant 0 : index
    %c0_121 = arith.constant 0 : index
    %237 = vector.load %arg7[%c1, %c0_120, %c0_121] : memref<2x32x32xf32, #tpu.memory_space<vmem>>, vector<1x32x32xf32>
    %238 = vector.shape_cast %237 : vector<1x32x32xf32> to vector<32x32xf32>
    %cst_122 = arith.constant dense<0.000000e+00> : vector<8x32xf32>
    %239 = tpu.matmul %236, %238, %cst_122 {dimension_numbers = #tpu.dot_dimension_numbers<[1], [0], [0], [1], [0, 0, 1, 1], [], []>} : vector<8x32xf32>, vector<32x32xf32>, vector<8x32xf32> -> vector<8x32xf32>
    %c1_123 = arith.constant 1 : index
    %c0_124 = arith.constant 0 : index
    %c0_125 = arith.constant 0 : index
    %240 = vector.load %arg8[%c1_123, %c0_124, %c0_125] : memref<2x1x32xf32, #tpu.memory_space<vmem>>, vector<1x1x32xf32>
    %241 = vector.shape_cast %240 : vector<1x1x32xf32> to vector<1x32xf32>
    %242 = vector.broadcast %241 : vector<1x32xf32> to vector<8x32xf32>
    %243 = arith.addf %239, %242 : vector<8x32xf32>
    %c1_126 = arith.constant 1 : index
    %c0_127 = arith.constant 0 : index
    %c0_128 = arith.constant 0 : index
    %244 = vector.load %arg9[%c1_126, %c0_127, %c0_128] : memref<2x32x32xf32, #tpu.memory_space<vmem>>, vector<1x32x32xf32>
    %245 = vector.shape_cast %244 : vector<1x32x32xf32> to vector<32x32xf32>
    %cst_129 = arith.constant dense<0.000000e+00> : vector<8x32xf32>
    %246 = tpu.matmul %236, %245, %cst_129 {dimension_numbers = #tpu.dot_dimension_numbers<[1], [0], [0], [1], [0, 0, 1, 1], [], []>} : vector<8x32xf32>, vector<32x32xf32>, vector<8x32xf32> -> vector<8x32xf32>
    %c1_130 = arith.constant 1 : index
    %c0_131 = arith.constant 0 : index
    %c0_132 = arith.constant 0 : index
    %247 = vector.load %arg10[%c1_130, %c0_131, %c0_132] : memref<2x1x32xf32, #tpu.memory_space<vmem>>, vector<1x1x32xf32>
    %248 = vector.shape_cast %247 : vector<1x1x32xf32> to vector<1x32xf32>
    %249 = vector.broadcast %248 : vector<1x32xf32> to vector<8x32xf32>
    %250 = arith.addf %246, %249 : vector<8x32xf32>
    %c1_133 = arith.constant 1 : index
    %c0_134 = arith.constant 0 : index
    %c0_135 = arith.constant 0 : index
    %251 = vector.load %arg11[%c1_133, %c0_134, %c0_135] : memref<2x32x32xf32, #tpu.memory_space<vmem>>, vector<1x32x32xf32>
    %252 = vector.shape_cast %251 : vector<1x32x32xf32> to vector<32x32xf32>
    %cst_136 = arith.constant dense<0.000000e+00> : vector<8x32xf32>
    %253 = tpu.matmul %236, %252, %cst_136 {dimension_numbers = #tpu.dot_dimension_numbers<[1], [0], [0], [1], [0, 0, 1, 1], [], []>} : vector<8x32xf32>, vector<32x32xf32>, vector<8x32xf32> -> vector<8x32xf32>
    %c1_137 = arith.constant 1 : index
    %c0_138 = arith.constant 0 : index
    %c0_139 = arith.constant 0 : index
    %254 = vector.load %arg12[%c1_137, %c0_138, %c0_139] : memref<2x1x32xf32, #tpu.memory_space<vmem>>, vector<1x1x32xf32>
    %255 = vector.shape_cast %254 : vector<1x1x32xf32> to vector<1x32xf32>
    %256 = vector.broadcast %255 : vector<1x32xf32> to vector<8x32xf32>
    %257 = arith.addf %253, %256 : vector<8x32xf32>
    %cst_140 = arith.constant 0.000000e+00 : f32
    %258 = vector.broadcast %cst_140 : f32 to vector<8x32xf32>
    %cst_141 = arith.constant 0.000000e+00 : f32
    %259 = vector.broadcast %cst_141 : f32 to vector<8x32xf32>
    %260 = arith.select %25, %243, %259 : vector<8x32xi1>, vector<8x32xf32>
    %cst_142 = arith.constant 0.000000e+00 : f32
    %261 = vector.broadcast %cst_142 : f32 to vector<8x32xf32>
    %262 = arith.select %25, %250, %261 : vector<8x32xi1>, vector<8x32xf32>
    %cst_143 = arith.constant 0.000000e+00 : f32
    %263 = vector.broadcast %cst_143 : f32 to vector<8x32xf32>
    %264 = arith.select %25, %257, %263 : vector<8x32xi1>, vector<8x32xf32>
    %cst_144 = arith.constant dense<0.000000e+00> : vector<8x8xf32>
    %265 = tpu.matmul %260, %262, %cst_144 {dimension_numbers = #tpu.dot_dimension_numbers<[1], [1], [0], [0], [0, 0, 1, 0], [], []>} : vector<8x32xf32>, vector<8x32xf32>, vector<8x8xf32> -> vector<8x8xf32>
    %cst_145 = arith.constant 0.353553385 : f32
    %266 = vector.broadcast %cst_145 : f32 to vector<8x8xf32>
    %267 = arith.mulf %265, %266 : vector<8x8xf32>
    %268 = vector.broadcast %45 : vector<1x8xf32> to vector<8x8xf32>
    %269 = arith.addf %267, %268 : vector<8x8xf32>
    %cst_146 = arith.constant dense<0xFF800000> : vector<8xf32>
    %270 = vector.multi_reduction <maximumf>, %269, %cst_146 [1] : vector<8x8xf32> to vector<8xf32>
    %271 = vector.shape_cast %270 : vector<8xf32> to vector<8x1xf32>
    %272 = vector.broadcast %271 : vector<8x1xf32> to vector<8x8xf32>
    %273 = arith.subf %269, %272 : vector<8x8xf32>
    %274 = math.exp %273 : vector<8x8xf32>
    %cst_147 = arith.constant dense<0.000000e+00> : vector<8xf32>
    %275 = vector.multi_reduction <add>, %274, %cst_147 [1] : vector<8x8xf32> to vector<8xf32>
    %276 = vector.shape_cast %275 : vector<8xf32> to vector<8x1xf32>
    %277 = tpu.reciprocal %276 {approx = true} : vector<8x1xf32> -> vector<8x1xf32>
    %278 = vector.broadcast %277 : vector<8x1xf32> to vector<8x8xf32>
    %279 = arith.mulf %274, %278 : vector<8x8xf32>
    %cst_148 = arith.constant dense<0.000000e+00> : vector<8x32xf32>
    %280 = tpu.matmul %279, %264, %cst_148 {dimension_numbers = #tpu.dot_dimension_numbers<[1], [0], [0], [1], [0, 0, 1, 1], [], []>} : vector<8x8xf32>, vector<8x32xf32>, vector<8x32xf32> -> vector<8x32xf32>
    %281 = arith.addf %258, %280 : vector<8x32xf32>
    %cst_149 = arith.constant 0.000000e+00 : f32
    %282 = vector.broadcast %cst_149 : f32 to vector<8x32xf32>
    %283 = arith.select %30, %243, %282 : vector<8x32xi1>, vector<8x32xf32>
    %cst_150 = arith.constant 0.000000e+00 : f32
    %284 = vector.broadcast %cst_150 : f32 to vector<8x32xf32>
    %285 = arith.select %30, %250, %284 : vector<8x32xi1>, vector<8x32xf32>
    %cst_151 = arith.constant 0.000000e+00 : f32
    %286 = vector.broadcast %cst_151 : f32 to vector<8x32xf32>
    %287 = arith.select %30, %257, %286 : vector<8x32xi1>, vector<8x32xf32>
    %cst_152 = arith.constant dense<0.000000e+00> : vector<8x8xf32>
    %288 = tpu.matmul %283, %285, %cst_152 {dimension_numbers = #tpu.dot_dimension_numbers<[1], [1], [0], [0], [0, 0, 1, 0], [], []>} : vector<8x32xf32>, vector<8x32xf32>, vector<8x8xf32> -> vector<8x8xf32>
    %cst_153 = arith.constant 0.353553385 : f32
    %289 = vector.broadcast %cst_153 : f32 to vector<8x8xf32>
    %290 = arith.mulf %288, %289 : vector<8x8xf32>
    %291 = vector.broadcast %45 : vector<1x8xf32> to vector<8x8xf32>
    %292 = arith.addf %290, %291 : vector<8x8xf32>
    %cst_154 = arith.constant dense<0xFF800000> : vector<8xf32>
    %293 = vector.multi_reduction <maximumf>, %292, %cst_154 [1] : vector<8x8xf32> to vector<8xf32>
    %294 = vector.shape_cast %293 : vector<8xf32> to vector<8x1xf32>
    %295 = vector.broadcast %294 : vector<8x1xf32> to vector<8x8xf32>
    %296 = arith.subf %292, %295 : vector<8x8xf32>
    %297 = math.exp %296 : vector<8x8xf32>
    %cst_155 = arith.constant dense<0.000000e+00> : vector<8xf32>
    %298 = vector.multi_reduction <add>, %297, %cst_155 [1] : vector<8x8xf32> to vector<8xf32>
    %299 = vector.shape_cast %298 : vector<8xf32> to vector<8x1xf32>
    %300 = tpu.reciprocal %299 {approx = true} : vector<8x1xf32> -> vector<8x1xf32>
    %301 = vector.broadcast %300 : vector<8x1xf32> to vector<8x8xf32>
    %302 = arith.mulf %297, %301 : vector<8x8xf32>
    %cst_156 = arith.constant dense<0.000000e+00> : vector<8x32xf32>
    %303 = tpu.matmul %302, %287, %cst_156 {dimension_numbers = #tpu.dot_dimension_numbers<[1], [0], [0], [1], [0, 0, 1, 1], [], []>} : vector<8x8xf32>, vector<8x32xf32>, vector<8x32xf32> -> vector<8x32xf32>
    %304 = arith.addf %281, %303 : vector<8x32xf32>
    %cst_157 = arith.constant 0.000000e+00 : f32
    %305 = vector.broadcast %cst_157 : f32 to vector<8x32xf32>
    %306 = arith.select %35, %243, %305 : vector<8x32xi1>, vector<8x32xf32>
    %cst_158 = arith.constant 0.000000e+00 : f32
    %307 = vector.broadcast %cst_158 : f32 to vector<8x32xf32>
    %308 = arith.select %35, %250, %307 : vector<8x32xi1>, vector<8x32xf32>
    %cst_159 = arith.constant 0.000000e+00 : f32
    %309 = vector.broadcast %cst_159 : f32 to vector<8x32xf32>
    %310 = arith.select %35, %257, %309 : vector<8x32xi1>, vector<8x32xf32>
    %cst_160 = arith.constant dense<0.000000e+00> : vector<8x8xf32>
    %311 = tpu.matmul %306, %308, %cst_160 {dimension_numbers = #tpu.dot_dimension_numbers<[1], [1], [0], [0], [0, 0, 1, 0], [], []>} : vector<8x32xf32>, vector<8x32xf32>, vector<8x8xf32> -> vector<8x8xf32>
    %cst_161 = arith.constant 0.353553385 : f32
    %312 = vector.broadcast %cst_161 : f32 to vector<8x8xf32>
    %313 = arith.mulf %311, %312 : vector<8x8xf32>
    %314 = vector.broadcast %45 : vector<1x8xf32> to vector<8x8xf32>
    %315 = arith.addf %313, %314 : vector<8x8xf32>
    %cst_162 = arith.constant dense<0xFF800000> : vector<8xf32>
    %316 = vector.multi_reduction <maximumf>, %315, %cst_162 [1] : vector<8x8xf32> to vector<8xf32>
    %317 = vector.shape_cast %316 : vector<8xf32> to vector<8x1xf32>
    %318 = vector.broadcast %317 : vector<8x1xf32> to vector<8x8xf32>
    %319 = arith.subf %315, %318 : vector<8x8xf32>
    %320 = math.exp %319 : vector<8x8xf32>
    %cst_163 = arith.constant dense<0.000000e+00> : vector<8xf32>
    %321 = vector.multi_reduction <add>, %320, %cst_163 [1] : vector<8x8xf32> to vector<8xf32>
    %322 = vector.shape_cast %321 : vector<8xf32> to vector<8x1xf32>
    %323 = tpu.reciprocal %322 {approx = true} : vector<8x1xf32> -> vector<8x1xf32>
    %324 = vector.broadcast %323 : vector<8x1xf32> to vector<8x8xf32>
    %325 = arith.mulf %320, %324 : vector<8x8xf32>
    %cst_164 = arith.constant dense<0.000000e+00> : vector<8x32xf32>
    %326 = tpu.matmul %325, %310, %cst_164 {dimension_numbers = #tpu.dot_dimension_numbers<[1], [0], [0], [1], [0, 0, 1, 1], [], []>} : vector<8x8xf32>, vector<8x32xf32>, vector<8x32xf32> -> vector<8x32xf32>
    %327 = arith.addf %304, %326 : vector<8x32xf32>
    %cst_165 = arith.constant 0.000000e+00 : f32
    %328 = vector.broadcast %cst_165 : f32 to vector<8x32xf32>
    %329 = arith.select %40, %243, %328 : vector<8x32xi1>, vector<8x32xf32>
    %cst_166 = arith.constant 0.000000e+00 : f32
    %330 = vector.broadcast %cst_166 : f32 to vector<8x32xf32>
    %331 = arith.select %40, %250, %330 : vector<8x32xi1>, vector<8x32xf32>
    %cst_167 = arith.constant 0.000000e+00 : f32
    %332 = vector.broadcast %cst_167 : f32 to vector<8x32xf32>
    %333 = arith.select %40, %257, %332 : vector<8x32xi1>, vector<8x32xf32>
    %cst_168 = arith.constant dense<0.000000e+00> : vector<8x8xf32>
    %334 = tpu.matmul %329, %331, %cst_168 {dimension_numbers = #tpu.dot_dimension_numbers<[1], [1], [0], [0], [0, 0, 1, 0], [], []>} : vector<8x32xf32>, vector<8x32xf32>, vector<8x8xf32> -> vector<8x8xf32>
    %cst_169 = arith.constant 0.353553385 : f32
    %335 = vector.broadcast %cst_169 : f32 to vector<8x8xf32>
    %336 = arith.mulf %334, %335 : vector<8x8xf32>
    %337 = vector.broadcast %45 : vector<1x8xf32> to vector<8x8xf32>
    %338 = arith.addf %336, %337 : vector<8x8xf32>
    %cst_170 = arith.constant dense<0xFF800000> : vector<8xf32>
    %339 = vector.multi_reduction <maximumf>, %338, %cst_170 [1] : vector<8x8xf32> to vector<8xf32>
    %340 = vector.shape_cast %339 : vector<8xf32> to vector<8x1xf32>
    %341 = vector.broadcast %340 : vector<8x1xf32> to vector<8x8xf32>
    %342 = arith.subf %338, %341 : vector<8x8xf32>
    %343 = math.exp %342 : vector<8x8xf32>
    %cst_171 = arith.constant dense<0.000000e+00> : vector<8xf32>
    %344 = vector.multi_reduction <add>, %343, %cst_171 [1] : vector<8x8xf32> to vector<8xf32>
    %345 = vector.shape_cast %344 : vector<8xf32> to vector<8x1xf32>
    %346 = tpu.reciprocal %345 {approx = true} : vector<8x1xf32> -> vector<8x1xf32>
    %347 = vector.broadcast %346 : vector<8x1xf32> to vector<8x8xf32>
    %348 = arith.mulf %343, %347 : vector<8x8xf32>
    %cst_172 = arith.constant dense<0.000000e+00> : vector<8x32xf32>
    %349 = tpu.matmul %348, %333, %cst_172 {dimension_numbers = #tpu.dot_dimension_numbers<[1], [0], [0], [1], [0, 0, 1, 1], [], []>} : vector<8x8xf32>, vector<8x32xf32>, vector<8x32xf32> -> vector<8x32xf32>
    %350 = arith.addf %327, %349 : vector<8x32xf32>
    %c1_173 = arith.constant 1 : index
    %c0_174 = arith.constant 0 : index
    %c0_175 = arith.constant 0 : index
    %351 = vector.load %arg13[%c1_173, %c0_174, %c0_175] : memref<2x32x32xf32, #tpu.memory_space<vmem>>, vector<1x32x32xf32>
    %352 = vector.shape_cast %351 : vector<1x32x32xf32> to vector<32x32xf32>
    %cst_176 = arith.constant dense<0.000000e+00> : vector<8x32xf32>
    %353 = tpu.matmul %350, %352, %cst_176 {dimension_numbers = #tpu.dot_dimension_numbers<[1], [0], [0], [1], [0, 0, 1, 1], [], []>} : vector<8x32xf32>, vector<32x32xf32>, vector<8x32xf32> -> vector<8x32xf32>
    %c1_177 = arith.constant 1 : index
    %c0_178 = arith.constant 0 : index
    %c0_179 = arith.constant 0 : index
    %354 = vector.load %arg14[%c1_177, %c0_178, %c0_179] : memref<2x1x32xf32, #tpu.memory_space<vmem>>, vector<1x1x32xf32>
    %355 = vector.shape_cast %354 : vector<1x1x32xf32> to vector<1x32xf32>
    %356 = vector.broadcast %355 : vector<1x32xf32> to vector<8x32xf32>
    %357 = arith.addf %353, %356 : vector<8x32xf32>
    %358 = arith.addf %236, %357 : vector<8x32xf32>
    %c1_180 = arith.constant 1 : index
    %c0_181 = arith.constant 0 : index
    %c0_182 = arith.constant 0 : index
    %359 = vector.load %arg19[%c1_180, %c0_181, %c0_182] : memref<2x1x32xf32, #tpu.memory_space<vmem>>, vector<1x1x32xf32>
    %360 = vector.shape_cast %359 : vector<1x1x32xf32> to vector<1x32xf32>
    %c1_183 = arith.constant 1 : index
    %c0_184 = arith.constant 0 : index
    %c0_185 = arith.constant 0 : index
    %361 = vector.load %arg20[%c1_183, %c0_184, %c0_185] : memref<2x1x32xf32, #tpu.memory_space<vmem>>, vector<1x1x32xf32>
    %362 = vector.shape_cast %361 : vector<1x1x32xf32> to vector<1x32xf32>
    %cst_186 = arith.constant dense<0.000000e+00> : vector<8xf32>
    %363 = vector.multi_reduction <add>, %358, %cst_186 [1] : vector<8x32xf32> to vector<8xf32>
    %364 = vector.shape_cast %363 : vector<8xf32> to vector<8x1xf32>
    %cst_187 = arith.constant 3.200000e+01 : f32
    %365 = vector.broadcast %cst_187 : f32 to vector<8x1xf32>
    %366 = arith.divf %364, %365 : vector<8x1xf32>
    %367 = vector.broadcast %366 : vector<8x1xf32> to vector<8x32xf32>
    %368 = arith.subf %358, %367 : vector<8x32xf32>
    %369 = arith.mulf %368, %368 : vector<8x32xf32>
    %cst_188 = arith.constant dense<0.000000e+00> : vector<8xf32>
    %370 = vector.multi_reduction <add>, %369, %cst_188 [1] : vector<8x32xf32> to vector<8xf32>
    %371 = vector.shape_cast %370 : vector<8xf32> to vector<8x1xf32>
    %cst_189 = arith.constant 3.200000e+01 : f32
    %372 = vector.broadcast %cst_189 : f32 to vector<8x1xf32>
    %373 = arith.divf %371, %372 : vector<8x1xf32>
    %374 = vector.broadcast %366 : vector<8x1xf32> to vector<8x32xf32>
    %375 = arith.subf %358, %374 : vector<8x32xf32>
    %cst_190 = arith.constant 9.99999974E-6 : f32
    %376 = vector.broadcast %cst_190 : f32 to vector<8x1xf32>
    %377 = arith.addf %373, %376 : vector<8x1xf32>
    %378 = math.rsqrt %377 : vector<8x1xf32>
    %379 = vector.broadcast %378 : vector<8x1xf32> to vector<8x32xf32>
    %380 = arith.mulf %375, %379 : vector<8x32xf32>
    %381 = vector.broadcast %360 : vector<1x32xf32> to vector<8x32xf32>
    %382 = arith.mulf %380, %381 : vector<8x32xf32>
    %383 = vector.broadcast %362 : vector<1x32xf32> to vector<8x32xf32>
    %384 = arith.addf %382, %383 : vector<8x32xf32>
    %c1_191 = arith.constant 1 : index
    %c0_192 = arith.constant 0 : index
    %c0_193 = arith.constant 0 : index
    %385 = vector.load %arg15[%c1_191, %c0_192, %c0_193] : memref<2x32x64xf32, #tpu.memory_space<vmem>>, vector<1x32x64xf32>
    %386 = vector.shape_cast %385 : vector<1x32x64xf32> to vector<32x64xf32>
    %cst_194 = arith.constant dense<0.000000e+00> : vector<8x64xf32>
    %387 = tpu.matmul %384, %386, %cst_194 {dimension_numbers = #tpu.dot_dimension_numbers<[1], [0], [0], [1], [0, 0, 1, 1], [], []>} : vector<8x32xf32>, vector<32x64xf32>, vector<8x64xf32> -> vector<8x64xf32>
    %c1_195 = arith.constant 1 : index
    %c0_196 = arith.constant 0 : index
    %c0_197 = arith.constant 0 : index
    %388 = vector.load %arg16[%c1_195, %c0_196, %c0_197] : memref<2x1x64xf32, #tpu.memory_space<vmem>>, vector<1x1x64xf32>
    %389 = vector.shape_cast %388 : vector<1x1x64xf32> to vector<1x64xf32>
    %390 = vector.broadcast %389 : vector<1x64xf32> to vector<8x64xf32>
    %391 = arith.addf %387, %390 : vector<8x64xf32>
    %cst_198 = arith.constant 0.000000e+00 : f32
    %392 = vector.broadcast %cst_198 : f32 to vector<8x64xf32>
    %393 = arith.maximumf %391, %392 : vector<8x64xf32>
    %c1_199 = arith.constant 1 : index
    %c0_200 = arith.constant 0 : index
    %c0_201 = arith.constant 0 : index
    %394 = vector.load %arg17[%c1_199, %c0_200, %c0_201] : memref<2x64x32xf32, #tpu.memory_space<vmem>>, vector<1x64x32xf32>
    %395 = vector.shape_cast %394 : vector<1x64x32xf32> to vector<64x32xf32>
    %cst_202 = arith.constant dense<0.000000e+00> : vector<8x32xf32>
    %396 = tpu.matmul %393, %395, %cst_202 {dimension_numbers = #tpu.dot_dimension_numbers<[1], [0], [0], [1], [0, 0, 1, 1], [], []>} : vector<8x64xf32>, vector<64x32xf32>, vector<8x32xf32> -> vector<8x32xf32>
    %c1_203 = arith.constant 1 : index
    %c0_204 = arith.constant 0 : index
    %c0_205 = arith.constant 0 : index
    %397 = vector.load %arg18[%c1_203, %c0_204, %c0_205] : memref<2x1x32xf32, #tpu.memory_space<vmem>>, vector<1x1x32xf32>
    %398 = vector.shape_cast %397 : vector<1x1x32xf32> to vector<1x32xf32>
    %399 = vector.broadcast %398 : vector<1x32xf32> to vector<8x32xf32>
    %400 = arith.addf %396, %399 : vector<8x32xf32>
    %401 = arith.addf %384, %400 : vector<8x32xf32>
    %c1_206 = arith.constant 1 : index
    %c0_207 = arith.constant 0 : index
    %c0_208 = arith.constant 0 : index
    %402 = vector.load %arg21[%c1_206, %c0_207, %c0_208] : memref<2x1x32xf32, #tpu.memory_space<vmem>>, vector<1x1x32xf32>
    %403 = vector.shape_cast %402 : vector<1x1x32xf32> to vector<1x32xf32>
    %c1_209 = arith.constant 1 : index
    %c0_210 = arith.constant 0 : index
    %c0_211 = arith.constant 0 : index
    %404 = vector.load %arg22[%c1_209, %c0_210, %c0_211] : memref<2x1x32xf32, #tpu.memory_space<vmem>>, vector<1x1x32xf32>
    %405 = vector.shape_cast %404 : vector<1x1x32xf32> to vector<1x32xf32>
    %cst_212 = arith.constant dense<0.000000e+00> : vector<8xf32>
    %406 = vector.multi_reduction <add>, %401, %cst_212 [1] : vector<8x32xf32> to vector<8xf32>
    %407 = vector.shape_cast %406 : vector<8xf32> to vector<8x1xf32>
    %cst_213 = arith.constant 3.200000e+01 : f32
    %408 = vector.broadcast %cst_213 : f32 to vector<8x1xf32>
    %409 = arith.divf %407, %408 : vector<8x1xf32>
    %410 = vector.broadcast %409 : vector<8x1xf32> to vector<8x32xf32>
    %411 = arith.subf %401, %410 : vector<8x32xf32>
    %412 = arith.mulf %411, %411 : vector<8x32xf32>
    %cst_214 = arith.constant dense<0.000000e+00> : vector<8xf32>
    %413 = vector.multi_reduction <add>, %412, %cst_214 [1] : vector<8x32xf32> to vector<8xf32>
    %414 = vector.shape_cast %413 : vector<8xf32> to vector<8x1xf32>
    %cst_215 = arith.constant 3.200000e+01 : f32
    %415 = vector.broadcast %cst_215 : f32 to vector<8x1xf32>
    %416 = arith.divf %414, %415 : vector<8x1xf32>
    %417 = vector.broadcast %409 : vector<8x1xf32> to vector<8x32xf32>
    %418 = arith.subf %401, %417 : vector<8x32xf32>
    %cst_216 = arith.constant 9.99999974E-6 : f32
    %419 = vector.broadcast %cst_216 : f32 to vector<8x1xf32>
    %420 = arith.addf %416, %419 : vector<8x1xf32>
    %421 = math.rsqrt %420 : vector<8x1xf32>
    %422 = vector.broadcast %421 : vector<8x1xf32> to vector<8x32xf32>
    %423 = arith.mulf %418, %422 : vector<8x32xf32>
    %424 = vector.broadcast %403 : vector<1x32xf32> to vector<8x32xf32>
    %425 = arith.mulf %423, %424 : vector<8x32xf32>
    %426 = vector.broadcast %405 : vector<1x32xf32> to vector<8x32xf32>
    %427 = arith.addf %425, %426 : vector<8x32xf32>
    %cst_217 = arith.constant dense<0.000000e+00> : vector<1xf32>
    %428 = vector.multi_reduction <add>, %7, %cst_217 [0] : vector<8x1xf32> to vector<1xf32>
    %429 = vector.shape_cast %428 : vector<1xf32> to vector<1x1xf32>
    %cst_218 = arith.constant 1.000000e+00 : f32
    %430 = vector.broadcast %cst_218 : f32 to vector<1x1xf32>
    %431 = arith.maximumf %429, %430 : vector<1x1xf32>
    %432 = vector.broadcast %7 : vector<8x1xf32> to vector<8x32xf32>
    %433 = arith.mulf %427, %432 : vector<8x32xf32>
    %cst_219 = arith.constant dense<0.000000e+00> : vector<32xf32>
    %434 = vector.multi_reduction <add>, %433, %cst_219 [0] : vector<8x32xf32> to vector<32xf32>
    %435 = vector.shape_cast %434 : vector<32xf32> to vector<1x32xf32>
    %436 = vector.broadcast %431 : vector<1x1xf32> to vector<1x32xf32>
    %437 = arith.divf %435, %436 : vector<1x32xf32>
    %c0_220 = arith.constant 0 : index
    %c0_221 = arith.constant 0 : index
    %438 = vector.load %arg23[%c0_220, %c0_221] : memref<64x16xf32, #tpu.memory_space<vmem>>, vector<64x16xf32>
    %c0_222 = arith.constant 0 : index
    %c0_223 = arith.constant 0 : index
    %439 = vector.load %arg25[%c0_222, %c0_223] : memref<64x16xf32, #tpu.memory_space<vmem>>, vector<64x16xf32>
    %440 = vector.extract_strided_slice %438 {offsets = [0, 0], sizes = [32, 16], strides = [1, 1]} : vector<64x16xf32> to vector<32x16xf32>
    %cst_224 = arith.constant dense<0.000000e+00> : vector<1x16xf32>
    %441 = tpu.matmul %19, %440, %cst_224 {dimension_numbers = #tpu.dot_dimension_numbers<[1], [0], [0], [1], [0, 0, 1, 1], [], []>} : vector<1x32xf32>, vector<32x16xf32>, vector<1x16xf32> -> vector<1x16xf32>
    %442 = vector.extract_strided_slice %438 {offsets = [32, 0], sizes = [32, 16], strides = [1, 1]} : vector<64x16xf32> to vector<32x16xf32>
    %cst_225 = arith.constant dense<0.000000e+00> : vector<1x16xf32>
    %443 = tpu.matmul %437, %442, %cst_225 {dimension_numbers = #tpu.dot_dimension_numbers<[1], [0], [0], [1], [0, 0, 1, 1], [], []>} : vector<1x32xf32>, vector<32x16xf32>, vector<1x16xf32> -> vector<1x16xf32>
    %444 = arith.addf %441, %443 : vector<1x16xf32>
    %c0_226 = arith.constant 0 : index
    %c0_227 = arith.constant 0 : index
    %445 = vector.load %arg24[%c0_226, %c0_227] : memref<1x16xf32, #tpu.memory_space<vmem>>, vector<1x16xf32>
    %446 = arith.addf %444, %445 : vector<1x16xf32>
    %447 = vector.extract_strided_slice %439 {offsets = [0, 0], sizes = [32, 16], strides = [1, 1]} : vector<64x16xf32> to vector<32x16xf32>
    %cst_228 = arith.constant dense<0.000000e+00> : vector<1x16xf32>
    %448 = tpu.matmul %19, %447, %cst_228 {dimension_numbers = #tpu.dot_dimension_numbers<[1], [0], [0], [1], [0, 0, 1, 1], [], []>} : vector<1x32xf32>, vector<32x16xf32>, vector<1x16xf32> -> vector<1x16xf32>
    %449 = vector.extract_strided_slice %439 {offsets = [32, 0], sizes = [32, 16], strides = [1, 1]} : vector<64x16xf32> to vector<32x16xf32>
    %cst_229 = arith.constant dense<0.000000e+00> : vector<1x16xf32>
    %450 = tpu.matmul %437, %449, %cst_229 {dimension_numbers = #tpu.dot_dimension_numbers<[1], [0], [0], [1], [0, 0, 1, 1], [], []>} : vector<1x32xf32>, vector<32x16xf32>, vector<1x16xf32> -> vector<1x16xf32>
    %451 = arith.addf %448, %450 : vector<1x16xf32>
    %c0_230 = arith.constant 0 : index
    %c0_231 = arith.constant 0 : index
    %452 = vector.load %arg26[%c0_230, %c0_231] : memref<1x16xf32, #tpu.memory_space<vmem>>, vector<1x16xf32>
    %453 = arith.addf %451, %452 : vector<1x16xf32>
    %c0_232 = arith.constant 0 : index
    %c0_233 = arith.constant 0 : index
    %c0_234 = arith.constant 0 : index
    %454 = vector.load %arg6[%c0_232, %c0_233, %c0_234] : memref<1x1x16xf32, #tpu.memory_space<vmem>>, vector<1x1x16xf32>
    %455 = vector.shape_cast %454 : vector<1x1x16xf32> to vector<1x16xf32>
    %cst_235 = arith.constant 5.000000e-01 : f32
    %456 = vector.broadcast %cst_235 : f32 to vector<1x16xf32>
    %457 = arith.mulf %456, %453 : vector<1x16xf32>
    %458 = math.exp %457 : vector<1x16xf32>
    %459 = arith.mulf %455, %458 : vector<1x16xf32>
    %460 = arith.addf %446, %459 : vector<1x16xf32>
    %c0_236 = arith.constant 0 : index
    %c0_237 = arith.constant 0 : index
    %461 = vector.load %arg27[%c0_236, %c0_237] : memref<16x32xf32, #tpu.memory_space<vmem>>, vector<16x32xf32>
    %cst_238 = arith.constant dense<0.000000e+00> : vector<1x32xf32>
    %462 = tpu.matmul %460, %461, %cst_238 {dimension_numbers = #tpu.dot_dimension_numbers<[1], [0], [0], [1], [0, 0, 1, 1], [], []>} : vector<1x16xf32>, vector<16x32xf32>, vector<1x32xf32> -> vector<1x32xf32>
    %c0_239 = arith.constant 0 : index
    %c0_240 = arith.constant 0 : index
    %463 = vector.load %arg28[%c0_239, %c0_240] : memref<1x32xf32, #tpu.memory_space<vmem>>, vector<1x32xf32>
    %464 = arith.addf %462, %463 : vector<1x32xf32>
    %c0_241 = arith.constant 0 : index
    %c0_242 = arith.constant 0 : index
    %c0_243 = arith.constant 0 : index
    %465 = vector.load %arg29[%c0_241, %c0_242, %c0_243] : memref<1x1x16xf32, #tpu.memory_space<vmem>>, vector<1x1x16xf32>
    %466 = vector.shape_cast %465 : vector<1x1x16xf32> to vector<1x16xf32>
    %467 = vector.shape_cast %446 : vector<1x16xf32> to vector<1x1x16xf32>
    tpu.vector_store %arg29[%c0_241, %c0_242, %c0_243], %467 {strides = array<i32>} : memref<1x1x16xf32, #tpu.memory_space<vmem>>, vector<1x1x16xf32>,
    %c0_244 = arith.constant 0 : index
    %c0_245 = arith.constant 0 : index
    %c0_246 = arith.constant 0 : index
    %468 = vector.load %arg30[%c0_244, %c0_245, %c0_246] : memref<1x1x16xf32, #tpu.memory_space<vmem>>, vector<1x1x16xf32>
    %469 = vector.shape_cast %468 : vector<1x1x16xf32> to vector<1x16xf32>
    %470 = vector.shape_cast %453 : vector<1x16xf32> to vector<1x1x16xf32>
    tpu.vector_store %arg30[%c0_244, %c0_245, %c0_246], %470 {strides = array<i32>} : memref<1x1x16xf32, #tpu.memory_space<vmem>>, vector<1x1x16xf32>,
    %c0_247 = arith.constant 0 : index
    %c0_248 = arith.constant 0 : index
    %c0_249 = arith.constant 0 : index
    %471 = vector.load %arg31[%c0_247, %c0_248, %c0_249] : memref<1x1x16xf32, #tpu.memory_space<vmem>>, vector<1x1x16xf32>
    %472 = vector.shape_cast %471 : vector<1x1x16xf32> to vector<1x16xf32>
    %473 = vector.shape_cast %460 : vector<1x16xf32> to vector<1x1x16xf32>
    tpu.vector_store %arg31[%c0_247, %c0_248, %c0_249], %473 {strides = array<i32>} : memref<1x1x16xf32, #tpu.memory_space<vmem>>, vector<1x1x16xf32>,
    %c0_250 = arith.constant 0 : index
    %c0_251 = arith.constant 0 : index
    %c0_252 = arith.constant 0 : index
    %474 = vector.load %arg32[%c0_250, %c0_251, %c0_252] : memref<1x1x32xf32, #tpu.memory_space<vmem>>, vector<1x1x32xf32>
    %475 = vector.shape_cast %474 : vector<1x1x32xf32> to vector<1x32xf32>
    %476 = vector.shape_cast %464 : vector<1x32xf32> to vector<1x1x32xf32>
    tpu.vector_store %arg32[%c0_250, %c0_251, %c0_252], %476 {strides = array<i32>} : memref<1x1x32xf32, #tpu.memory_space<vmem>>, vector<1x1x32xf32>,
    return
  }
  func.func @transform_0(%arg0: i32) -> (i32, i32, i32) {
    %c0_i32 = arith.constant 0 : i32
    %c0_i32_0 = arith.constant 0 : i32
    %c0_i32_1 = arith.constant 0 : i32
    return %arg0, %c0_i32, %c0_i32_0 : i32, i32, i32
  }
  func.func @transform_1(%arg0: i32) -> (i32, i32, i32) {
    %c0_i32 = arith.constant 0 : i32
    %c0_i32_0 = arith.constant 0 : i32
    %c0_i32_1 = arith.constant 0 : i32
    return %arg0, %c0_i32, %c0_i32_0 : i32, i32, i32
  }
  func.func @transform_2(%arg0: i32) -> (i32, i32, i32) {
    %c0_i32 = arith.constant 0 : i32
    %c0_i32_0 = arith.constant 0 : i32
    %c0_i32_1 = arith.constant 0 : i32
    return %arg0, %c0_i32, %c0_i32_0 : i32, i32, i32
  }
  func.func @transform_3(%arg0: i32) -> (i32, i32, i32) {
    %c0_i32 = arith.constant 0 : i32
    %c0_i32_0 = arith.constant 0 : i32
    %c0_i32_1 = arith.constant 0 : i32
    return %arg0, %c0_i32, %c0_i32_0 : i32, i32, i32
  }
  func.func @transform_4(%arg0: i32) -> (i32, i32, i32) {
    %c0_i32 = arith.constant 0 : i32
    %c0_i32_0 = arith.constant 0 : i32
    %c0_i32_1 = arith.constant 0 : i32
    return %arg0, %c0_i32, %c0_i32_0 : i32, i32, i32
  }
  func.func @transform_5(%arg0: i32) -> (i32, i32, i32) {
    %c0_i32 = arith.constant 0 : i32
    %c0_i32_0 = arith.constant 0 : i32
    %c0_i32_1 = arith.constant 0 : i32
    return %arg0, %c0_i32, %c0_i32_0 : i32, i32, i32
  }
  func.func @transform_6(%arg0: i32) -> (i32, i32, i32) {
    %c0_i32 = arith.constant 0 : i32
    %c0_i32_0 = arith.constant 0 : i32
    %c0_i32_1 = arith.constant 0 : i32
    %c0_i32_2 = arith.constant 0 : i32
    return %c0_i32, %c0_i32_0, %c0_i32_1 : i32, i32, i32
  }
  func.func @transform_7(%arg0: i32) -> (i32, i32, i32) {
    %c0_i32 = arith.constant 0 : i32
    %c0_i32_0 = arith.constant 0 : i32
    %c0_i32_1 = arith.constant 0 : i32
    %c0_i32_2 = arith.constant 0 : i32
    return %c0_i32, %c0_i32_0, %c0_i32_1 : i32, i32, i32
  }
  func.func @transform_8(%arg0: i32) -> (i32, i32, i32) {
    %c0_i32 = arith.constant 0 : i32
    %c0_i32_0 = arith.constant 0 : i32
    %c0_i32_1 = arith.constant 0 : i32
    %c0_i32_2 = arith.constant 0 : i32
    return %c0_i32, %c0_i32_0, %c0_i32_1 : i32, i32, i32
  }
  func.func @transform_9(%arg0: i32) -> (i32, i32, i32) {
    %c0_i32 = arith.constant 0 : i32
    %c0_i32_0 = arith.constant 0 : i32
    %c0_i32_1 = arith.constant 0 : i32
    %c0_i32_2 = arith.constant 0 : i32
    return %c0_i32, %c0_i32_0, %c0_i32_1 : i32, i32, i32
  }
  func.func @transform_10(%arg0: i32) -> (i32, i32, i32) {
    %c0_i32 = arith.constant 0 : i32
    %c0_i32_0 = arith.constant 0 : i32
    %c0_i32_1 = arith.constant 0 : i32
    %c0_i32_2 = arith.constant 0 : i32
    return %c0_i32, %c0_i32_0, %c0_i32_1 : i32, i32, i32
  }
  func.func @transform_11(%arg0: i32) -> (i32, i32, i32) {
    %c0_i32 = arith.constant 0 : i32
    %c0_i32_0 = arith.constant 0 : i32
    %c0_i32_1 = arith.constant 0 : i32
    %c0_i32_2 = arith.constant 0 : i32
    return %c0_i32, %c0_i32_0, %c0_i32_1 : i32, i32, i32
  }
  func.func @transform_12(%arg0: i32) -> (i32, i32, i32) {
    %c0_i32 = arith.constant 0 : i32
    %c0_i32_0 = arith.constant 0 : i32
    %c0_i32_1 = arith.constant 0 : i32
    %c0_i32_2 = arith.constant 0 : i32
    return %c0_i32, %c0_i32_0, %c0_i32_1 : i32, i32, i32
  }
  func.func @transform_13(%arg0: i32) -> (i32, i32, i32) {
    %c0_i32 = arith.constant 0 : i32
    %c0_i32_0 = arith.constant 0 : i32
    %c0_i32_1 = arith.constant 0 : i32
    %c0_i32_2 = arith.constant 0 : i32
    return %c0_i32, %c0_i32_0, %c0_i32_1 : i32, i32, i32
  }
  func.func @transform_14(%arg0: i32) -> (i32, i32, i32) {
    %c0_i32 = arith.constant 0 : i32
    %c0_i32_0 = arith.constant 0 : i32
    %c0_i32_1 = arith.constant 0 : i32
    %c0_i32_2 = arith.constant 0 : i32
    return %c0_i32, %c0_i32_0, %c0_i32_1 : i32, i32, i32
  }
  func.func @transform_15(%arg0: i32) -> (i32, i32, i32) {
    %c0_i32 = arith.constant 0 : i32
    %c0_i32_0 = arith.constant 0 : i32
    %c0_i32_1 = arith.constant 0 : i32
    %c0_i32_2 = arith.constant 0 : i32
    return %c0_i32, %c0_i32_0, %c0_i32_1 : i32, i32, i32
  }
  func.func @transform_16(%arg0: i32) -> (i32, i32, i32) {
    %c0_i32 = arith.constant 0 : i32
    %c0_i32_0 = arith.constant 0 : i32
    %c0_i32_1 = arith.constant 0 : i32
    %c0_i32_2 = arith.constant 0 : i32
    return %c0_i32, %c0_i32_0, %c0_i32_1 : i32, i32, i32
  }
  func.func @transform_17(%arg0: i32) -> (i32, i32, i32) {
    %c0_i32 = arith.constant 0 : i32
    %c0_i32_0 = arith.constant 0 : i32
    %c0_i32_1 = arith.constant 0 : i32
    %c0_i32_2 = arith.constant 0 : i32
    return %c0_i32, %c0_i32_0, %c0_i32_1 : i32, i32, i32
  }
  func.func @transform_18(%arg0: i32) -> (i32, i32, i32) {
    %c0_i32 = arith.constant 0 : i32
    %c0_i32_0 = arith.constant 0 : i32
    %c0_i32_1 = arith.constant 0 : i32
    %c0_i32_2 = arith.constant 0 : i32
    return %c0_i32, %c0_i32_0, %c0_i32_1 : i32, i32, i32
  }
  func.func @transform_19(%arg0: i32) -> (i32, i32, i32) {
    %c0_i32 = arith.constant 0 : i32
    %c0_i32_0 = arith.constant 0 : i32
    %c0_i32_1 = arith.constant 0 : i32
    %c0_i32_2 = arith.constant 0 : i32
    return %c0_i32, %c0_i32_0, %c0_i32_1 : i32, i32, i32
  }
  func.func @transform_20(%arg0: i32) -> (i32, i32, i32) {
    %c0_i32 = arith.constant 0 : i32
    %c0_i32_0 = arith.constant 0 : i32
    %c0_i32_1 = arith.constant 0 : i32
    %c0_i32_2 = arith.constant 0 : i32
    return %c0_i32, %c0_i32_0, %c0_i32_1 : i32, i32, i32
  }
  func.func @transform_21(%arg0: i32) -> (i32, i32, i32) {
    %c0_i32 = arith.constant 0 : i32
    %c0_i32_0 = arith.constant 0 : i32
    %c0_i32_1 = arith.constant 0 : i32
    %c0_i32_2 = arith.constant 0 : i32
    return %c0_i32, %c0_i32_0, %c0_i32_1 : i32, i32, i32
  }
  func.func @transform_22(%arg0: i32) -> (i32, i32) {
    %c0_i32 = arith.constant 0 : i32
    %c0_i32_0 = arith.constant 0 : i32
    %c0_i32_1 = arith.constant 0 : i32
    return %c0_i32, %c0_i32_0 : i32, i32
  }
  func.func @transform_23(%arg0: i32) -> (i32, i32) {
    %c0_i32 = arith.constant 0 : i32
    %c0_i32_0 = arith.constant 0 : i32
    %c0_i32_1 = arith.constant 0 : i32
    return %c0_i32, %c0_i32_0 : i32, i32
  }
  func.func @transform_24(%arg0: i32) -> (i32, i32) {
    %c0_i32 = arith.constant 0 : i32
    %c0_i32_0 = arith.constant 0 : i32
    %c0_i32_1 = arith.constant 0 : i32
    return %c0_i32, %c0_i32_0 : i32, i32
  }
  func.func @transform_25(%arg0: i32) -> (i32, i32) {
    %c0_i32 = arith.constant 0 : i32
    %c0_i32_0 = arith.constant 0 : i32
    %c0_i32_1 = arith.constant 0 : i32
    return %c0_i32, %c0_i32_0 : i32, i32
  }
  func.func @transform_26(%arg0: i32) -> (i32, i32) {
    %c0_i32 = arith.constant 0 : i32
    %c0_i32_0 = arith.constant 0 : i32
    %c0_i32_1 = arith.constant 0 : i32
    return %c0_i32, %c0_i32_0 : i32, i32
  }
  func.func @transform_27(%arg0: i32) -> (i32, i32) {
    %c0_i32 = arith.constant 0 : i32
    %c0_i32_0 = arith.constant 0 : i32
    %c0_i32_1 = arith.constant 0 : i32
    return %c0_i32, %c0_i32_0 : i32, i32
  }
  func.func @transform_28(%arg0: i32) -> (i32, i32, i32) {
    %c0_i32 = arith.constant 0 : i32
    %c0_i32_0 = arith.constant 0 : i32
    %c0_i32_1 = arith.constant 0 : i32
    return %arg0, %c0_i32, %c0_i32_0 : i32, i32, i32
  }
  func.func @transform_29(%arg0: i32) -> (i32, i32, i32) {
    %c0_i32 = arith.constant 0 : i32
    %c0_i32_0 = arith.constant 0 : i32
    %c0_i32_1 = arith.constant 0 : i32
    return %arg0, %c0_i32, %c0_i32_0 : i32, i32, i32
  }
  func.func @transform_30(%arg0: i32) -> (i32, i32, i32) {
    %c0_i32 = arith.constant 0 : i32
    %c0_i32_0 = arith.constant 0 : i32
    %c0_i32_1 = arith.constant 0 : i32
    return %arg0, %c0_i32, %c0_i32_0 : i32, i32, i32
  }
  func.func @transform_31(%arg0: i32) -> (i32, i32, i32) {
    %c0_i32 = arith.constant 0 : i32
    %c0_i32_0 = arith.constant 0 : i32
    %c0_i32_1 = arith.constant 0 : i32
    return %arg0, %c0_i32, %c0_i32_0 : i32, i32, i32
  }
}

</mosaic_0001>

<bundles_post_ra>
// kernel: tpu_custom_call.1
= control target key start
LH: loop header
LB: loop body
LE: loop exit
PB: predicated region body
PF: predicated region fallthrough
CT: control target
= control target key end

     0   :  { %s5776_s6 = smov 1   ;;  %s5777_s10 = smov 2   ;;  %s6803_s0 = inlined_call_operand.smem [shape: u32[32], index: -1, kind: input, shape index: {}] }
   0x1   :  { %s5834_s5 = sld [smem:[%s6803_s0]]   ;;  %s5778_s14 = smov 3  }
   0x2   :  { %s5839_s9 = sld [smem:[%s6803_s0 + %s5776_s6]]   ;;  %s5779_s18 = smov 4  }
   0x3   :  { %s5844_s13 = sld [smem:[%s6803_s0 + %s5777_s10]]   ;;  %s5780_s22 = smov 5  }
   0x4   :  { %s5849_s17 = sld [smem:[%s6803_s0 + %s5778_s14]]   ;;  %s5781_s26 = smov 6  }
   0x5   :  { %s5854_s21 = sld [smem:[%s6803_s0 + %s5779_s18]]   ;;  %s5782_s30 = smov 7  }
   0x6   :  { %s5859_s25 = sld [smem:[%s6803_s0 + %s5780_s22]]   ;;  %s5783_s4 = smov 8  }
   0x7   :  { %6858 = sst [smem:[#allocation31_spill]] %s5834_s5  ;;  %s5784_s10 = smov 9  }
   0x8   :  { %6859 = sst [smem:[#allocation32_spill]] %s5839_s9  ;;  %s5785_s15 = smov 10  }
   0x9   :  { %6860 = sst [smem:[#allocation33_spill]] %s5844_s13  ;;  %s5786_s20 = smov 11  }
   0xa   :  { %6861 = sst [smem:[#allocation34_spill]] %s5849_s17  ;;  %s5788_s1 = smov 13  }
   0xb   :  { %s5864_s29 = sld [smem:[%s6803_s0 + %s5781_s26]]   ;;  %s5787_s26 = smov 12  }
   0xc   :  { %s5869_s3 = sld [smem:[%s6803_s0 + %s5782_s30]]   ;;  %s5789_s7 = smov 14  }
   0xd   :  { %s5874_s8 = sld [smem:[%s6803_s0 + %s5783_s4]]   ;;  %s5791_s22 = smov 16  }
   0xe   :  { %s5879_s14 = sld [smem:[%s6803_s0 + %s5784_s10]]   ;;  %s5792_s28 = smov 17  }
   0xf   :  { %s5884_s19 = sld [smem:[%s6803_s0 + %s5785_s15]]   ;;  %s5790_s15 = smov 15  }
  0x10   :  { %s5889_s24 = sld [smem:[%s6803_s0 + %s5786_s20]]  }
  0x11   :  { %s5894_s30 = sld [smem:[%s6803_s0 + %s5787_s26]]  }
  0x12   :  { %6862 = sst [smem:[#allocation35_spill]] %s5869_s3 }
  0x13   :  { %6863 = sst [smem:[#allocation36_spill]] %s5874_s8 }
  0x14   :  { %6864 = sst [smem:[#allocation37_spill]] %s5879_s14 }
  0x15   :  { %s5899_s6 = sld [smem:[%s6803_s0 + %s5788_s1]]  }
  0x16   :  { %s5904_s12 = sld [smem:[%s6803_s0 + %s5789_s7]]   ;;  %s5793_s7 = smov 18  }
  0x17   :  { %s5909_s20 = sld [smem:[%s6803_s0 + %s5790_s15]]   ;;  %s5794_s15 = smov 19  }
  0x18   :  { %s5914_s27 = sld [smem:[%s6803_s0 + %s5791_s22]]   ;;  %s5795_s22 = smov 20  }
  0x19   :  { %s5919_s4 = sld [smem:[%s6803_s0 + %s5792_s28]]   ;;  %s5796_s28 = smov 21  }
  0x1a   :  { %s5924_s13 = sld [smem:[%s6803_s0 + %s5793_s7]]   ;;  %s5797_s7 = smov 22  }
  0x1b   :  { %6865 = sst [smem:[#allocation38_spill]] %s5899_s6 }
  0x1c   :  { %s5929_s17 = sld [smem:[%s6803_s0 + %s5794_s15]]   ;;  %s5798_s15 = smov 23  }
  0x1d   :  { %6866 = sst [smem:[#allocation39_spill]] %s5909_s20 }
  0x1e   :  { %s5934_s20 = sld [smem:[%s6803_s0 + %s5795_s22]]   ;;  %s5799_s22 = smov 24  }
  0x1f   :  { %6867 = sst [smem:[#allocation40_spill]] %s5919_s4 }
  0x20   :  { %6868 = sst [smem:[#allocation41_spill]] %s5924_s13 }
  0x21   :  { %s5939_s4 = sld [smem:[%s6803_s0 + %s5796_s28]]   ;;  %s5800_s28 = smov 25  }
  0x22   :  { %6869 = sst [smem:[#allocation42_spill]] %s5929_s17 }
  0x23   :  { %s5944_s13 = sld [smem:[%s6803_s0 + %s5797_s7]]   ;;  %s5801_s7 = smov 26  }
  0x24   :  { %6870 = sst [smem:[#allocation43_spill]] %s5934_s20 }
  0x25   :  { %s5949_s17 = sld [smem:[%s6803_s0 + %s5798_s15]]   ;;  %s5802_s15 = smov 27  }
  0x26   :  { %s5954_s20 = sld [smem:[%s6803_s0 + %s5799_s22]]   ;;  %s5803_s22 = smov 28  }
  0x27   :  { %6871 = sst [smem:[#allocation44_spill]] %s5939_s4 }
  0x28   :  { %s5959_s4 = sld [smem:[%s6803_s0 + %s5800_s28]]   ;;  %s5804_s28 = smov 29  }
  0x29   :  { %6872 = sst [smem:[#allocation45_spill]] %s5944_s13 }
  0x2a   :  { %s5964_s13 = sld [smem:[%s6803_s0 + %s5801_s7]]   ;;  %s5805_s7 = smov 30  }
  0x2b   :  { %6873 = sst [smem:[#allocation46_spill]] %s5949_s17 }
  0x2c   :  { %6874 = sst [smem:[#allocation47_spill]] %s5954_s20 }
  0x2d   :  { %s5969_s17 = sld [smem:[%s6803_s0 + %s5802_s15]]   ;;  %s5806_s15 = smov 31  }
  0x2e   :  { %6875 = sst [smem:[#allocation48_spill]] %s5959_s4 }
  0x2f   :  { %s5974_s20 = sld [smem:[%s6803_s0 + %s5803_s22]]  }
  0x30   :  { %6876 = sst [smem:[#allocation49_spill]] %s5964_s13 }
  0x31   :  { %s5979_s4 = sld [smem:[%s6803_s0 + %s5804_s28]]  }
  0x32   :  { %s5984_s13 = sld [smem:[%s6803_s0 + %s5805_s7]]  }
  0x33   :  { %6877 = sst [smem:[#allocation50_spill]] %s5969_s17 }
  0x34   :  { %s5989_s17 = sld [smem:[%s6803_s0 + %s5806_s15]]  }
  0x35   :  { %6878 = sst [smem:[#allocation51_spill]] %s5974_s20 }
  0x37   :  { %6879 = sst [smem:[#allocation52_spill]] %s5979_s4 }
  0x38   :  { %6880 = sst [smem:[#allocation53_spill]] %s5984_s13 }
  0x3a   :  { %6881 = sst [smem:[#allocation54_spill]] %s5989_s17 }
  0x3b   :  { %69 = vsyncpa [#allocation3], 0 }
  0x3c   :  { %71 = vsyncpa [#allocation3 + $0x1], 0 }
  0x3d   :  { %72 = vsyncpa [#allocation6], 0 }
  0x3e   :  { %74 = vsyncpa [#allocation6 + $0x1], 0 }
  0x3f   :  { %75 = vsyncpa [#allocation9], 0 }
  0x40   :  { %77 = vsyncpa [#allocation9 + $0x1], 0 }
  0x41   :  { %78 = vsyncpa [#allocation12], 0 }
  0x42   :  { %79 = vsyncpa [#allocation15], 0 }
  0x43   :  { %80 = vsyncpa [#allocation4], 0 }
  0x44   :  { %82 = vsyncpa [#allocation4 + $0x1], 0 }
  0x45   :  { %83 = vsyncpa [#allocation18], 0 }
  0x46   :  { %85 = vsyncpa [#allocation18 + $0x1], 0 }
  0x47   :  { %86 = vsyncpa [#allocation21], 0 }
  0x48   :  { %88 = vsyncpa [#allocation21 + $0x1], 0  ;;  %s5991_s22 = smov 0   ;;  %s5993_s23 = smov 0  }
  0x49   :  { %s5995_s0 = smov 0   ;;  %s5997_s26 = smov 0  }
  0x4a LB: > { %s6882_s8 = sld [smem:[#allocation36_spill]]  ;;  %s6883_s6 = sld [smem:[#allocation38_spill]]  ;;  %s5766_s23 = sphi %s5993_s23, %s6964_s23   ;;  %s5762_s22 = sphi %s5991_s22, %s6963_s22   ;;  %s5774_s26 = sphi %s5997_s26, %s6960_s26   ;;  %s5770_s0 = sphi %s5995_s0, %s6962_s0  }
  0x4b   : > { %s6884_s5 = sld [smem:[#allocation31_spill]]  ;;  %s6885_s9 = sld [smem:[#allocation32_spill]] }
  0x4c   : > { %s6886_s14 = sld [smem:[#allocation37_spill]]  ;;  %s6887_s3 = sld [smem:[#allocation35_spill]] }
  0x4d   : > { %6888 = sst [smem:[#allocation55_spill]] %s5762_s22  ;;  %s6012_s28 = sadd.s32 4294967295, %s5774_s26  }
  0x4e   : > { %6889 = sst [smem:[#allocation56_spill]] %s5770_s0  ;;  %s6813_s1 = sadd.s32 4294967294, %s5774_s26  }
  0x4f   : > { %p114_p0 = scmp.ne.s32.totalorder %s5766_s23, %s5762_s22  ;;  %p6815_p1 = scmp.eq.s32.totalorder %s6012_s28, 0 }
  0x50   : > { %p736_p3 = scmp.eq.s32.totalorder %s6813_s1, 1  ;;  %p4506_p5 = scmp.ge.s32.totalorder %s5774_s26, 1 }
  0x51   : > { %p6023_p4 = por %p6815_p1, %p114_p0  ;;  %p821_p7 = scmp.lt.s32.totalorder %s5774_s26, 3 }
  0x52   : > { %p6028_p6 = por %p736_p3, %p114_p0  ;;  %s5807_s11 = smov [#allocation10]  }
  0x53   : > { %s6890_s2 = scalar_select %p6023_p4, 1, 0 }
  0x54   : > { %s6891_s7 = scalar_select %p6028_p6, 1, 0 }
  0x55   : > { %p6033_p8 = pnand %p4506_p5, %p821_p7  ;;  %s836_s15 = sshll.u32 %s5807_s11, 4  ;;  %s6037_s15 = int_to_ptr.vmem [resolvable:$true] %s836_s15 }
  0x56   : > { %6892 = sst [smem:[#allocation57_spill]] %s6891_s7  ;;  %s5808_s18 = smov [#allocation11]  }
  0x57   : > { %s6893_s10 = scalar_select %p6033_p8, 1, 0 }
  0x58   : > { %p5193_p9 = pneg %p6033_p8  ;;  %s852_s1 = sshll.u32 %s5808_s18, 4  ;;  %s6048_s1 = int_to_ptr.vmem [resolvable:$true] %s852_s1 }
  0x59   : > { %s5364_s7 = scalar_lea.hbm %s6887_s3, 32 }
  0x5a   : > { %p6044_p11 = pnand %p5193_p9, %p6815_p1  ;;  %p5365_p12 = scmp.ne.s32.totalorder %s6887_s3, %s5364_s7 }
  0x5b   : > { %p5371_p5 = scmp.lt.u32.totalorder %s5364_s7, %s6887_s3 }
  0x5c   : > { %s6894_s16 = scalar_select %p6044_p11, 1, 0 }
  0x5d   : > { %p6054_p13 = pneg %p6044_p11 }
  0x5f   : > { %s6895_s11 = scalar_select %p6054_p13, 1, 0 }
  0x60   : > { %p5367_p0 = pnand %p6054_p13, %p5365_p12 }
  0x62   : > { %p5368_p3 = pneg %p5367_p0 }
  0x64   : > { %p5373_p7 = pnand %p5371_p5, %p5368_p3 }
  0x66   : > { %5376 = shalt.err (!%p5373_p7)
}
  0x67   : > { %s5377_s18 = scalar_lea.vmem %s6037_s15, 32  ;;  %p5385_p2 = scmp.lt.s32.totalorder %s6037_s15, %s6037_s15 }
  0x68   : > { %p5378_p9 = scmp.ne.s32.totalorder %s6037_s15, %s5377_s18  ;;  %p5386_p6 = scmp.lt.s32.totalorder %s5377_s18, %s5377_s18 }
  0x6a   : > { %p5380_p10 = pnand %p5378_p9, %p6054_p13  ;;  %p5387_p4 = por %p5386_p6, %p5385_p2 }
  0x6c   : > { %p5381_p1 = pneg %p5380_p10 }
  0x6e   : > { %p5388_p8 = pnand %p5387_p4, %p5381_p1 }
  0x70   : > { %5391 = shalt.err (!%p5388_p8)
}
  0x71   : > { %s6822_s22 = smov 16   ;;  %s6824_s7 = smov 1  }
  0x72   : > { %5196 = dma.hbm_to_vmem [thread:$0]  (!%p6044_p11), %s6887_s3, 32, %s6037_s15, [#allocation9], %s6822_s22, %s6822_s22, %s6824_s7  }
  0x73   : > { %s5392_s17 = scalar_lea.hbm %s6886_s14, 32 }
  0x74   : > { %p5393_p10 = scmp.ne.s32.totalorder %s6886_s14, %s5392_s17  ;;  %p5399_p4 = scmp.lt.u32.totalorder %s5392_s17, %s6886_s14 }
  0x76   : > { %p5395_p2 = pnand %p5393_p10, %p6054_p13 }
  0x78   : > { %p5396_p1 = pneg %p5395_p2 }
  0x7a   : > { %p5401_p6 = pnand %p5399_p4, %p5396_p1 }
  0x7c   : > { %5404 = shalt.err (!%p5401_p6)
}
  0x7d   : > { %s5405_s18 = scalar_lea.vmem %s6048_s1, 32  ;;  %p5413_p3 = scmp.lt.s32.totalorder %s6048_s1, %s6048_s1 }
  0x7e   : > { %p5406_p8 = scmp.ne.s32.totalorder %s6048_s1, %s5405_s18  ;;  %p5414_p5 = scmp.lt.s32.totalorder %s5405_s18, %s5405_s18 }
  0x80   : > { %p5408_p12 = pnand %p5406_p8, %p6054_p13  ;;  %p5415_p7 = por %p5414_p5, %p5413_p3 }
  0x82   : > { %p5409_p0 = pneg %p5408_p12 }
  0x84   : > { %p5416_p9 = pnand %p5415_p7, %p5409_p0 }
  0x86   : > { %5419 = shalt.err (!%p5416_p9)
}
  0x87   : > { %5199 = dma.hbm_to_vmem [thread:$0]  (!%p6044_p11), %s6886_s14, 32, %s6048_s1, [#allocation12], %s6822_s22, %s6822_s22, %s6824_s7  }
  0x88   : > { %s6093_s17 = sadd.s32 1, %s5774_s26   ;;  %s101_s15 = sadd.s32 1, %s5770_s0 }
  0x89   : > { %6896 = sst [smem:[#allocation58_spill]] %s6093_s17  ;;  %s98_s18 = ssub.s32 %s5774_s26, %s6093_s17 }
  0x8a   : > { %p108_p10 = scmp.ne.s32.totalorder %s5770_s0, %s5766_s23  ;;  %p99_p2 = scmp.eq.s32.totalorder %s98_s18, 0 }
  0x8b   : > { %p109_p1 = scmp.eq.s32.totalorder %s5774_s26, 0  ;;  %p6897_p4 = scmp.eq.s32.totalorder %s6012_s28, 1 }
  0x8c   : > { %p5236_p8 = scmp.lt.s32.totalorder %s5774_s26, 2  ;;  %s6112_s1 = sand.u32 1, %s5770_s0  }
  0x8d   : > { %p6103_p6 = por %p6897_p4, %p108_p10  ;;  %p110_p12 = por %p109_p1, %p108_p10 }
  0x8e   : > { %s6109_s13 = scalar_select %p99_p2, %s5770_s0, %s101_s15  }
  0x8f   : > { %s6898_s3 = scalar_select %p6103_p6, 1, 0 }
  0x90   : > { %6900 = sst [smem:[#allocation60_spill]] %s6109_s13  ;;  %s6840_s22 = sshll.u32 %s6112_s1, 3 }
  0x91   : > { %6899 = sst [smem:[#allocation59_spill]] %s6898_s3  ;;  %s6833_s7 = sshll.u32 %s5774_s26, 7 }
  0x92   : > { %p6116_p0 = pnand %p5236_p8, %p110_p12  ;;  %s6839_s14 = sand.u32 1, %s5774_s26  }
  0x93   : > { %s6124_s17 = scalar_lea.hbm %s6885_s9, %s6833_s7  ;;  %s962_s15 = scalar_lea.vmem [#allocation5], %s6840_s22 }
  0x94   : > { %s6901_s18 = scalar_select %p6116_p0, 1, 0 }
  0x95   : > { %s969_s13 = sshll.u32 %s962_s15, 4  ;;  %s6132_s0 = scalar_lea.sflag [#allocation6], %s6839_s14  ;;  %s6128_s13 = int_to_ptr.vmem [resolvable:$true] %s969_s13 }
  0x96   : > { %s5420_s20 = scalar_lea.hbm %s6124_s17, 128  ;;  %p6138_p5 = pneg %p6116_p0 }
  0x97   : > { %p5421_p3 = scmp.ne.s32.totalorder %s6124_s17, %s5420_s20  ;;  %s5425_s7 = scalar_lea.hbm %s6885_s9, 256 }
  0x98   : > { %s6902_s3 = scalar_select %p6138_p5, 1, 0 }
  0x99   : > { %p5423_p7 = pnand %p6138_p5, %p5421_p3  ;;  %p5426_p10 = scmp.lt.u32.totalorder %s6124_s17, %s6885_s9 }
  0x9a   : > { %p5427_p2 = scmp.lt.u32.totalorder %s5425_s7, %s5420_s20  ;;  %p5429_p4 = scmp.lt.u32.totalorder %s5420_s20, %s6124_s17 }
  0x9b   : > { %p5424_p9 = pneg %p5423_p7 }
  0x9c   : > { %p5428_p1 = por %p5427_p2, %p5426_p10 }
  0x9e   : > { %p5430_p8 = por %p5429_p4, %p5428_p1 }
  0xa0   : > { %p5431_p12 = pnand %p5430_p8, %p5424_p9 }
  0xa2   : > { %5434 = shalt.err (!%p5431_p12)
}
  0xa3   : > { %s5435_s15 = scalar_lea.vmem %s6128_s13, 128  ;;  %s5811_s14 = smov [#allocation5]  }
  0xa4   : > { %p5436_p6 = scmp.ne.s32.totalorder %s6128_s13, %s5435_s15  ;;  %s5440_s22 = sshll.u32 %s5811_s14, 4  ;;  %s5441_s22 = int_to_ptr.vmem [resolvable:$false] %s5440_s22 }
  0xa5   : > { %s5442_s4 = scalar_lea.vmem %s5441_s22, 256  ;;  %p5443_p3 = scmp.lt.s32.totalorder %s6128_s13, %s5441_s22 }
  0xa6   : > { %p5438_p11 = pnand %p5436_p6, %p6138_p5  ;;  %p5444_p7 = scmp.lt.s32.totalorder %s5442_s4, %s5435_s15 }
  0xa8   : > { %p5439_p13 = pneg %p5438_p11  ;;  %p5445_p10 = por %p5444_p7, %p5443_p3 }
  0xaa   : > { %p5446_p2 = pnand %p5445_p10, %p5439_p13 }
  0xac   : > { %5449 = shalt.err (!%p5446_p2)
}
  0xad   : > { %5212 = dma.hbm_to_vmem [thread:$0]  (!%p6116_p0), %s6124_s17, 128, %s6128_s13, %s6132_s0  }
  0xae   : > { %s5812_s20 = smov [#allocation13]   ;;  %s5813_s14 = smov [#allocation14]  }
  0xaf   : > { %s868_s7 = sshll.u32 %s5812_s20, 4  ;;  %s884_s9 = sshll.u32 %s5813_s14, 4  ;;  %s869_s7 = int_to_ptr.vmem [resolvable:$true] %s868_s7  ;;  %s885_s9 = int_to_ptr.vmem [resolvable:$true] %s884_s9 }
  0xb0   : > { %s5450_s22 = scalar_lea.hbm %s5889_s24, 32  ;;  %p6903_p6 = scmp.ne.s32.totalorder %s6895_s11, 0 }
  0xb1   : > { %p5451_p11 = scmp.ne.s32.totalorder %s5889_s24, %s5450_s22  ;;  %p5457_p1 = scmp.lt.u32.totalorder %s5450_s22, %s5889_s24 }
  0xb3   : > { %p5453_p13 = pnand %p5451_p11, %p6903_p6 }
  0xb5   : > { %p5454_p9 = pneg %p5453_p13 }
  0xb7   : > { %p5459_p4 = pnand %p5457_p1, %p5454_p9 }
  0xb9   : > { %5462 = shalt.err (!%p5459_p4)
}
  0xba   : > { %s5463_s4 = scalar_lea.vmem %s869_s7, 32  ;;  %p5471_p7 = scmp.lt.s32.totalorder %s869_s7, %s869_s7 }
  0xbb   : > { %p5464_p8 = scmp.ne.s32.totalorder %s869_s7, %s5463_s4  ;;  %p5472_p10 = scmp.lt.s32.totalorder %s5463_s4, %s5463_s4 }
  0xbd   : > { %p5466_p12 = pnand %p5464_p8, %p6903_p6  ;;  %p5473_p2 = por %p5472_p10, %p5471_p7 }
  0xbf   : > { %p5467_p3 = pneg %p5466_p12 }
  0xc1   : > { %p5474_p0 = pnand %p5473_p2, %p5467_p3 }
  0xc3   : > { %5477 = shalt.err (!%p5474_p0)
}
  0xc4   : > { %p6904_p5 = scmp.ne.s32.totalorder %s6894_s16, 0  ;;  %s6905_s13 = smov 1  }
  0xc5   : > { %s6906_s17 = smov 16   ;;  %s5478_s15 = scalar_lea.hbm %s6883_s6, 32 }
  0xc6   : > { %5202 = dma.hbm_to_vmem [thread:$0]  (!%p6904_p5), %s5889_s24, 32, %s869_s7, [#allocation12], %s6906_s17, %s6906_s17, %s6905_s13  }
  0xc7   : > { %p5479_p11 = scmp.ne.s32.totalorder %s6883_s6, %s5478_s15  ;;  %p5485_p1 = scmp.lt.u32.totalorder %s5478_s15, %s6883_s6 }
  0xc9   : > { %p5481_p13 = pnand %p5479_p11, %p6903_p6 }
  0xcb   : > { %p5482_p9 = pneg %p5481_p13 }
  0xcd   : > { %p5487_p4 = pnand %p5485_p1, %p5482_p9 }
  0xcf   : > { %5490 = shalt.err (!%p5487_p4)
}
  0xd0   : > { %s5491_s20 = scalar_lea.vmem %s885_s9, 32  ;;  %p5499_p3 = scmp.lt.s32.totalorder %s885_s9, %s885_s9 }
  0xd1   : > { %p5492_p0 = scmp.ne.s32.totalorder %s885_s9, %s5491_s20  ;;  %p5500_p7 = scmp.lt.s32.totalorder %s5491_s20, %s5491_s20 }
  0xd3   : > { %p5494_p8 = pnand %p5492_p0, %p6903_p6  ;;  %p5501_p10 = por %p5500_p7, %p5499_p3 }
  0xd5   : > { %p5495_p12 = pneg %p5494_p8 }
  0xd7   : > { %p5502_p2 = pnand %p5501_p10, %p5495_p12 }
  0xd9   : > { %5505 = shalt.err (!%p5502_p2)
}
  0xda   : > { %5205 = dma.hbm_to_vmem [thread:$0]  (!%p6904_p5), %s6883_s6, 32, %s885_s9, [#allocation15], %s6906_s17, %s6906_s17, %s6905_s13  }
  0xdb   : > { %s6907_s11 = sshll.u32 %s5774_s26, 7  ;;  %s6908_s14 = sshll.u32 %s6112_s1, 3 }
  0xdc   : > { %s6187_s7 = scalar_lea.hbm %s6884_s5, %s6907_s11  ;;  %s944_s16 = scalar_lea.vmem [#allocation2], %s6908_s14 }
  0xdd   : > { %s951_s22 = sshll.u32 %s944_s16, 4  ;;  %s4516_s4 = sshll.u32 %s5774_s26, 4  ;;  %s6191_s22 = int_to_ptr.vmem [resolvable:$true] %s951_s22 }
  0xde   : > { %s941_s15 = scalar_lea.sflag [#allocation3], %s6112_s1  ;;  %s5506_s20 = scalar_lea.hbm %s6187_s7, 128 }
  0xdf   : > { %p5507_p6 = scmp.ne.s32.totalorder %s6187_s7, %s5506_s20  ;;  %p6909_p11 = scmp.ne.s32.totalorder %s6902_s3, 0 }
  0xe0   : > { %s5511_s9 = scalar_lea.hbm %s6884_s5, 256  ;;  %p5512_p5 = scmp.lt.u32.totalorder %s6187_s7, %s6884_s5 }
  0xe1   : > { %p5509_p13 = pnand %p5507_p6, %p6909_p11  ;;  %p5513_p1 = scmp.lt.u32.totalorder %s5511_s9, %s5506_s20 }
  0xe2   : > { %p5515_p0 = scmp.lt.u32.totalorder %s5506_s20, %s6187_s7 }
  0xe3   : > { %p5510_p9 = pneg %p5509_p13  ;;  %p5514_p4 = por %p5513_p1, %p5512_p5 }
  0xe5   : > { %p5516_p8 = por %p5515_p0, %p5514_p4 }
  0xe7   : > { %p5517_p12 = pnand %p5516_p8, %p5510_p9 }
  0xe9   : > { %5520 = shalt.err (!%p5517_p12)
}
  0xea   : > { %s5521_s13 = scalar_lea.vmem %s6191_s22, 128  ;;  %s5814_s17 = smov [#allocation2]  }
  0xeb   : > { %p5522_p3 = scmp.ne.s32.totalorder %s6191_s22, %s5521_s13  ;;  %s5526_s11 = sshll.u32 %s5814_s17, 4  ;;  %s5527_s11 = int_to_ptr.vmem [resolvable:$false] %s5526_s11 }
  0xec   : > { %s5528_s14 = scalar_lea.vmem %s5527_s11, 256  ;;  %p5529_p2 = scmp.lt.s32.totalorder %s6191_s22, %s5527_s11 }
  0xed   : > { %p5524_p7 = pnand %p5522_p3, %p6909_p11  ;;  %p5530_p6 = scmp.lt.s32.totalorder %s5528_s14, %s5521_s13 }
  0xef   : > { %p5525_p10 = pneg %p5524_p7  ;;  %p5531_p13 = por %p5530_p6, %p5529_p2 }
  0xf1   : > { %p5532_p5 = pnand %p5531_p13, %p5525_p10 }
  0xf3   : > { %5535 = shalt.err (!%p5532_p5)
}
  0xf4   : > { %p6910_p9 = scmp.ne.s32.totalorder %s6901_s18, 0  ;;  %s6215_s16 = scalar_lea.hbm %s5854_s21, %s4516_s4 }
  0xf5   : > { %s993_s20 = scalar_lea.vmem [#allocation7], %s6112_s1  ;;  %s5536_s13 = scalar_lea.hbm %s6215_s16, 16 }
  0xf6   : > { %5209 = dma.hbm_to_vmem [thread:$0]  (!%p6910_p9), %s6187_s7, 128, %s6191_s22, %s941_s15  }
  0xf7   : > { %s1000_s9 = sshll.u32 %s993_s20, 4  ;;  %p5537_p1 = scmp.ne.s32.totalorder %s6215_s16, %s5536_s13  ;;  %s1001_s9 = int_to_ptr.vmem [resolvable:$true] %s1000_s9 }
  0xf8   : > { %s5541_s17 = scalar_lea.hbm %s5854_s21, 32  ;;  %p5542_p8 = scmp.lt.u32.totalorder %s6215_s16, %s5854_s21 }
  0xf9   : > { %p5539_p4 = pnand %p5537_p1, %p6909_p11  ;;  %p5543_p12 = scmp.lt.u32.totalorder %s5541_s17, %s5536_s13 }
  0xfa   : > { %p5545_p7 = scmp.lt.u32.totalorder %s5536_s13, %s6215_s16 }
  0xfb   : > { %p5540_p0 = pneg %p5539_p4  ;;  %p5544_p3 = por %p5543_p12, %p5542_p8 }
  0xfd   : > { %p5546_p10 = por %p5545_p7, %p5544_p3 }
  0xff   : > { %p5547_p2 = pnand %p5546_p10, %p5540_p0 }
 0x101   : > { %5550 = shalt.err (!%p5547_p2)
}
 0x102   : > { %s5551_s7 = scalar_lea.vmem %s1001_s9, 16  ;;  %s5815_s22 = smov [#allocation7]  }
 0x103   : > { %p5552_p6 = scmp.ne.s32.totalorder %s1001_s9, %s5551_s7  ;;  %s5556_s15 = sshll.u32 %s5815_s22, 4  ;;  %s5557_s15 = int_to_ptr.vmem [resolvable:$false] %s5556_s15 }
 0x104   : > { %s5558_s11 = scalar_lea.vmem %s5557_s15, 32  ;;  %p5559_p1 = scmp.lt.s32.totalorder %s1001_s9, %s5557_s15 }
 0x105   : > { %p5554_p13 = pnand %p5552_p6, %p6909_p11  ;;  %p5560_p4 = scmp.lt.s32.totalorder %s5558_s11, %s5551_s7 }
 0x107   : > { %p5555_p5 = pneg %p5554_p13  ;;  %p5561_p9 = por %p5560_p4, %p5559_p1 }
 0x109   : > { %p5562_p8 = pnand %p5561_p9, %p5555_p5 }
 0x10b   : > { %5565 = shalt.err (!%p5562_p8)
}
 0x10c   : > { %p6911_p12 = scmp.ne.s32.totalorder %s6901_s18, 0  ;;  %s6235_s14 = scalar_lea.hbm %s5859_s25, %s4516_s4 }
 0x10d   : > { %s1010_s20 = scalar_lea.vmem [#allocation8], %s6112_s1  ;;  %s6912_s17 = sand.u32 1, %s5774_s26  }
 0x10e   : > { %5215 = dma.hbm_to_vmem [thread:$0]  (!%p6911_p12), %s6215_s16, 16, %s1001_s9, %s6132_s0  }
 0x10f   : > { %s1017_s13 = sshll.u32 %s1010_s20, 4  ;;  %s1008_s7 = scalar_lea.sflag [#allocation9], %s6912_s17  ;;  %s1018_s13 = int_to_ptr.vmem [resolvable:$true] %s1017_s13 }
 0x110   : > { %s5566_s22 = scalar_lea.hbm %s6235_s14, 16  ;;  %s5571_s15 = scalar_lea.hbm %s5859_s25, 32 }
 0x111   : > { %p5567_p9 = scmp.ne.s32.totalorder %s6235_s14, %s5566_s22  ;;  %p5572_p7 = scmp.lt.u32.totalorder %s6235_s14, %s5859_s25 }
 0x112   : > { %p5573_p10 = scmp.lt.u32.totalorder %s5571_s15, %s5566_s22  ;;  %p5575_p6 = scmp.lt.u32.totalorder %s5566_s22, %s6235_s14 }
 0x113   : > { %p5569_p0 = pnand %p5567_p9, %p6909_p11 }
 0x114   : > { %p5574_p2 = por %p5573_p10, %p5572_p7 }
 0x115   : > { %p5570_p3 = pneg %p5569_p0 }
 0x116   : > { %p5576_p13 = por %p5575_p6, %p5574_p2 }
 0x118   : > { %p5577_p5 = pnand %p5576_p13, %p5570_p3 }
 0x11a   : > { %5580 = shalt.err (!%p5577_p5)
}
 0x11b   : > { %s5581_s0 = scalar_lea.vmem %s1018_s13, 16  ;;  %s5816_s1 = smov [#allocation8]  }
 0x11c   : > { %p5582_p1 = scmp.ne.s32.totalorder %s1018_s13, %s5581_s0  ;;  %s5586_s4 = sshll.u32 %s5816_s1, 4  ;;  %s5587_s4 = int_to_ptr.vmem [resolvable:$false] %s5586_s4 }
 0x11d   : > { %s5588_s16 = scalar_lea.vmem %s5587_s4, 32  ;;  %p5589_p9 = scmp.lt.s32.totalorder %s1018_s13, %s5587_s4 }
 0x11e   : > { %p5584_p4 = pnand %p5582_p1, %p6909_p11  ;;  %p5590_p0 = scmp.lt.s32.totalorder %s5588_s16, %s5581_s0 }
 0x120   : > { %p5585_p8 = pneg %p5584_p4  ;;  %p5591_p12 = por %p5590_p0, %p5589_p9 }
 0x122   : > { %p5592_p7 = pnand %p5591_p12, %p5585_p8 }
 0x124   : > { %5595 = shalt.err (!%p5592_p7)
}
 0x125   : > { %p6913_p10 = scmp.ne.s32.totalorder %s6901_s18, 0  ;;  %p6914_p3 = scmp.ne.s32.totalorder %s6893_s10, 0 }
 0x126   : > { %s6256_s3 = sand.u32 (!%p6914_p3), 1, %s5766_s23   ;;  %p6915_p11 = scmp.ne.s32.totalorder (!%p6914_p3), %s6890_s2, 0 }
 0x127   : > { %5218 = dma.hbm_to_vmem [thread:$0]  (!%p6913_p10), %s6235_s14, 16, %s1018_s13, %s1008_s7  }
 0x128   : > { %1026 = sbr.rel (%p6914_p3) target bundleno = 5354 (0x14ea), region = 132  ;;  %s4519_s9 = sshll.u32 (!%p6914_p3), %s6256_s3, 3 }
 0x129   : > { %s1029_s11 = scalar_lea.sflag (!%p6914_p3), [#allocation3], %s6256_s3  ;;  %s6260_s20 = scalar_lea.vmem (!%p6914_p3), [#allocation2], %s4519_s9 }
 0x12f   : > { %5725 = dma.done.wait (%p6915_p11), %s1029_s11, 128  }
 0x130   : > { %5727 = vsyncadd (%p6915_p11), %s1029_s11, 4294967168  ;;  %s6267_s18 = sand.u32 1, %s6012_s28   ;;  %s6270_s14 = scalar_lea.vmem [#allocation5], %s4519_s9 }
 0x131   : > { %s1038_s10 = scalar_lea.sflag [#allocation6], %s6267_s18 }
 0x132   : > { %5729 = dma.done.wait (%p6915_p11), %s1038_s10, 144  }
 0x133   : > { %5731 = vsyncadd (%p6915_p11), %s1038_s10, 4294967152  ;;  %s1049_s13 = scalar_lea.vmem [#allocation7], %s6256_s3  ;;  %s1055_s17 = scalar_lea.sflag [#allocation9], %s6267_s18 }
 0x134   : > { %5733 = dma.done.wait (%p6915_p11), %s1055_s17, 16  }
 0x135   : > { %5735 = vsyncadd (%p6915_p11), %s1055_s17, 4294967280  ;;  %p6916_p12 = scmp.eq.s32.totalorder %s6012_s28, 0 }
 0x137   : > { %5737 = dma.done.wait (%p6916_p12), [#allocation9], 32   ;;  %p6917_p2 = pmov %p6916_p12 }
 0x139   : > { %5739 = vsyncadd (%p6917_p2), [#allocation9], 4294967264  ;;  %p6918_p6 = pmov %p6917_p2 }
 0x13a   : > { %p6919_p13 = pmov %p6917_p2 }
 0x13b   : > { %5741 = dma.done.wait (%p6918_p6), [#allocation12], 64  }
 0x13c   : > { %5743 = vsyncadd (%p6919_p13), [#allocation12], 4294967232  ;;  %p6920_p5 = pmov %p6917_p2 }
 0x13d   : > { %p6921_p1 = pmov %p6917_p2 }
 0x13e   : > { %5745 = dma.done.wait (%p6920_p5), [#allocation15], 32  }
 0x13f   : > { %5747 = vsyncadd (%p6921_p1), [#allocation15], 4294967264  ;;  %v5817_v0 = vmov 0.0|0.0   ;;  %vm5818_vm0 = vmmov 0   ;;  %v5819_v1 = vmov 0.0   ;;  %v1327_v2 = vld [vmem:[%s6882_s8] sm:$0xff]  ;;  %v1227_v15 = vlaneseq }
 0x140   : > { %5044 = vmatprep.subr.bf16.mxu1 %v5817_v0  ;;  %5038 = vmatprep.subr.bf16.mxu0 %v5817_v0  ;;  %v1328_v3 = vld [vmem:[%s6882_s8 + $0x8] sm:$0xff]  ;;  %v1243_v4 = vld [vmem:[%s5864_s29] sm:$0xff]  ;;  %v1329_v7 = vld [vmem:[%s6882_s8 + $0x10] sm:$0xff]  ;;  %vm1212_vm1 = vcmask 261120   ;;  %v5820_v47 = vmov -1e+09  }
 0x141   : > { %4778 = vmatprep.mubr.msk.f32.mxu1 %vm5818_vm0, %v5819_v1  ;;  %4767 = vmatprep.mubr.msk.f32.mxu0 %vm5818_vm0, %v5819_v1  ;;  %v5045_v5 = vpack.c.bf16 %v1328_v3, %v1327_v2  ;;  %v1244_v6 = vld [vmem:[%s5864_s29 + $0x8] sm:$0xff]  ;;  %v1330_v8 = vld [vmem:[%s6882_s8 + $0x18] sm:$0xff]  ;;  %v1245_v10 = vld [vmem:[%s5864_s29 + $0x10] sm:$0xff]  ;;  %v6324_v16 = vand.u32 127, %v1227_v15  ;;  %v1571_v43 = vshrl.u32 %v1227_v15, 7  ;;  %vm1576_vm13 = vcmask 64512  }
 0x142   : > { %v5039_v9 = vpack.c.bf16 %v1244_v6, %v1243_v4  ;;  %v1246_v11 = vld [vmem:[%s5864_s29 + $0x18] sm:$0xff]  ;;  %v5048_v12 = vpack.c.bf16 %v1330_v8, %v1329_v7  ;;  %v4529_v17 = vld [vmem:[#allocation11] ss:$0 sm:$0xff]  ;;  %v4527_v18 = vld [vmem:[#allocation10] ss:$0 sm:$0xff]  ;;  %s6928_s2 = sld [smem:[#allocation41_spill]] }
 0x143   : > { %5046 = vmatpush3.bf16.msra.mxu1 %v5045_v5  ;;  %v5042_v13 = vpack.c.bf16 %v1246_v11, %v1245_v10  ;;  %v6312_v14 = vld [vmem:[%s6270_s14] sm:$0xff]  ;;  %vm1230_vm2 = vcmp.lt.s32.totalorder %v6324_v16, 8  ;;  %vm1232_vm3 = vcmp.ge.s32.totalorder %v6324_v16, 8  ;;  %vm1233_vm4 = vcmp.lt.s32.totalorder %v6324_v16, 16  ;;  %v1408_v36 = vld [vmem:[%s5884_s19] sm:$0xff]  ;;  %v1409_v37 = vld [vmem:[%s5884_s19 + $0x8] sm:$0xff] }
 0x144   : > { %5040 = vmatpush3.bf16.msra.mxu0 %v5039_v9  ;;  %5047 = vmatprep.subr.bf16.mxu1 %v5817_v0  ;;  %vm6334_vm5 = vmand %vm1232_vm3, %vm1233_vm4  ;;  %vm1235_vm6 = vcmp.ge.s32.totalorder %v6324_v16, 16  ;;  %vm1236_vm7 = vcmp.lt.s32.totalorder %v6324_v16, 24  ;;  %vm1238_vm9 = vcmp.ge.s32.totalorder %v6324_v16, 24  ;;  %vm1239_vm10 = vcmp.lt.s32.totalorder %v6324_v16, 32  ;;  %v1410_v38 = vld [vmem:[%s5884_s19 + $0x10] sm:$0xff]  ;;  %v1411_v40 = vld [vmem:[%s5884_s19 + $0x18] sm:$0xff] }
 0x145   : > { %5041 = vmatprep.subr.bf16.mxu0 %v5817_v0  ;;  %vm6347_vm8 = vmand %vm1235_vm6, %vm1236_vm7  ;;  %v5051_v39 = vpack.c.bf16 %v1409_v37, %v1408_v36  ;;  %v5054_v41 = vpack.c.bf16 %v1411_v40, %v1410_v38  ;;  %v1196_v42 = vld [vmem:[%s1049_s13] sm:$0x1]  ;;  %v1572_v46 = vsub.s32 0, %v1571_v43  ;;  %v2159_v36 = vld [vmem:[%s5894_s30 + $0x8] sm:$0xff]  ;;  %s6929_s22 = sld [smem:[#allocation42_spill]]  ;;  %s6931_s0 = sld [smem:[#allocation39_spill]] }
 0x146   : > { %vm6362_vm11 = vmand %vm1238_vm9, %vm1239_vm10  ;;  %vm1241_vm12 = vcmp.gt.f32.partialorder %v1196_v42, 0.5  ;;  %v2160_v37 = vld [vmem:[%s5894_s30 + $0x10] sm:$0xff]  ;;  %s6933_s4 = sld [smem:[#allocation40_spill]]  ;;  %vm2373_vm14 = vcmask 523264   ;;  %s6934_s16 = sld [smem:[#allocation43_spill]]  ;;  %vm1197_vm15 = vcmask 7168  }
 0x147   : > { %5049 = vmatpush3.bf16.msra.mxu1 %v5048_v12  ;;  %v1242_v48 = vsel %vm1241_vm12, 0.0, %v5820_v47  ;;  %s6935_s9 = sld [smem:[#allocation44_spill]]  ;;  %v4597_v32 = vld [vmem:[#allocation14 + $0x1] ss:$0 sm:$0xff]  ;;  %s6936_s11 = sld [smem:[#allocation34_spill]] }
 0x148   : > { %5043 = vmatpush3.bf16.msra.mxu0 %v5042_v13  ;;  %4792 = vmatprep.subr.mxu1 %v5819_v1  ;;  %v6393_v53 = vrot.slane %v1242_v48, %v1572_v46  ;;  %p1184_p4 = scmp.lt.s32.totalorder %s6012_s28, 1  ;;  %s6937_s17 = sld [smem:[#allocation33_spill]] }
 0x149   : > { %5050 = vmatprep.subr.bf16.mxu0 %v5817_v0  ;;  %s4146_s5 = scalar_lea.sflag [#allocation18], %s6267_s18 }
 0x14a   : > { %4779 = vmatmul.mubr.msk.f32.vlgmr.msra.gmra.mrb[0].mxu1 %vm1212_vm1, %v6312_v14  ;;  %s1185_s10 = scalar_select %p1184_p4, %s6012_s28, 1 }
 0x14b   : > { %4768 = vmatmul.mubr.msk.f32.vlgmr.msra.gmra.mrb[0].mxu0 %vm1212_vm1, %v6312_v14  ;;  %4794 = vmatprep.mubr.msk.f32.mxu1 %vm5818_vm0, %v5819_v1  ;;  %s6930_s15 = smov %s6929_s22  ;;  %s6932_s1 = smov %s6931_s0 }
 0x14c   : > { %4789 = vmatprep.mubr.msk.f32.mxu0 %vm5818_vm0, %v5819_v1  ;;  %5052 = vmatpush3.bf16.msra.mxu0 %v5051_v39  ;;  %v2161_v39 = vld [vmem:[%s5894_s30 + $0x18] sm:$0xff]  ;;  %s4525_s14 = sshll.u32 %s1185_s10, 3  ;;  %s6940_s10 = sld [smem:[#allocation47_spill]] }
 0x14d   : > { %5053 = vmatprep.subr.bf16.mxu0 %v5817_v0  ;;  %v5060_v40 = vpack.c.bf16 %v2161_v39, %v2160_v37  ;;  %s1191_s13 = scalar_lea.vmem %s6936_s11, %s4525_s14 }
 0x150   : > { %5055 = vmatpush3.bf16.msra.mxu0 %v5054_v41 }
 0x151   : > { %4802 = vmatprep.subr.mxu0 %v5819_v1 }
 0x153   : > { %4790 = vmatmul.mubr.msk.f32.vlgmr.msra.gmra.mrb[2].mxu0 %vm1212_vm1, %v6312_v14 }
 0x154   : > { %4804 = vmatprep.mubr.msk.f32.mxu0 %vm5818_vm0, %v5819_v1 }
 0x21d   : > { %v1404_v19 = vpop.f32.mrb[0].mxu1 }
 0x21e   : > { %v1405_v20 = vadd.f32 %v4529_v17, %v1404_v19  ;;  %v4780_v21 = vpop.f32.mrb[1].mxu1  ;;  %v1323_v22 = vpop.f32.mrb[0].mxu0 }
 0x21f   : > { %v1324_v23 = vadd.f32 %v4527_v18, %v1323_v22  ;;  %v4769_v24 = vpop.f32.mrb[1].mxu0 }
 0x220   : > { %v1490_v25 = vsel %vm1230_vm2, %v1405_v20, 0.0  ;;  %v1589_v28 = vsel %vm6334_vm5, %v1405_v20, 0.0  ;;  %v1827_v31 = vsel %vm6347_vm8, %v1405_v20, 0.0  ;;  %v1993_v34 = vsel %vm6362_vm11, %v1405_v20, 0.0 }
 0x221   : > { %4793 = vmatpush3.xpose.msk.msra.mxu1 %vm1212_vm1, %v1490_v25  ;;  %v1489_v26 = vsel %vm1230_vm2, %v1324_v23, 0.0  ;;  %v1588_v30 = vsel %vm6334_vm5, %v1324_v23, 0.0  ;;  %v1826_v33 = vsel %vm6347_vm8, %v1324_v23, 0.0  ;;  %v1992_v35 = vsel %vm6362_vm11, %v1324_v23, 0.0 }
 0x222   : > { %4797 = vmatprep.subr.mxu1 %v5819_v1 }
 0x224   : > { %4795 = vmatmul.mubr.msk.f32.vlgmr.msra.gmra.mrb[2].mxu1 %vm1212_vm1, %v1489_v26 }
 0x225   : > { %4798 = vmatpush3.xpose.msk.msra.mxu1 %vm1212_vm1, %v1589_v28  ;;  %4799 = vmatprep.mubr.msk.f32.mxu1 %vm5818_vm0, %v5819_v1 }
 0x226   : > { %4812 = vmatprep.subr.mxu1 %v5819_v1 }
 0x228   : > { %4800 = vmatmul.mubr.msk.f32.vlgmr.msra.gmra.mrb[4].mxu1 %vm1212_vm1, %v1588_v30  ;;  %v4531_v30 = vld [vmem:[#allocation13] ss:$0 sm:$0xff] }
 0x229   : > { %4813 = vmatpush3.xpose.msk.msra.mxu1 %vm1212_vm1, %v1827_v31  ;;  %4814 = vmatprep.mubr.msk.f32.mxu1 %vm5818_vm0, %v5819_v1  ;;  %v1485_v31 = vpop.f32.mrb[2].mxu0 }
 0x22a   : > { %4822 = vmatprep.subr.mxu1 %v5819_v1 }
 0x22c   : > { %4815 = vmatmul.mubr.msk.f32.vlgmr.msra.gmra.mrb[6].mxu1 %vm1212_vm1, %v1826_v33  ;;  %v1486_v33 = vadd.f32 %v4531_v30, %v1485_v31 }
 0x22d   : > { %4823 = vmatpush3.xpose.msk.msra.mxu1 %vm1212_vm1, %v1993_v34  ;;  %4824 = vmatprep.mubr.msk.f32.mxu1 %vm5818_vm0, %v5819_v1  ;;  %v4791_v34 = vpop.f32.mrb[3].mxu0 }
 0x22e   : > { %5056 = vmatprep.subr.bf16.mxu1 %v5817_v0  ;;  %4803 = vmatpush3.msk.msra.mxu0 %vm6334_vm5, %v1486_v33  ;;  %v2365_v34 = vld [vmem:[%s5914_s27 + $0x38] sm:$0xff] }
 0x22f   : > { %4807 = vmatprep.subr.mxu0 %v5819_v1 }
 0x230   : > { %4825 = vmatmul.mubr.msk.f32.vlgmr.msra.gmra.mrb[8].mxu1 %vm1212_vm1, %v1992_v35  ;;  %v2158_v35 = vld [vmem:[%s5894_s30] sm:$0xff] }
 0x231   : > { %4840 = vmatprep.mubr.msk.f32.mxu1 %vm5818_vm0, %v5819_v1  ;;  %v5057_v38 = vpack.c.bf16 %v2159_v36, %v2158_v35  ;;  %v4553_v36 = vld [vmem:[%s6931_s0] ss:$0 sm:$0xff]  ;;  %s6938_s0 = sld [smem:[#allocation45_spill]] }
 0x233   : > { %5058 = vmatpush3.bf16.msra.mxu1 %v5057_v38 }
 0x234   : > { %5059 = vmatprep.subr.bf16.mxu1 %v5817_v0 }
 0x237   : > { %5061 = vmatpush3.bf16.msra.mxu1 %v5060_v40  ;;  %s6939_s11 = smov %s6938_s0 }
 0x238   : > { %5068 = vmatprep.subr.bf16.mxu1 %v5817_v0 }
 0x2f7   : > { %v1564_v44 = vpop.f32.mrb[2].mxu1 }
 0x2f8   : > { %v4796_v45 = vpop.f32.mrb[3].mxu1  ;;  %v1568_v50 = vmul.f32 0.35355338, %v1564_v44 }
 0x2fa   : > { %v1575_v59 = vadd.f32 %v6393_v53, %v1568_v50 }
 0x2fb   : > { %v1663_v49 = vpop.f32.mrb[4].mxu1 }
 0x2fc   : > { %v1667_v51 = vmul.f32 0.35355338, %v1663_v49  ;;  %v4801_v52 = vpop.f32.mrb[5].mxu1  ;;  %v1577_v2 = vsel %vm1576_vm13, %v1575_v59, -inf }
 0x2fe   : > { %v1668_v54 = vadd.f32 %v1667_v51, %v6393_v53 }
 0x2ff   : > { %v1901_v55 = vpop.f32.mrb[6].mxu1 }
 0x300   : > { %v1905_v56 = vmul.f32 0.35355338, %v1901_v55  ;;  %v4816_v57 = vpop.f32.mrb[7].mxu1  ;;  %v1669_v58 = vsel %vm1576_vm13, %v1668_v54, -inf }
 0x301   : > { %1670 = vmax.xlane.f32.xlu0 %v1669_v58 }
 0x302   : > { %v1906_v60 = vadd.f32 %v1905_v56, %v6393_v53  ;;  %v4549_v56 = vld [vmem:[#allocation14] ss:$0 sm:$0xff] }
 0x303   : > { %v2067_v61 = vpop.f32.mrb[8].mxu1 }
 0x304   : > { %v2071_v62 = vmul.f32 0.35355338, %v2067_v61  ;;  %v4826_v63 = vpop.f32.mrb[9].mxu1  ;;  %v1907_v3 = vsel %vm1576_vm13, %v1906_v60, -inf }
 0x305   : > { %1578 = vmax.xlane.f32.xlu0 %v1577_v2  ;;  %1908 = vmax.xlane.f32.xlu1 %v1907_v3 }
 0x306   : > { %v2072_v4 = vadd.f32 %v2071_v62, %v6393_v53 }
 0x308   : > { %v2073_v5 = vsel %vm1576_vm13, %v2072_v4, -inf }
 0x309   : > { %2074 = vmax.xlane.f32.xlu1 %v2073_v5  ;;  %v2273_v5 = vld [vmem:[%s5904_s12] sm:$0xff] }
 0x38e   : > { %v1671_v6 = vpop.xlane.xlu0 %1670 }
 0x38f   : > { %v1672_v7 = vsub.f32 %v1668_v54, %v1671_v6  ;;  %v2274_v6 = vld [vmem:[%s5904_s12 + $0x8] sm:$0xff] }
 0x391   : > { %v1673_v8 = vmul.f32 1.442695, %v1672_v7  ;;  %v5063_v7 = vpack.c.bf16 %v2274_v6, %v2273_v5 }
 0x392   : > { %v1579_v9 = vpop.xlane.xlu0 %1578  ;;  %v1909_v10 = vpop.xlane.xlu1 %1908 }
 0x393   : > { %5318 = vpow2.f32 %v1673_v8  ;;  %v1580_v11 = vsub.f32 %v1575_v59, %v1579_v9  ;;  %v1910_v12 = vsub.f32 %v1906_v60, %v1909_v10  ;;  %v2276_v8 = vld [vmem:[%s5904_s12 + $0x18] sm:$0xff]  ;;  %v2358_v10 = vld [vmem:[%s5914_s27] sm:$0xff] }
 0x395   : > { %v1581_v13 = vmul.f32 1.442695, %v1580_v11  ;;  %v1911_v15 = vmul.f32 1.442695, %v1910_v12  ;;  %v2359_v11 = vld [vmem:[%s5914_s27 + $0x8] sm:$0xff]  ;;  %v2360_v12 = vld [vmem:[%s5914_s27 + $0x10] sm:$0xff] }
 0x396   : > { %v2075_v17 = vpop.xlane.xlu1 %2074 }
 0x397   : > { %5320 = vpow2.f32 %v1581_v13  ;;  %v2076_v18 = vsub.f32 %v2072_v4, %v2075_v17  ;;  %v5069_v13 = vpack.c.bf16 %v2359_v11, %v2358_v10  ;;  %v4558_v10 = vld [vmem:[%s6935_s9] ss:$0 sm:$0xff] }
 0x398   : > { %5322 = vpow2.f32 %v1911_v15  ;;  %v2361_v15 = vld [vmem:[%s5914_s27 + $0x18] sm:$0xff] }
 0x399   : > { %v2077_v19 = vmul.f32 1.442695, %v2076_v18  ;;  %v5072_v17 = vpack.c.bf16 %v2361_v15, %v2360_v12  ;;  %v2362_v18 = vld [vmem:[%s5914_s27 + $0x20] sm:$0xff]  ;;  %v4567_v15 = vld [vmem:[%s6882_s8 + $0x30] sm:$0xff] }
 0x39b   : > { %5324 = vpow2.f32 %v2077_v19  ;;  %v2363_v19 = vld [vmem:[%s5914_s27 + $0x28] sm:$0xff] }
 0x39d   : > { %v5319_v20 = vpop.eup %5318 }
 0x39e   : > { %v1675_v21 = vsel %vm1576_vm13, %v5319_v20, 0.0 }
 0x39f   : > { %1676 = vadd.xlane.f32.xlu0 %v1675_v21 }
 0x3a1   : > { %v5321_v22 = vpop.eup %5320 }
 0x3a2   : > { %v5323_v23 = vpop.eup %5322  ;;  %v1583_v24 = vsel %vm1576_vm13, %v5321_v22, 0.0 }
 0x3a3   : > { %v1913_v25 = vsel %vm1576_vm13, %v5323_v23, 0.0  ;;  %1584 = vadd.xlane.f32.xlu1 %v1583_v24 }
 0x3a4   : > { %1914 = vadd.xlane.f32.xlu0 %v1913_v25  ;;  %v4551_v25 = vld [vmem:[%s6928_s2] ss:$0 sm:$0xff] }
 0x3a5   : > { %v5325_v26 = vpop.eup %5324 }
 0x3a6   : > { %v2079_v28 = vsel %vm1576_vm13, %v5325_v26, 0.0 }
 0x3a7   : > { %2080 = vadd.xlane.f32.xlu1 %v2079_v28  ;;  %v4552_v28 = vld [vmem:[%s6929_s22] ss:$0 sm:$0xff]  ;;  %s1187_s22 = scalar_lea.vmem %s6937_s17, %s4525_s14  ;;  %s6942_s14 = sld [smem:[#allocation46_spill]] }
 0x3a8   : > { %s6848_s17 = scalar_lea.vmem [#allocation16], %s6256_s3 }
 0x42c   : > { %v1677_v41 = vpop.xlane.xlu0 %1676 }
 0x42d   : > { %5326 = vrcp.f32 %v1677_v41  ;;  %v4555_v41 = vld [vmem:[%s6933_s4] ss:$0 sm:$0xff] }
 0x430   : > { %v1585_v42 = vpop.xlane.xlu1 %1584 }
 0x431   : > { %5328 = vrcp.f32 %v1585_v42  ;;  %v1915_v45 = vpop.xlane.xlu0 %1914 }
 0x432   : > { %5330 = vrcp.f32 %v1915_v45 }
 0x434   : > { %v2081_v48 = vpop.xlane.xlu1 %2080 }
 0x435   : > { %5332 = vrcp.f32 %v2081_v48 }
 0x437   : > { %v5327_v43 = vpop.eup %5326 }
 0x438   : > { %v1679_v44 = vmul.f32 %v5327_v43, %v5319_v20  ;;  %v5075_v20 = vpack.c.bf16 %v2363_v19, %v2362_v18 }
 0x43a   : > { %4805 = vmatmul.mubr.msk.f32.vlgmr.msra.gmra.mrb[4].mxu0 %vm1576_vm13, %v1679_v44 }
 0x43b   : > { %4808 = vmatpush3.msk.msra.mxu0 %vm1230_vm2, %v1486_v33  ;;  %4809 = vmatprep.mubr.msk.f32.mxu0 %vm5818_vm0, %v5819_v1  ;;  %v5329_v46 = vpop.eup %5328 }
 0x43c   : > { %4817 = vmatprep.subr.mxu0 %v5819_v1  ;;  %v1587_v47 = vmul.f32 %v5329_v46, %v5321_v22  ;;  %v5331_v49 = vpop.eup %5330 }
 0x43d   : > { %v1917_v50 = vmul.f32 %v5331_v49, %v5323_v23 }
 0x43f   : > { %v5333_v51 = vpop.eup %5332 }
 0x440   : > { %v2083_v52 = vmul.f32 %v5333_v51, %v5325_v26 }
 0x442   : > { %4810 = vmatmul.mubr.msk.f32.vlgmr.msra.gmra.mrb[4].mxu0 %vm1576_vm13, %v1587_v47 }
 0x443   : > { %4818 = vmatpush3.msk.msra.mxu0 %vm6347_vm8, %v1486_v33  ;;  %4819 = vmatprep.mubr.msk.f32.mxu0 %vm5818_vm0, %v5819_v1 }
 0x444   : > { %4827 = vmatprep.subr.mxu0 %v5819_v1 }
 0x44a   : > { %4820 = vmatmul.mubr.msk.f32.vlgmr.msra.gmra.mrb[4].mxu0 %vm1576_vm13, %v1917_v50 }
 0x44b   : > { %4828 = vmatpush3.msk.msra.mxu0 %vm6362_vm11, %v1486_v33  ;;  %4829 = vmatprep.mubr.msk.f32.mxu0 %vm5818_vm0, %v5819_v1  ;;  %v2364_v33 = vld [vmem:[%s5914_s27 + $0x30] sm:$0xff] }
 0x44c   : > { %5062 = vmatprep.subr.bf16.mxu0 %v5817_v0  ;;  %v5078_v35 = vpack.c.bf16 %v2365_v34, %v2364_v33 }
 0x452   : > { %4830 = vmatmul.mubr.msk.f32.vlgmr.msra.gmra.mrb[4].mxu0 %vm1576_vm13, %v2083_v52  ;;  %v4559_v52 = vld [vmem:[%s5864_s29 + $0x20] sm:$0xff] }
 0x453   : > { %4851 = vmatprep.mubr.msk.f32.mxu0 %vm5818_vm0, %v5819_v1  ;;  %5064 = vmatpush3.bf16.msra.mxu0 %v5063_v7  ;;  %v4557_v7 = vld [vmem:[%s6934_s16] ss:$0 sm:$0xff] }
 0x454   : > { %5065 = vmatprep.subr.bf16.mxu0 %v5817_v0 }
 0x525   : > { %v2153_v54 = vpop.f32.mrb[4].mxu0 }
 0x526   : > { %v4831_v55 = vpop.f32.mrb[5].mxu0  ;;  %4841 = vmatmul.mubr.msk.f32.vlgmr.msra.gmra.mrb[10].mxu1 %vm1212_vm1, %v2153_v54  ;;  %v4560_v54 = vld [vmem:[%s5864_s29 + $0x28] sm:$0xff] }
 0x527   : > { %4870 = vmatprep.mubr.msk.f32.mxu1 %vm5818_vm0, %v5819_v1  ;;  %5070 = vmatpush3.bf16.msra.mxu1 %v5069_v13  ;;  %v5081_v55 = vpack.c.bf16 %v4560_v54, %v4559_v52 }
 0x528   : > { %5071 = vmatprep.subr.bf16.mxu1 %v5817_v0 }
 0x52b   : > { %5073 = vmatpush3.bf16.msra.mxu1 %v5072_v17  ;;  %v4568_v17 = vld [vmem:[%s6882_s8 + $0x38] sm:$0xff] }
 0x52c   : > { %5074 = vmatprep.subr.bf16.mxu1 %v5817_v0  ;;  %v5090_v18 = vpack.c.bf16 %v4568_v17, %v4567_v15 }
 0x52f   : > { %5076 = vmatpush3.bf16.msra.mxu1 %v5075_v20 }
 0x530   : > { %5077 = vmatprep.subr.bf16.mxu1 %v5817_v0 }
 0x533   : > { %5079 = vmatpush3.bf16.msra.mxu1 %v5078_v35 }
 0x534   : > { %5092 = vmatprep.subr.bf16.mxu1 %v5817_v0 }
 0x5f9   : > { %v2238_v57 = vpop.f32.mrb[10].mxu1 }
 0x5fa   : > { %v2239_v58 = vadd.f32 %v4549_v56, %v2238_v57  ;;  %v4842_v59 = vpop.f32.mrb[11].mxu1  ;;  %v4571_v56 = vld [vmem:[%s5884_s19 + $0x20] sm:$0xff]  ;;  %v4572_v57 = vld [vmem:[%s5884_s19 + $0x28] sm:$0xff] }
 0x5fb   : > { %v4561_v59 = vld [vmem:[%s5864_s29 + $0x30] sm:$0xff] }
 0x5fc   : > { %v2242_v60 = vadd.f32 %v2239_v58, %v6312_v14  ;;  %v2275_v14 = vld [vmem:[%s5904_s12 + $0x10] sm:$0xff]  ;;  %v5093_v58 = vpack.c.bf16 %v4572_v57, %v4571_v56 }
 0x5fd   : > { %v5066_v9 = vpack.c.bf16 %v2276_v8, %v2275_v14  ;;  %v4565_v8 = vld [vmem:[%s6882_s8 + $0x20] sm:$0xff] }
 0x5fe   : > { %v2245_v61 = vsel %vm1212_vm1, %v2242_v60, 0.0 }
 0x5ff   : > { %2246 = vadd.xlane.f32.xlu0 %v2245_v61  ;;  %5067 = vmatpush3.bf16.msra.mxu0 %v5066_v9  ;;  %v4573_v61 = vld [vmem:[%s5884_s19 + $0x30] sm:$0xff]  ;;  %v4566_v9 = vld [vmem:[%s6882_s8 + $0x28] sm:$0xff] }
 0x600   : > { %5080 = vmatprep.subr.bf16.mxu0 %v5817_v0  ;;  %v5087_v12 = vpack.c.bf16 %v4566_v9, %v4565_v8 }
 0x68c   : > { %v2247_v62 = vpop.xlane.xlu0 %2246 }
 0x68d   : > { %v2249_v63 = vmul.f32 0.03125, %v2247_v62 }
 0x68f   : > { %v2250_v2 = vsub.f32 %v2242_v60, %v2249_v63  ;;  %v4562_v60 = vld [vmem:[%s5864_s29 + $0x38] sm:$0xff] }
 0x690   : > { %v5084_v62 = vpack.c.bf16 %v4562_v60, %v4561_v59  ;;  %v4574_v63 = vld [vmem:[%s5884_s19 + $0x38] sm:$0xff] }
 0x691   : > { %v2251_v3 = vmul.f32 %v2250_v2, %v2250_v2 }
 0x693   : > { %v2252_v4 = vsel %vm1212_vm1, %v2251_v3, 0.0 }
 0x694   : > { %2253 = vadd.xlane.f32.xlu1 %v2252_v4 }
 0x721   : > { %v2254_v21 = vpop.xlane.xlu1 %2253 }
 0x722   : > { %v2255_v22 = vmul.f32 0.03125, %v2254_v21 }
 0x724   : > { %v2256_v23 = vadd.f32 1e-05, %v2255_v22 }
 0x726   : > { %5334 = vrsqrt.f32 %v2256_v23  ;;  %v4569_v23 = vld [vmem:[#allocation11 + $0x1] ss:$0 sm:$0xff] }
 0x730   : > { %v5335_v24 = vpop.eup %5334 }
 0x731   : > { %v2258_v26 = vmul.f32 %v5335_v24, %v2250_v2  ;;  %v5096_v2 = vpack.c.bf16 %v4574_v63, %v4573_v61  ;;  %v4563_v24 = vld [vmem:[#allocation10 + $0x1] ss:$0 sm:$0xff] }
 0x733   : > { %v2265_v30 = vmul.f32 %v4551_v25, %v2258_v26 }
 0x735   : > { %v2272_v31 = vadd.f32 %v4552_v28, %v2265_v30 }
 0x737   : > { %4852 = vmatmul.mubr.msk.f32.vlgmr.msra.gmra.mrb[6].mxu0 %vm1212_vm1, %v2272_v31 }
 0x738   : > { %4881 = vmatprep.mubr.msk.f32.mxu0 %vm5818_vm0, %v5819_v1  ;;  %5082 = vmatpush3.bf16.msra.mxu0 %v5081_v55 }
 0x739   : > { %5083 = vmatprep.subr.bf16.mxu0 %v5817_v0 }
 0x73c   : > { %5085 = vmatpush3.bf16.msra.mxu0 %v5084_v62 }
 0x73d   : > { %5086 = vmatprep.subr.bf16.mxu0 %v5817_v0 }
 0x80a   : > { %v2353_v37 = vpop.f32.mrb[6].mxu0 }
 0x80b   : > { %v2354_v38 = vadd.f32 %v4553_v36, %v2353_v37  ;;  %v4853_v39 = vpop.f32.mrb[7].mxu0 }
 0x80d   : > { %v2357_v40 = vmax.f32 %v2354_v38, 0.0 }
 0x80f   : > { %4871 = vmatmul.mubr.msk.f32.vlgmr.msra.gmra.mrb[12].mxu1 %vm2373_vm14, %v2357_v40 }
 0x810   : > { %4903 = vmatprep.mubr.msk.f32.mxu1 %vm5818_vm0, %v5819_v1  ;;  %5094 = vmatpush3.bf16.msra.mxu1 %v5093_v58 }
 0x811   : > { %5095 = vmatprep.subr.bf16.mxu1 %v5817_v0 }
 0x814   : > { %5097 = vmatpush3.bf16.msra.mxu1 %v5096_v2 }
 0x815   : > { %4911 = vmatprep.subr.mxu1 %v5819_v1 }
 0x8e2   : > { %v2443_v42 = vpop.f32.mrb[12].mxu1 }
 0x8e3   : > { %v2444_v43 = vadd.f32 %v4555_v41, %v2443_v42  ;;  %v4872_v44 = vpop.f32.mrb[13].mxu1 }
 0x8e5   : > { %v2447_v45 = vadd.f32 %v2444_v43, %v2272_v31  ;;  %v4575_v31 = vld [vmem:[#allocation13 + $0x1] ss:$0 sm:$0xff] }
 0x8e7   : > { %v2450_v46 = vsel %vm1212_vm1, %v2447_v45, 0.0 }
 0x8e8   : > { %2451 = vadd.xlane.f32.xlu0 %v2450_v46 }
 0x975   : > { %v2452_v47 = vpop.xlane.xlu0 %2451 }
 0x976   : > { %v2453_v48 = vmul.f32 0.03125, %v2452_v47 }
 0x978   : > { %v2454_v49 = vsub.f32 %v2447_v45, %v2453_v48 }
 0x97a   : > { %v2455_v50 = vmul.f32 %v2454_v49, %v2454_v49 }
 0x97c   : > { %v2456_v51 = vsel %vm1212_vm1, %v2455_v50, 0.0 }
 0x97d   : > { %2457 = vadd.xlane.f32.xlu1 %v2456_v51 }
 0xa0a   : > { %v2458_v3 = vpop.xlane.xlu1 %2457 }
 0xa0b   : > { %v2459_v4 = vmul.f32 0.03125, %v2458_v3 }
 0xa0d   : > { %v2460_v5 = vadd.f32 1e-05, %v2459_v4 }
 0xa0f   : > { %5336 = vrsqrt.f32 %v2460_v5 }
 0xa19   : > { %v5337_v6 = vpop.eup %5336 }
 0xa1a   : > { %v2462_v14 = vmul.f32 %v5337_v6, %v2454_v49 }
 0xa1c   : > { %v2469_v11 = vmul.f32 %v4557_v7, %v2462_v14 }
 0xa1e   : > { %v6489_v13 = vadd.f32 %v4558_v10, %v2469_v11 }
 0xa20   : > { %4882 = vmatmul.mubr.msk.f32.vlgmr.msra.gmra.mrb[8].mxu0 %vm1212_vm1, %v6489_v13  ;;  %4904 = vmatmul.mubr.msk.f32.vlgmr.msra.gmra.mrb[14].mxu1 %vm1212_vm1, %v6489_v13 }
 0xa21   : > { %5088 = vmatpush3.bf16.msra.mxu0 %v5087_v12  ;;  %4892 = vmatprep.mubr.msk.f32.mxu0 %vm5818_vm0, %v5819_v1 }
 0xa22   : > { %5089 = vmatprep.subr.bf16.mxu0 %v5817_v0  ;;  %4913 = vmatprep.mubr.msk.f32.mxu1 %vm5818_vm0, %v5819_v1 }
 0xa25   : > { %5091 = vmatpush3.bf16.msra.mxu0 %v5090_v18 }
 0xa26   : > { %4906 = vmatprep.subr.mxu0 %v5819_v1 }
 0xa28   : > { %4893 = vmatmul.mubr.msk.f32.vlgmr.msra.gmra.mrb[10].mxu0 %vm1212_vm1, %v6489_v13 }
 0xa29   : > { %4908 = vmatprep.mubr.msk.f32.mxu0 %vm5818_vm0, %v5819_v1 }
 0xaf3   : > { %v2559_v19 = vpop.f32.mrb[8].mxu0  ;;  %v2725_v20 = vpop.f32.mrb[14].mxu1 }
 0xaf4   : > { %v4883_v21 = vpop.f32.mrb[9].mxu0  ;;  %v4905_v22 = vpop.f32.mrb[15].mxu1  ;;  %v2560_v30 = vadd.f32 %v4563_v24, %v2559_v19  ;;  %v6515_v35 = vadd.f32 %v4575_v31, %v2725_v20 }
 0xaf5   : > { %v4593_v21 = vld [vmem:[%s5894_s30 + $0x20] sm:$0xff]  ;;  %v4594_v22 = vld [vmem:[%s5894_s30 + $0x28] sm:$0xff] }
 0xaf6   : > { %v2729_v36 = vsel %vm1230_vm2, %v2560_v30, 0.0  ;;  %v2821_v37 = vsel %vm6334_vm5, %v2560_v30, 0.0  ;;  %v3059_v39 = vsel %vm6347_vm8, %v2560_v30, 0.0  ;;  %v3225_v40 = vsel %vm6362_vm11, %v2560_v30, 0.0 }
 0xaf7   : > { %v5099_v24 = vpack.c.bf16 %v4594_v22, %v4593_v21  ;;  %v5821_v22 = vmov 0  }
 0xaf8   : > { %5317 = vset.pattern.permute.xlu1 %v5821_v22  ;;  %5316 = vset.pattern.permute.xlu0 %v5821_v22 }
 0xafb   : > { %v2642_v25 = vpop.f32.mrb[10].mxu0 }
 0xafc   : > { %v2643_v26 = vadd.f32 %v4569_v23, %v2642_v25  ;;  %v4894_v28 = vpop.f32.mrb[11].mxu0  ;;  %v4595_v23 = vld [vmem:[%s5894_s30 + $0x30] sm:$0xff]  ;;  %v4596_v25 = vld [vmem:[%s5894_s30 + $0x38] sm:$0xff] }
 0xafe   : > { %v2730_v33 = vsel %vm1230_vm2, %v2643_v26, 0.0  ;;  %v2822_v34 = vsel %vm6334_vm5, %v2643_v26, 0.0  ;;  %v3060_v38 = vsel %vm6347_vm8, %v2643_v26, 0.0  ;;  %v3226_v27 = vsel %vm6362_vm11, %v2643_v26, 0.0 }
 0xaff   : > { %4907 = vmatpush3.xpose.msk.msra.mxu0 %vm1212_vm1, %v2730_v33  ;;  %4912 = vmatpush3.xpose.msk.msra.mxu1 %vm1212_vm1, %v2822_v34  ;;  %v5102_v26 = vpack.c.bf16 %v4596_v25, %v4595_v23  ;;  %v1195_v23 = vld [vmem:[%s1191_s13] sm:$0xff]  ;;  %s6943_s13 = sld [smem:[#allocation48_spill]] }
 0xb00   : > { %4916 = vmatprep.subr.mxu0 %v5819_v1  ;;  %4926 = vmatprep.subr.mxu1 %v5819_v1 }
 0xb02   : > { %4909 = vmatmul.mubr.msk.f32.vlgmr.msra.gmra.mrb[12].mxu0 %vm1212_vm1, %v2729_v36  ;;  %4914 = vmatmul.mubr.msk.f32.vlgmr.msra.gmra.mrb[16].mxu1 %vm1212_vm1, %v2821_v37 }
 0xb03   : > { %4917 = vmatpush3.msk.msra.mxu0 %vm6334_vm5, %v6515_v35  ;;  %4927 = vmatpush3.xpose.msk.msra.mxu1 %vm1212_vm1, %v3060_v38 }
 0xb04   : > { %4928 = vmatprep.mubr.msk.f32.mxu1 %vm5818_vm0, %v5819_v1  ;;  %4936 = vmatprep.subr.mxu1 %v5819_v1 }
 0xb05   : > { %4918 = vmatprep.mubr.msk.f32.mxu0 %vm5818_vm0, %v5819_v1  ;;  %4921 = vmatprep.subr.mxu0 %v5819_v1 }
 0xb06   : > { %4929 = vmatmul.mubr.msk.f32.vlgmr.msra.gmra.mrb[18].mxu1 %vm1212_vm1, %v3059_v39 }
 0xb07   : > { %4937 = vmatpush3.xpose.msk.msra.mxu1 %vm1212_vm1, %v3226_v27  ;;  %4938 = vmatprep.mubr.msk.f32.mxu1 %vm5818_vm0, %v5819_v1 }
 0xb08   : > { %5098 = vmatprep.subr.bf16.mxu1 %v5817_v0 }
 0xb0a   : > { %4939 = vmatmul.mubr.msk.f32.vlgmr.msra.gmra.mrb[20].mxu1 %vm1212_vm1, %v3225_v40 }
 0xb0b   : > { %4954 = vmatprep.mubr.msk.f32.mxu1 %vm5818_vm0, %v5819_v1  ;;  %5100 = vmatpush3.bf16.msra.mxu1 %v5099_v24  ;;  %v3718_v24 = vsel %vm1197_vm15, %v1195_v23, 0.0 }
 0xb0c   : > { %5101 = vmatprep.subr.bf16.mxu1 %v5817_v0  ;;  %v3719_v25 = vrot.slane %v3718_v24, 4 }
 0xb0f   : > { %5103 = vmatpush3.bf16.msra.mxu1 %v5102_v26  ;;  %v3720_v26 = vadd.f32 %v3719_v25, %v3718_v24 }
 0xb10   : > { %5110 = vmatprep.subr.bf16.mxu1 %v5817_v0 }
 0xbd5   : > { %v2804_v41 = vpop.f32.mrb[12].mxu0  ;;  %v2896_v42 = vpop.f32.mrb[16].mxu1 }
 0xbd6   : > { %v2808_v43 = vmul.f32 0.35355338, %v2804_v41  ;;  %v2900_v44 = vmul.f32 0.35355338, %v2896_v42  ;;  %v4910_v45 = vpop.f32.mrb[13].mxu0  ;;  %v4915_v46 = vpop.f32.mrb[17].mxu1 }
 0xbd8   : > { %v2901_v47 = vadd.f32 %v2900_v44, %v6393_v53  ;;  %v2809_v48 = vadd.f32 %v2808_v43, %v6393_v53 }
 0xbd9   : > { %v3134_v49 = vpop.f32.mrb[18].mxu1 }
 0xbda   : > { %v3138_v50 = vmul.f32 0.35355338, %v3134_v49  ;;  %v4930_v51 = vpop.f32.mrb[19].mxu1  ;;  %v2902_v52 = vsel %vm1576_vm13, %v2901_v47, -inf  ;;  %v2810_v54 = vsel %vm1576_vm13, %v2809_v48, -inf }
 0xbdb   : > { %2903 = vmax.xlane.f32.xlu0 %v2902_v52  ;;  %2811 = vmax.xlane.f32.xlu1 %v2810_v54  ;;  %v4603_v51 = vld [vmem:[%s5904_s12 + $0x20] sm:$0xff]  ;;  %v4604_v52 = vld [vmem:[%s5904_s12 + $0x28] sm:$0xff] }
 0xbdc   : > { %v3139_v55 = vadd.f32 %v3138_v50, %v6393_v53  ;;  %v5105_v54 = vpack.c.bf16 %v4604_v52, %v4603_v51  ;;  %v3750_v51 = vld [vmem:[%s6938_s0 + $0x20] sm:$0xff]  ;;  %v3751_v52 = vld [vmem:[%s6939_s11 + $0x28] sm:$0xff]  ;;  %s1171_s0 = scalar_lea.vmem [#allocation17], %s6256_s3 }
 0xbdd   : > { %v3300_v56 = vpop.f32.mrb[20].mxu1 }
 0xbde   : > { %v3304_v57 = vmul.f32 0.35355338, %v3300_v56  ;;  %v4940_v58 = vpop.f32.mrb[21].mxu1  ;;  %v3140_v59 = vsel %vm1576_vm13, %v3139_v55, -inf }
 0xbdf   : > { %3141 = vmax.xlane.f32.xlu0 %v3140_v59  ;;  %v4611_v58 = vld [vmem:[%s5914_s27 + $0x48] sm:$0xff]  ;;  %v4612_v59 = vld [vmem:[%s5914_s27 + $0x50] sm:$0xff] }
 0xbe0   : > { %v3305_v60 = vadd.f32 %v3304_v57, %v6393_v53  ;;  %v4610_v57 = vld [vmem:[%s5914_s27 + $0x40] sm:$0xff] }
 0xbe2   : > { %v3306_v61 = vsel %vm1576_vm13, %v3305_v60, -inf }
 0xbe3   : > { %3307 = vmax.xlane.f32.xlu1 %v3306_v61  ;;  %v4613_v61 = vld [vmem:[%s5914_s27 + $0x58] sm:$0xff] }
 0xc68   : > { %v2904_v62 = vpop.xlane.xlu0 %2903  ;;  %v2812_v63 = vpop.xlane.xlu1 %2811 }
 0xc69   : > { %v2905_v2 = vsub.f32 %v2901_v47, %v2904_v62  ;;  %v2813_v3 = vsub.f32 %v2809_v48, %v2812_v63  ;;  %v5114_v62 = vpack.c.bf16 %v4613_v61, %v4612_v59  ;;  %v4614_v63 = vld [vmem:[%s5914_s27 + $0x60] sm:$0xff]  ;;  %v3761_v61 = vld [vmem:[%s6940_s10 + $0x38] sm:$0xff] }
 0xc6b   : > { %v2906_v4 = vmul.f32 1.442695, %v2905_v2  ;;  %v2814_v5 = vmul.f32 1.442695, %v2813_v3  ;;  %v4615_v2 = vld [vmem:[%s5914_s27 + $0x68] sm:$0xff] }
 0xc6c   : > { %v3142_v6 = vpop.xlane.xlu0 %3141  ;;  %v5117_v3 = vpack.c.bf16 %v4615_v2, %v4614_v63 }
 0xc6d   : > { %5338 = vpow2.f32 %v2906_v4  ;;  %v3143_v7 = vsub.f32 %v3139_v55, %v3142_v6  ;;  %v4606_v55 = vld [vmem:[%s5904_s12 + $0x38] sm:$0xff] }
 0xc6e   : > { %5340 = vpow2.f32 %v2814_v5 }
 0xc6f   : > { %v3144_v14 = vmul.f32 1.442695, %v3143_v7 }
 0xc70   : > { %v3308_v8 = vpop.xlane.xlu1 %3307 }
 0xc71   : > { %5342 = vpow2.f32 %v3144_v14  ;;  %v3309_v9 = vsub.f32 %v3305_v60, %v3308_v8  ;;  %v5111_v60 = vpack.c.bf16 %v4611_v58, %v4610_v57  ;;  %v4601_v14 = vld [vmem:[%s6928_s2 + $0x1] ss:$0 sm:$0xff]  ;;  %v3752_v57 = vld [vmem:[%s6939_s11 + $0x30] sm:$0xff]  ;;  %v3753_v58 = vld [vmem:[%s6939_s11 + $0x38] sm:$0xff] }
 0xc72   : > { %v5126_v59 = vpack.c.bf16 %v3753_v58, %v3752_v57  ;;  %v4050_v58 = vld [vmem:[%s6943_s13] sm:$0x1]  ;;  %s6855_s13 = scalar_lea.vmem [#allocation19], %s6256_s3 }
 0xc73   : > { %v3310_v53 = vmul.f32 1.442695, %v3309_v9  ;;  %v4602_v9 = vld [vmem:[%s6930_s15 + $0x1] ss:$0 sm:$0xff] }
 0xc75   : > { %5344 = vpow2.f32 %v3310_v53 }
 0xc77   : > { %v5339_v10 = vpop.eup %5338 }
 0xc78   : > { %v5341_v11 = vpop.eup %5340  ;;  %v2908_v12 = vsel %vm1576_vm13, %v5339_v10, 0.0 }
 0xc79   : > { %2909 = vadd.xlane.f32.xlu0 %v2908_v12  ;;  %v2816_v15 = vsel %vm1576_vm13, %v5341_v11, 0.0  ;;  %v4617_v12 = vld [vmem:[%s5914_s27 + $0x78] sm:$0xff] }
 0xc7a   : > { %2817 = vadd.xlane.f32.xlu1 %v2816_v15 }
 0xc7b   : > { %v5343_v17 = vpop.eup %5342 }
 0xc7c   : > { %v3146_v18 = vsel %vm1576_vm13, %v5343_v17, 0.0 }
 0xc7d   : > { %3147 = vadd.xlane.f32.xlu0 %v3146_v18 }
 0xc7f   : > { %v5345_v19 = vpop.eup %5344 }
 0xc80   : > { %v3312_v20 = vsel %vm1576_vm13, %v5345_v19, 0.0 }
 0xc81   : > { %3313 = vadd.xlane.f32.xlu1 %v3312_v20 }
 0xd06   : > { %v2910_v28 = vpop.xlane.xlu0 %2909 }
 0xd07   : > { %5346 = vrcp.f32 %v2910_v28  ;;  %v2818_v30 = vpop.xlane.xlu1 %2817  ;;  %v3721_v28 = vrot.slane %v3720_v26, 2 }
 0xd08   : > { %5348 = vrcp.f32 %v2818_v30 }
 0xd09   : > { %v3722_v30 = vadd.f32 %v3721_v28, %v3720_v26 }
 0xd0a   : > { %v3148_v34 = vpop.xlane.xlu0 %3147 }
 0xd0b   : > { %5350 = vrcp.f32 %v3148_v34 }
 0xd0e   : > { %v3314_v38 = vpop.xlane.xlu1 %3313 }
 0xd0f   : > { %5352 = vrcp.f32 %v3314_v38 }
 0xd11   : > { %v5347_v31 = vpop.eup %5346 }
 0xd12   : > { %v2912_v33 = vmul.f32 %v5347_v31, %v5339_v10  ;;  %v5349_v36 = vpop.eup %5348  ;;  %v3723_v31 = vrot.slane %v3722_v30, 1 }
 0xd13   : > { %v2820_v37 = vmul.f32 %v5349_v36, %v5341_v11  ;;  %v4616_v11 = vld [vmem:[%s5914_s27 + $0x70] sm:$0xff]  ;;  %v4619_v36 = vld [vmem:[%s6933_s4 + $0x1] ss:$0 sm:$0xff]  ;;  %s4179_s4 = sshll.u32 %s1171_s0, 4  ;;  %s4180_s4 = int_to_ptr.vmem [resolvable:$true] %s4179_s4 }
 0xd14   : > { %4919 = vmatmul.mubr.msk.f32.vlgmr.msra.gmra.mrb[14].mxu0 %vm1576_vm13, %v2912_v33  ;;  %v5120_v15 = vpack.c.bf16 %v4617_v12, %v4616_v11  ;;  %v3724_v33 = vadd.f32 %v3723_v31, %v3722_v30  ;;  %v3746_v31 = vld [vmem:[%s6939_s11] sm:$0xff]  ;;  %s5596_s6 = scalar_lea.vmem %s4180_s4, 16 }
 0xd15   : > { %4922 = vmatpush3.msk.msra.mxu0 %vm1230_vm2, %v6515_v35  ;;  %4923 = vmatprep.mubr.msk.f32.mxu0 %vm5818_vm0, %v5819_v1  ;;  %v5351_v16 = vpop.eup %5350  ;;  %p5597_p8 = scmp.ne.s32.totalorder %s4180_s4, %s5596_s6 }
 0xd16   : > { %4931 = vmatprep.subr.mxu0 %v5819_v1  ;;  %v3150_v39 = vmul.f32 %v5351_v16, %v5343_v17  ;;  %v4608_v17 = vld [vmem:[%s6932_s1 + $0x1] ss:$0 sm:$0xff]  ;;  %v3725_v34 = vmax.f32 %v3724_v33, 1.0  ;;  %v3747_v33 = vld [vmem:[%s6939_s11 + $0x8] sm:$0xff]  ;;  %s6947_s1 = sld [smem:[#allocation59_spill]] }
 0xd19   : > { %v5353_v29 = vpop.eup %5352 }
 0xd1a   : > { %v3316_v27 = vmul.f32 %v5353_v29, %v5345_v19 }
 0xd1c   : > { %4924 = vmatmul.mubr.msk.f32.vlgmr.msra.gmra.mrb[14].mxu0 %vm1576_vm13, %v2820_v37  ;;  %p6948_p9 = scmp.ne.s32.totalorder %s6947_s1, 0 }
 0xd1d   : > { %4932 = vmatpush3.msk.msra.mxu0 %vm6347_vm8, %v6515_v35  ;;  %4933 = vmatprep.mubr.msk.f32.mxu0 %vm5818_vm0, %v5819_v1 }
 0xd1e   : > { %4941 = vmatprep.subr.mxu0 %v5819_v1  ;;  %p5598_p0 = pnand %p5597_p8, %p6948_p9 }
 0xd20   : > { %p5599_p7 = pneg %p5598_p0 }
 0xd24   : > { %4934 = vmatmul.mubr.msk.f32.vlgmr.msra.gmra.mrb[14].mxu0 %vm1576_vm13, %v3150_v39 }
 0xd25   : > { %4942 = vmatpush3.msk.msra.mxu0 %vm6362_vm11, %v6515_v35  ;;  %4943 = vmatprep.mubr.msk.f32.mxu0 %vm5818_vm0, %v5819_v1 }
 0xd26   : > { %5104 = vmatprep.subr.bf16.mxu0 %v5817_v0 }
 0xd2c   : > { %4944 = vmatmul.mubr.msk.f32.vlgmr.msra.gmra.mrb[14].mxu0 %vm1576_vm13, %v3316_v27  ;;  %v1194_v27 = vld [vmem:[%s1187_s22] sm:$0xff]  ;;  %s6944_s22 = sld [smem:[#allocation52_spill]] }
 0xd2d   : > { %4965 = vmatprep.mubr.msk.f32.mxu0 %vm5818_vm0, %v5819_v1  ;;  %5106 = vmatpush3.bf16.msra.mxu0 %v5105_v54  ;;  %v5123_v54 = vpack.c.bf16 %v3751_v52, %v3750_v51 }
 0xd2e   : > { %5107 = vmatprep.subr.bf16.mxu0 %v5817_v0 }
 0xd32   : > { %s6945_s7 = smov %s6944_s22 }
 0xdff   : > { %v3386_v40 = vpop.f32.mrb[14].mxu0 }
 0xe00   : > { %v4945_v41 = vpop.f32.mrb[15].mxu0  ;;  %4955 = vmatmul.mubr.msk.f32.vlgmr.msra.gmra.mrb[22].mxu1 %vm1212_vm1, %v3386_v40  ;;  %v1198_v40 = vsel %vm1197_vm15, %v1194_v27, 0.0 }
 0xe01   : > { %4984 = vmatprep.mubr.msk.f32.mxu1 %vm5818_vm0, %v5819_v1  ;;  %5112 = vmatpush3.bf16.msra.mxu1 %v5111_v60  ;;  %v3760_v60 = vld [vmem:[%s6940_s10 + $0x30] sm:$0xff] }
 0xe02   : > { %5113 = vmatprep.subr.bf16.mxu1 %v5817_v0 }
 0xe05   : > { %5115 = vmatpush3.bf16.msra.mxu1 %v5114_v62  ;;  %v5138_v62 = vpack.c.bf16 %v3761_v61, %v3760_v60 }
 0xe06   : > { %5116 = vmatprep.subr.bf16.mxu1 %v5817_v0 }
 0xe09   : > { %5118 = vmatpush3.bf16.msra.mxu1 %v5117_v3 }
 0xe0a   : > { %5119 = vmatprep.subr.bf16.mxu1 %v5817_v0 }
 0xe0d   : > { %5121 = vmatpush3.bf16.msra.mxu1 %v5120_v15 }
 0xe0e   : > { %5134 = vmatprep.subr.bf16.mxu1 %v5817_v0 }
 0xed3   : > { %v3473_v35 = vpop.f32.mrb[22].mxu1 }
 0xed4   : > { %v3474_v42 = vadd.f32 %v4597_v32, %v3473_v35  ;;  %v4956_v43 = vpop.f32.mrb[23].mxu1  ;;  %v1199_v35 = vrot.slane %v1198_v40, 4 }
 0xed6   : > { %v3477_v44 = vadd.f32 %v3474_v42, %v6489_v13  ;;  %v4605_v13 = vld [vmem:[%s5904_s12 + $0x30] sm:$0xff] }
 0xed7   : > { %v5108_v56 = vpack.c.bf16 %v4606_v55, %v4605_v13  ;;  %v3758_v13 = vld [vmem:[%s6940_s10 + $0x20] sm:$0xff]  ;;  %v3759_v55 = vld [vmem:[%s6940_s10 + $0x28] sm:$0xff] }
 0xed8   : > { %v3482_v45 = vsel %vm1212_vm1, %v3477_v44, 0.0 }
 0xed9   : > { %3483 = vadd.xlane.f32.xlu0 %v3482_v45  ;;  %5109 = vmatpush3.bf16.msra.mxu0 %v5108_v56  ;;  %v5135_v56 = vpack.c.bf16 %v3759_v55, %v3758_v13  ;;  %v3908_v55 = vld [vmem:[%s6942_s14] sm:$0x1]  ;;  %s6946_s14 = scalar_lea.vmem [#allocation8], %s6256_s3 }
 0xeda   : > { %5122 = vmatprep.subr.bf16.mxu0 %v5817_v0 }
 0xf66   : > { %v3484_v46 = vpop.xlane.xlu0 %3483 }
 0xf67   : > { %v3485_v47 = vmul.f32 0.03125, %v3484_v46 }
 0xf69   : > { %v3486_v48 = vsub.f32 %v3477_v44, %v3485_v47  ;;  %v1200_v44 = vadd.f32 %v1199_v35, %v1198_v40 }
 0xf6b   : > { %v3487_v49 = vmul.f32 %v3486_v48, %v3486_v48  ;;  %v1201_v46 = vrot.slane %v1200_v44, 2 }
 0xf6d   : > { %v3488_v50 = vsel %vm1212_vm1, %v3487_v49, 0.0  ;;  %v1202_v47 = vadd.f32 %v1201_v46, %v1200_v44  ;;  %v3756_v44 = vld [vmem:[%s6940_s10 + $0x10] sm:$0xff] }
 0xf6e   : > { %3489 = vadd.xlane.f32.xlu1 %v3488_v50 }
 0xf7f   : > { %3741 = vperm.xlu1 %5317, %v3725_v34  }
 0xffb   : > { %v3490_v4 = vpop.xlane.xlu1 %3489 }
 0xffc   : > { %v3491_v5 = vmul.f32 0.03125, %v3490_v4 }
 0xffe   : > { %v3492_v6 = vadd.f32 1e-05, %v3491_v5 }
 0xfff   : > { %v3742_v63 = vpop.permute.xlu1 %3741 }
0x1000   : > { %5354 = vrsqrt.f32 %v3492_v6  ;;  %v1192_v6 = vld [vmem:[%s6260_s20] sm:$0xff]  ;;  %s6941_s20 = sld [smem:[#allocation49_spill]] }
0x100a   : > { %v5355_v7 = vpop.eup %5354 }
0x100b   : > { %v3494_v8 = vmul.f32 %v5355_v7, %v3486_v48  ;;  %v1203_v48 = vrot.slane %v1202_v47, 1 }
0x100d   : > { %v3501_v53 = vmul.f32 %v4601_v14, %v3494_v8  ;;  %v1204_v49 = vadd.f32 %v1203_v48, %v1202_v47  ;;  %v4623_v8 = vld [vmem:[%s6934_s16 + $0x1] ss:$0 sm:$0xff]  ;;  %v4059_v48 = vld [vmem:[%s6941_s20 + $0x8] sm:$0xff] }
0x100e   : > { %v4058_v47 = vld [vmem:[%s6941_s20] sm:$0xff] }
0x100f   : > { %v3508_v10 = vadd.f32 %v4602_v9, %v3501_v53  ;;  %v1205_v50 = vmax.f32 %v1204_v49, 1.0  ;;  %v4624_v53 = vld [vmem:[%s6935_s9 + $0x1] ss:$0 sm:$0xff]  ;;  %v5147_v49 = vpack.c.bf16 %v4059_v48, %v4058_v47 }
0x1011   : > { %4966 = vmatmul.mubr.msk.f32.vlgmr.msra.gmra.mrb[16].mxu0 %vm1212_vm1, %v3508_v10 }
0x1012   : > { %4995 = vmatprep.mubr.msk.f32.mxu0 %vm5818_vm0, %v5819_v1  ;;  %5124 = vmatpush3.bf16.msra.mxu0 %v5123_v54 }
0x1013   : > { %5125 = vmatprep.subr.bf16.mxu0 %v5817_v0 }
0x1016   : > { %5127 = vmatpush3.bf16.msra.mxu0 %v5126_v59 }
0x1017   : > { %5128 = vmatprep.subr.bf16.mxu0 %v5817_v0 }
0x10e4   : > { %v3591_v18 = vpop.f32.mrb[16].mxu0 }
0x10e5   : > { %v3592_v19 = vadd.f32 %v4608_v17, %v3591_v18  ;;  %v4967_v20 = vpop.f32.mrb[17].mxu0 }
0x10e7   : > { %v3595_v21 = vmax.f32 %v3592_v19, 0.0 }
0x10e9   : > { %4985 = vmatmul.mubr.msk.f32.vlgmr.msra.gmra.mrb[24].mxu1 %vm2373_vm14, %v3595_v21 }
0x10ea   : > { %5017 = vmatprep.mubr.msk.f32.mxu1 %vm5818_vm0, %v5819_v1  ;;  %5136 = vmatpush3.bf16.msra.mxu1 %v5135_v56 }
0x10eb   : > { %5137 = vmatprep.subr.bf16.mxu1 %v5817_v0 }
0x10ee   : > { %5139 = vmatpush3.bf16.msra.mxu1 %v5138_v62 }
0x10ef   : > { %5146 = vmatprep.subr.bf16.mxu1 %v5817_v0 }
0x11bc   : > { %v3682_v37 = vpop.f32.mrb[24].mxu1 }
0x11bd   : > { %v3683_v38 = vadd.f32 %v4619_v36, %v3682_v37  ;;  %v4986_v16 = vpop.f32.mrb[25].mxu1  ;;  %v5129_v37 = vpack.c.bf16 %v3747_v33, %v3746_v31 }
0x11bf   : > { %v3686_v39 = vadd.f32 %v3683_v38, %v3508_v10 }
0x11c1   : > { %v3691_v29 = vsel %vm1212_vm1, %v3686_v39, 0.0 }
0x11c2   : > { %3692 = vadd.xlane.f32.xlu0 %v3691_v29  ;;  %v3749_v29 = vld [vmem:[%s6939_s11 + $0x18] sm:$0xff] }
0x11d8   : > { %3728 = vperm.xlu0 %5316, %v1195_v23  }
0x124f   : > { %v3693_v41 = vpop.xlane.xlu0 %3692 }
0x1250   : > { %v3694_v32 = vmul.f32 0.03125, %v3693_v41  ;;  %v3754_v41 = vld [vmem:[%s6940_s10] sm:$0xff] }
0x1252   : > { %v3695_v42 = vsub.f32 %v3686_v39, %v3694_v32  ;;  %v3748_v39 = vld [vmem:[%s6939_s11 + $0x10] sm:$0xff]  ;;  %v3755_v32 = vld [vmem:[%s6940_s10 + $0x8] sm:$0xff] }
0x1254   : > { %v3696_v43 = vmul.f32 %v3695_v42, %v3695_v42 }
0x1256   : > { %v3697_v45 = vsel %vm1212_vm1, %v3696_v43, 0.0 }
0x1257   : > { %3698 = vadd.xlane.f32.xlu1 %v3697_v45  ;;  %v3729_v12 = vpop.permute.xlu0 %3728  ;;  %v3757_v45 = vld [vmem:[%s6940_s10 + $0x18] sm:$0xff] }
0x1258   : > { %v5144_v46 = vpack.c.bf16 %v3757_v45, %v3756_v44 }
0x1268   : > { %1208 = vperm.xlu1 %5317, %v1194_v27   ;;  %v5132_v27 = vpack.c.bf16 %v3749_v29, %v3748_v39 }
0x126c   : > { %1222 = vperm.xlu1 %5317, %v1205_v50  }
0x12e4   : > { %v3699_v2 = vpop.xlane.xlu1 %3698 }
0x12e5   : > { %v3700_v3 = vmul.f32 0.03125, %v3699_v2  ;;  %v4052_v2 = vld [vmem:[%s6946_s14] sm:$0x1]  ;;  %s5822_s14 = smov [#allocation17]  }
0x12e6   : > { %s5600_s8 = sshll.u32 %s5822_s14, 4  ;;  %s5601_s8 = int_to_ptr.vmem [resolvable:$false] %s5600_s8 }
0x12e7   : > { %v3701_v4 = vadd.f32 1e-05, %v3700_v3  ;;  %s5602_s9 = scalar_lea.vmem %s5601_s8, 32  ;;  %p5603_p10 = scmp.lt.s32.totalorder %s4180_s4, %s5601_s8 }
0x12e8   : > { %v1209_v5 = vpop.permute.xlu1 %1208  ;;  %p5604_p3 = scmp.lt.s32.totalorder %s5602_s9, %s5596_s6 }
0x12e9   : > { %5356 = vrsqrt.f32 %v3701_v4  ;;  %v1211_v7 = vmul.f32 %v1209_v5, %v1192_v6 }
0x12ea   : > { %5358 = vrcp.f32 %v3742_v63  ;;  %p5605_p11 = por %p5604_p3, %p5603_p10 }
0x12eb   : > { %v1213_v10 = vsel %vm1212_vm1, %v1211_v7, 0.0 }
0x12ec   : > { %v1214_v17 = vrot.slane %v1213_v10, 4  ;;  %v1223_v24 = vpop.permute.xlu1 %1222  ;;  %p5606_p12 = pnand %p5605_p11, %p5599_p7 }
0x12ed   : > { %5360 = vrcp.f32 %v1223_v24 }
0x12ee   : > { %v1215_v20 = vadd.f32 %v1214_v17, %v1213_v10 }
0x12f0   : > { %v1216_v23 = vrot.slane %v1215_v20, 2 }
0x12f2   : > { %v1217_v28 = vadd.f32 %v1216_v23, %v1215_v20 }
0x12f3   : > { %v5357_v14 = vpop.eup %5356 }
0x12f4   : > { %v3703_v9 = vmul.f32 %v5357_v14, %v3695_v42  ;;  %v5359_v36 = vpop.eup %5358  ;;  %v1218_v38 = vrot.slane %v1217_v28, 1  ;;  %v5141_v42 = vpack.c.bf16 %v3755_v32, %v3754_v41 }
0x12f6   : > { %v3710_v11 = vmul.f32 %v4623_v8, %v3703_v9  ;;  %v1219_v40 = vadd.f32 %v1218_v38, %v1217_v28 }
0x12f7   : > { %v5361_v35 = vpop.eup %5360 }
0x12f8   : > { %v3717_v15 = vadd.f32 %v4624_v53, %v3710_v11  ;;  %v1226_v43 = vmul.f32 %v5361_v35, %v1219_v40 }
0x12fa   : > { %v3731_v18 = vmul.f32 %v3729_v12, %v3717_v15 }
0x12fc   : > { %v3732_v19 = vsel %vm1212_vm1, %v3731_v18, 0.0 }
0x12fd   : > { %v3733_v21 = vrot.slane %v3732_v19, 4 }
0x12ff   : > { %v3734_v22 = vadd.f32 %v3733_v21, %v3732_v19 }
0x1301   : > { %v3735_v25 = vrot.slane %v3734_v22, 2 }
0x1303   : > { %v3736_v26 = vadd.f32 %v3735_v25, %v3734_v22 }
0x1305   : > { %v3737_v30 = vrot.slane %v3736_v26, 1 }
0x1307   : > { %v3738_v34 = vadd.f32 %v3737_v30, %v3736_v26 }
0x1309   : > { %v3745_v16 = vmul.f32 %v5359_v36, %v3738_v34 }
0x130b   : > { %4996 = vmatmul.mubr.msk.f32.vlgmr.msra.gmra.mrb[18].mxu0 %vm1212_vm1, %v3745_v16  ;;  %5018 = vmatmul.mubr.msk.f32.vlgmr.msra.gmra.mrb[26].mxu1 %vm1212_vm1, %v3745_v16 }
0x130c   : > { %5130 = vmatpush3.bf16.msra.mxu0 %v5129_v37  ;;  %5006 = vmatprep.mubr.msk.f32.mxu0 %vm5818_vm0, %v5819_v1 }
0x130d   : > { %5131 = vmatprep.subr.bf16.mxu0 %v5817_v0  ;;  %5035 = vmatprep.mubr.msk.f32.mxu1 %vm5818_vm0, %v5819_v1 }
0x130e   : > { %5148 = vmatpush3.bf16.msra.mxu1 %v5147_v49 }
0x1310   : > { %5133 = vmatpush3.bf16.msra.mxu0 %v5132_v27 }
0x1311   : > { %5140 = vmatprep.subr.bf16.mxu0 %v5817_v0 }
0x1313   : > { %5007 = vmatmul.mubr.msk.f32.vlgmr.msra.gmra.mrb[20].mxu0 %vm1212_vm1, %v1226_v43 }
0x1314   : > { %5142 = vmatpush3.bf16.msra.mxu0 %v5141_v42  ;;  %5028 = vmatprep.mubr.msk.f32.mxu0 %vm5818_vm0, %v5819_v1  ;;  %vm4135_vm0 = vcmask 122880  }
0x1315   : > { %5143 = vmatprep.subr.bf16.mxu0 %v5817_v0 }
0x1318   : > { %5145 = vmatpush3.bf16.msra.mxu0 %v5144_v46 }
0x131b   : > { %5029 = vmatmul.mubr.msk.f32.vlgmr.msra.gmra.mrb[22].mxu0 %vm1212_vm1, %v1226_v43  ;;  %vm4061_vm1 = vcmask 130048  }
0x13de   : > { %v3831_v50 = vpop.f32.mrb[18].mxu0  ;;  %v3976_v51 = vpop.f32.mrb[26].mxu1 }
0x13df   : > { %v4997_v52 = vpop.f32.mrb[19].mxu0  ;;  %v5019_v54 = vpop.f32.mrb[27].mxu1 }
0x13e6   : > { %v3904_v13 = vpop.f32.mrb[20].mxu0 }
0x13e7   : > { %v3905_v1 = vadd.f32 %v3904_v13, %v3831_v50  ;;  %v5008_v0 = vpop.f32.mrb[21].mxu0 }
0x13e9   : > { %v3909_v56 = vadd.f32 %v3908_v55, %v3905_v1 }
0x13eb   : > { %4136 = vst.msk [vmem:[%s6848_s17] sm:$0x1] %vm4135_vm0, %v3909_v56  ;;  %s6688_s17 = sshll.u32 %s6012_s28, 4 }
0x13ec   : > { %s6692_s2 = scalar_lea.hbm %s6944_s22, %s6688_s17 }
0x13ee   : > { %v4046_v57 = vpop.f32.mrb[22].mxu0 }
0x13ef   : > { %v4047_v59 = vadd.f32 %v4046_v57, %v3976_v51  ;;  %v5030_v60 = vpop.f32.mrb[23].mxu0 }
0x13f1   : > { %v4051_v61 = vadd.f32 %v4050_v58, %v4047_v59 }
0x13f3   : > { %v4053_v62 = vmul.f32 0.5, %v4051_v61  ;;  %4137 = vst.msk [vmem:[%s1171_s0] sm:$0x1] %vm4135_vm0, %v4051_v61 }
0x13f5   : > { %v4054_v63 = vmul.f32 1.442695, %v4053_v62 }
0x13f7   : > { %5362 = vpow2.f32 %v4054_v63 }
0x1401   : > { %v5363_v3 = vpop.eup %5362 }
0x1402   : > { %v4056_v4 = vmul.f32 %v5363_v3, %v4052_v2 }
0x1404   : > { %v4057_v5 = vadd.f32 %v4056_v4, %v3909_v56 }
0x1406   : > { %5036 = vmatmul.mubr.msk.f32.vlgmr.msra.gmra.mrb[28].mxu1 %vm4061_vm1, %v4057_v5  ;;  %4138 = vst.msk [vmem:[%s6855_s13] sm:$0x1] %vm4135_vm0, %v4057_v5 }
0x1407   : > { %5609 = shalt.err (!%p5606_p12)
}
0x1408   : > { %s5610_s28 = scalar_lea.hbm %s6692_s2, 16  ;;  %s5614_s22 = scalar_lea.hbm %s6945_s7, 32 }
0x1409   : > { %p5611_p2 = scmp.ne.s32.totalorder %s6692_s2, %s5610_s28  ;;  %p5615_p5 = scmp.lt.u32.totalorder %s6692_s2, %s6945_s7 }
0x140a   : > { %p5616_p1 = scmp.lt.u32.totalorder %s5614_s22, %s5610_s28  ;;  %p5618_p8 = scmp.lt.u32.totalorder %s5610_s28, %s6692_s2 }
0x140b   : > { %p5612_p6 = pnand %p5611_p2, %p6948_p9 }
0x140c   : > { %p5617_p4 = por %p5616_p1, %p5615_p5 }
0x140d   : > { %p5613_p13 = pneg %p5612_p6 }
0x140e   : > { %p5619_p0 = por %p5618_p8, %p5617_p4 }
0x1410   : > { %p5620_p7 = pnand %p5619_p0, %p5613_p13 }
0x1412   : > { %5623 = shalt.err (!%p5620_p7)
}
0x1413   : > { %s6949_s8 = sld [smem:[#allocation51_spill]]  ;;  %s6950_s6 = sld [smem:[#allocation53_spill]] }
0x1414   : > { %5186 = dma.vmem_to_hbm [thread:$0]  (%p6948_p9), %s4180_s4, 16, %s6692_s2, %s4146_s5  }
0x1415   : > { %s6951_s0 = scalar_lea.vmem [#allocation16], %s6256_s3  ;;  %s4142_s22 = scalar_lea.sflag [#allocation4], %s6256_s3 }
0x1416   : > { %s4166_s14 = sshll.u32 %s6951_s0, 4  ;;  %s5823_s7 = smov [#allocation16]   ;;  %s6716_s14 = int_to_ptr.vmem [resolvable:$true] %s4166_s14 }
0x1417   : > { %s5624_s13 = scalar_lea.vmem %s6716_s14, 16  ;;  %s5628_s10 = sshll.u32 %s5823_s7, 4  ;;  %s5629_s10 = int_to_ptr.vmem [resolvable:$false] %s5628_s10 }
0x1418   : > { %p5625_p10 = scmp.ne.s32.totalorder %s6716_s14, %s5624_s13  ;;  %s5630_s2 = scalar_lea.vmem %s5629_s10, 32 }
0x1419   : > { %s6712_s9 = scalar_lea.hbm %s6949_s8, %s6688_s17  ;;  %s6720_s28 = scalar_lea.hbm %s6950_s6, %s6688_s17 }
0x141a   : > { %p5626_p3 = pnand %p5625_p10, %p6948_p9  ;;  %p5631_p12 = scmp.lt.s32.totalorder %s6716_s14, %s5629_s10 }
0x141b   : > { %p5632_p2 = scmp.lt.s32.totalorder %s5630_s2, %s5624_s13 }
0x141c   : > { %p5627_p11 = pneg %p5626_p3 }
0x141d   : > { %p5633_p6 = por %p5632_p2, %p5631_p12 }
0x141f   : > { %p5634_p13 = pnand %p5633_p6, %p5627_p11 }
0x1421   : > { %5637 = shalt.err (!%p5634_p13)
}
0x1422   : > { %s5638_s4 = scalar_lea.hbm %s6712_s9, 16  ;;  %s5642_s7 = scalar_lea.hbm %s6949_s8, 32 }
0x1423   : > { %p5639_p5 = scmp.ne.s32.totalorder %s6712_s9, %s5638_s4  ;;  %p5643_p8 = scmp.lt.u32.totalorder %s6712_s9, %s6949_s8 }
0x1424   : > { %p5644_p0 = scmp.lt.u32.totalorder %s5642_s7, %s5638_s4  ;;  %p5646_p10 = scmp.lt.u32.totalorder %s5638_s4, %s6712_s9 }
0x1425   : > { %p5640_p1 = pnand %p5639_p5, %p6948_p9 }
0x1426   : > { %p5645_p7 = por %p5644_p0, %p5643_p8 }
0x1427   : > { %p5641_p4 = pneg %p5640_p1 }
0x1428   : > { %p5647_p3 = por %p5646_p10, %p5645_p7 }
0x142a   : > { %p5648_p11 = pnand %p5647_p3, %p5641_p4 }
0x142c   : > { %5651 = shalt.err (!%p5648_p11)
}
0x142d   : > { %5185 = dma.vmem_to_hbm [thread:$0]  (%p6948_p9), %s6716_s14, 16, %s6712_s9, %s4142_s22  }
0x142e   : > { %s6952_s10 = scalar_lea.vmem [#allocation19], %s6256_s3  ;;  %s5824_s2 = smov [#allocation19]  }
0x142f   : > { %s4192_s13 = sshll.u32 %s6952_s10, 4  ;;  %s5656_s4 = sshll.u32 %s5824_s2, 4  ;;  %s4193_s13 = int_to_ptr.vmem [resolvable:$true] %s4192_s13  ;;  %s5657_s4 = int_to_ptr.vmem [resolvable:$false] %s5656_s4 }
0x1430   : > { %s5652_s0 = scalar_lea.vmem %s4193_s13, 16  ;;  %s5658_s7 = scalar_lea.vmem %s5657_s4, 32 }
0x1431   : > { %p5653_p12 = scmp.ne.s32.totalorder %s4193_s13, %s5652_s0  ;;  %p5659_p13 = scmp.lt.s32.totalorder %s4193_s13, %s5657_s4 }
0x1432   : > { %p5660_p5 = scmp.lt.s32.totalorder %s5658_s7, %s5652_s0 }
0x1433   : > { %p5654_p2 = pnand %p5653_p12, %p6948_p9 }
0x1434   : > { %p5661_p1 = por %p5660_p5, %p5659_p13 }
0x1435   : > { %p5655_p6 = pneg %p5654_p2 }
0x1437   : > { %p5662_p4 = pnand %p5661_p1, %p5655_p6 }
0x1439   : > { %5665 = shalt.err (!%p5662_p4)
}
0x143a   : > { %s5666_s9 = scalar_lea.hbm %s6720_s28, 16  ;;  %s5670_s14 = scalar_lea.hbm %s6950_s6, 32 }
0x143b   : > { %p5667_p8 = scmp.ne.s32.totalorder %s6720_s28, %s5666_s9  ;;  %p5671_p10 = scmp.lt.u32.totalorder %s6720_s28, %s6950_s6 }
0x143c   : > { %p5672_p3 = scmp.lt.u32.totalorder %s5670_s14, %s5666_s9  ;;  %p5674_p12 = scmp.lt.u32.totalorder %s5666_s9, %s6720_s28 }
0x143d   : > { %p5668_p0 = pnand %p5667_p8, %p6948_p9 }
0x143e   : > { %p5673_p11 = por %p5672_p3, %p5671_p10 }
0x143f   : > { %p5669_p7 = pneg %p5668_p0 }
0x1440   : > { %p5675_p2 = por %p5674_p12, %p5673_p11 }
0x1442   : > { %p5676_p6 = pnand %p5675_p2, %p5669_p7 }
0x1444   : > { %5679 = shalt.err (!%p5676_p6)
}
0x1445   : > { %s6953_s22 = sld [smem:[#allocation50_spill]]  ;;  %s6954_s10 = sld [smem:[#allocation54_spill]]  ;;  %vm4139_vm2 = vcmask 253952  }
0x1446   : > { %5187 = dma.vmem_to_hbm [thread:$0]  (%p6948_p9), %s4193_s13, 16, %s6720_s28, %s4146_s5  }
0x1447   : > { %s1183_s0 = scalar_lea.vmem [#allocation20], %s6256_s3  ;;  %s4154_s18 = scalar_lea.sflag [#allocation21], %s6256_s3 }
0x1448   : > { %s4205_s2 = sshll.u32 %s1183_s0, 4  ;;  %s5825_s5 = smov [#allocation20]   ;;  %s6763_s2 = int_to_ptr.vmem [resolvable:$true] %s4205_s2 }
0x1449   : > { %s5680_s7 = scalar_lea.vmem %s6763_s2, 16  ;;  %s5684_s28 = sshll.u32 %s5825_s5, 4  ;;  %s5685_s28 = int_to_ptr.vmem [resolvable:$false] %s5684_s28 }
0x144a   : > { %p5681_p13 = scmp.ne.s32.totalorder %s6763_s2, %s5680_s7  ;;  %s5686_s13 = scalar_lea.vmem %s5685_s28, 32 }
0x144b   : > { %v4060_v6 = vld [vmem:[%s6953_s22] sm:$0x1]  ;;  %s6761_s4 = scalar_lea.hbm %s6954_s10, %s6688_s17  ;;  %p5687_p4 = scmp.lt.s32.totalorder %s6763_s2, %s5685_s28 }
0x144c   : > { %p5682_p5 = pnand %p5681_p13, %p6948_p9  ;;  %p5688_p8 = scmp.lt.s32.totalorder %s5686_s13, %s5680_s7 }
0x144e   : > { %p5683_p1 = pneg %p5682_p5  ;;  %p5689_p0 = por %p5688_p8, %p5687_p4 }
0x1450   : > { %p5690_p7 = pnand %p5689_p0, %p5683_p1 }
0x14d9   : > { %v4131_v7 = vpop.f32.mrb[28].mxu1 }
0x14da   : > { %v4132_v14 = vadd.f32 %v4131_v7, %v4060_v6  ;;  %v5037_v8 = vpop.f32.mrb[29].mxu1 }
0x14dc   : > { %4140 = vst.msk [vmem:[%s1183_s0] sm:$0x1] %vm4139_vm2, %v4132_v14 }
0x14dd   : > { %5693 = shalt.err (!%p5690_p7)
}
0x14de   : > { %s5694_s3 = scalar_lea.hbm %s6761_s4, 16  ;;  %s5698_s17 = scalar_lea.hbm %s6954_s10, 32 }
0x14df   : > { %p5695_p10 = scmp.ne.s32.totalorder %s6761_s4, %s5694_s3  ;;  %p5699_p12 = scmp.lt.u32.totalorder %s6761_s4, %s6954_s10 }
0x14e0   : > { %p5700_p2 = scmp.lt.u32.totalorder %s5698_s17, %s5694_s3  ;;  %p5702_p13 = scmp.lt.u32.totalorder %s5694_s3, %s6761_s4 }
0x14e1   : > { %p5696_p3 = pnand %p5695_p10, %p6948_p9 }
0x14e2   : > { %p5701_p6 = por %p5700_p2, %p5699_p12 }
0x14e3   : > { %p5697_p11 = pneg %p5696_p3 }
0x14e4   : > { %p5703_p5 = por %p5702_p13, %p5701_p6 }
0x14e6   : > { %p5704_p1 = pnand %p5703_p5, %p5697_p11 }
0x14e8   : > { %5707 = shalt.err (!%p5704_p1)
}
0x14e9   : > { %5188 = dma.vmem_to_hbm [thread:$0]  (%p6948_p9), %s6763_s2, 16, %s6761_s4, %s4154_s18  }
0x14ea PF: > { %s6955_s9 = sld [smem:[#allocation55_spill]]  ;;  %s6956_s14 = sld [smem:[#allocation57_spill]] }
0x14eb   : > { %p6958_p8 = scmp.ge.s32.totalorder %s5774_s26, 2 }
0x14f0   : > { %s4217_s22 = sand.u32 1, %s6955_s9   ;;  %p6957_p4 = scmp.ne.s32.totalorder %s6956_s14, 0 }
0x14f1   : > { %s4218_s0 = scalar_lea.sflag [#allocation4], %s4217_s22 }
0x14f2   : > { %p5220_p0 = pnand %p6958_p8, %p6957_p4 }
0x14f4   : > { %5749 = dma.done.wait (!%p5220_p0), %s4218_s0, 16  }
0x14f5   : > { %5751 = vsyncadd (!%p5220_p0), %s4218_s0, 4294967280  ;;  %s6959_s7 = sadd.s32 4294967294, %s5774_s26  }
0x14f6   : > { %s4225_s5 = sand.u32 1, %s6959_s7  }
0x14f7   : > { %s4226_s28 = scalar_lea.sflag [#allocation18], %s4225_s5 }
0x14f8   : > { %5753 = dma.done.wait (!%p5220_p0), %s4226_s28, 32  }
0x14f9   : > { %5755 = vsyncadd (!%p5220_p0), %s4226_s28, 4294967264  ;;  %s4242_s1 = scalar_lea.sflag [#allocation21], %s4217_s22 }
0x14fa   : > { %5757 = dma.done.wait (!%p5220_p0), %s4242_s1, 16  }
0x14fb   : > { %5759 = vsyncadd (!%p5220_p0), %s4242_s1, 4294967280  ;;  %s6960_s26 = sld [smem:[#allocation58_spill]]  ;;  %s6961_s2 = sld [smem:[#allocation56_spill]] }
0x14fc   : > { %s6962_s0 = sld [smem:[#allocation60_spill]]  ;;  %s6963_s22 = smov %s5766_s23 }
0x1501   : > { %p91_p9 = scmp.ge.s32.totalorder %s6960_s26, 4   ;;  %s6964_s23 = smov %s6961_s2 }
0x1503   :  { %93 = sbr.rel (!%p91_p9) target bundleno = 74 (0x4a), region = 332 }
0x150a   :  { %4246 = vsyncpa [#allocation3], 1 }
0x150b   :  { %4248 = vsyncpa [#allocation3 + $0x1], 1 }
0x150c   :  { %4249 = vsyncpa [#allocation6], 1 }
0x150d   :  { %4251 = vsyncpa [#allocation6 + $0x1], 1 }
0x150e   :  { %4252 = vsyncpa [#allocation9], 1 }
0x150f   :  { %4254 = vsyncpa [#allocation9 + $0x1], 1 }
0x1510   :  { %4255 = vsyncpa [#allocation12], 1 }
0x1511   :  { %4256 = vsyncpa [#allocation15], 1 }
0x1512   :  { %4257 = vsyncpa [#allocation4], 1 }
0x1513   :  { %4259 = vsyncpa [#allocation4 + $0x1], 1 }
0x1514   :  { %4260 = vsyncpa [#allocation18], 1 }
0x1515   :  { %4262 = vsyncpa [#allocation18 + $0x1], 1 }
0x1516   :  { %4263 = vsyncpa [#allocation21], 1 }
0x1517   :  { %4265 = vsyncpa [#allocation21 + $0x1], 1 }

</bundles_post_ra>
